<compile_context>
chip_gen: v5e
topology: v5e:2x2
jax: 0.10.0
libtpu: 0.0.40
codegen_flags: <defaults>
</compile_context>

<pallas_src>
import math
import functools

import jax
import jax.numpy as jnp
from jax.experimental import pallas as pl
from jax.experimental.pallas import tpu as pltpu

INPUT_DIM = 32 * 32 * 3        # 3072 (multiple of 128 lanes)
HIDDEN = 200
OUT = 10
PARAM_SIZES = [INPUT_DIM * HIDDEN, HIDDEN, HIDDEN * HIDDEN, HIDDEN, HIDDEN * OUT, OUT]
D = sum(PARAM_SIZES)
R_XAVIER = math.sqrt(HIDDEN + HIDDEN + OUT)

# Lane-aligned padded dims (zero padding => identical math, dense layouts).
HIDDEN_PAD = 256               # 200 -> 2 x 128 lanes
OUT_PAD = 128                  # 10  -> 1 x 128 lanes (dense vst, no vst.msk)

DEFAULT_BATCH_TILE = 512       # rows of x per grid step (sweepable)
COMPUTE_DTYPE = jnp.bfloat16   # MXU operand dtype; accumulation stays f32


def _round_up(n, m):
    return ((n + m - 1) // m) * m


def fcnet_kernel(x_ref, w1_ref, b1_ref, w2_ref, b2_ref, w3_ref, b3_ref, o_ref):
    cdt = w1_ref.dtype
    # Cast x to bf16 in-kernel: VPU filler under MXU/HBM slack, and it removes a
    # full read+write pass over x in the wrapper.
    x = x_ref[...].astype(cdt)
    # Layer 1: (tb, 3072) @ (3072, 256) + b1, ReLU
    h1 = jnp.dot(x, w1_ref[...], preferred_element_type=jnp.float32) + b1_ref[...]
    h1 = jnp.maximum(h1, 0.0).astype(cdt)
    # Layer 2: (tb, 256) @ (256, 256) + b2, ReLU
    h2 = jnp.dot(h1, w2_ref[...], preferred_element_type=jnp.float32) + b2_ref[...]
    h2 = jnp.maximum(h2, 0.0).astype(cdt)
    # Layer 3: (tb, 256) @ (256, 128) + b3  (no activation)
    o = jnp.dot(h2, w3_ref[...], preferred_element_type=jnp.float32) + b3_ref[...]
    o_ref[...] = o.astype(o_ref.dtype)


def _split_params(flat_weights):
    """Split the flat parameter vector exactly like torch.split(param_sizes)."""
    offs = [0]
    for s in PARAM_SIZES:
        offs.append(offs[-1] + s)
    w1 = jnp.reshape(flat_weights[offs[0]:offs[1]], (INPUT_DIM, HIDDEN))
    b1 = jnp.reshape(flat_weights[offs[1]:offs[2]], (1, HIDDEN))
    w2 = jnp.reshape(flat_weights[offs[2]:offs[3]], (HIDDEN, HIDDEN))
    b2 = jnp.reshape(flat_weights[offs[3]:offs[4]], (1, HIDDEN))
    w3 = jnp.reshape(flat_weights[offs[4]:offs[5]], (HIDDEN, OUT))
    b3 = jnp.reshape(flat_weights[offs[5]:offs[6]], (1, OUT))
    return w1, b1, w2, b2, w3, b3


def prepare_fcnet_params(flat_weights, compute_dtype=COMPUTE_DTYPE):
    """Split + zero-pad to lane-dense dims + cast matmul operands.

    Call this ONCE per weight vector and reuse the result across forward calls
    (avoids re-reading ~2.6 MB of f32 weights and re-writing padded bf16 copies
    on every forward). Pad regions are exactly zero, so math matches the
    unpadded forward.
    """
    w1, b1, w2, b2, w3, b3 = _split_params(flat_weights.astype(jnp.float32))
    w1p = jnp.pad(w1, ((0, 0), (0, HIDDEN_PAD - HIDDEN))).astype(compute_dtype)
    b1p = jnp.pad(b1, ((0, 0), (0, HIDDEN_PAD - HIDDEN)))                       # f32
    w2p = jnp.pad(w2, ((0, HIDDEN_PAD - HIDDEN),
                       (0, HIDDEN_PAD - HIDDEN))).astype(compute_dtype)
    b2p = jnp.pad(b2, ((0, 0), (0, HIDDEN_PAD - HIDDEN)))                       # f32
    w3p = jnp.pad(w3, ((0, HIDDEN_PAD - HIDDEN),
                       (0, OUT_PAD - OUT))).astype(compute_dtype)
    b3p = jnp.pad(b3, ((0, 0), (0, OUT_PAD - OUT)))                             # f32
    return w1p, b1p, w2p, b2p, w3p, b3p


def _choose_tile(batch, batch_tile):
    """Batch tile: multiple of 8 (f32 sublanes; large tiles are multiples of 16
    for bf16 repack), capped so the grid has >= 2 steps when batch permits so
    both v7x TensorCores get work."""
    if batch >= 32:
        tile = min(batch_tile, _round_up(pl.cdiv(batch, 2), 16))
    else:
        tile = min(batch_tile, _round_up(batch, 8))
    return max(tile, 8)


def fcnet_forward(x, params, *, batch_tile=DEFAULT_BATCH_TILE, out_dtype=jnp.float32):
    """x: any shape that flattens (row-major) to (-1, INPUT_DIM).
    params: either the flat (D,) f32 weight vector or the tuple returned by
    prepare_fcnet_params (preferred: prepare once, reuse)."""
    if not isinstance(params, (tuple, list)):
        params = prepare_fcnet_params(params)
    w1p, b1p, w2p, b2p, w3p, b3p = params

    # No wrapper-side cast or pad of x: reshape only, cast happens in-kernel.
    x2d = jnp.reshape(x, (-1, INPUT_DIM))
    batch = x2d.shape[0]
    tile = _choose_tile(batch, batch_tile)
    grid = (pl.cdiv(batch, tile),)          # partial last block handled by Pallas

    resident = dict(pipeline_mode=pl.Buffered(1))   # grid-invariant: single-buffer

    out = pl.pallas_call(
        fcnet_kernel,
        out_shape=jax.ShapeDtypeStruct((batch, OUT_PAD), out_dtype),
        grid_spec=pltpu.PrefetchScalarGridSpec(
            num_scalar_prefetch=0,
            grid=grid,
            in_specs=[
                pl.BlockSpec((tile, INPUT_DIM), lambda i: (i, 0)),                     # x tile
                pl.BlockSpec((INPUT_DIM, HIDDEN_PAD), lambda i: (0, 0), **resident),   # w1
                pl.BlockSpec((1, HIDDEN_PAD), lambda i: (0, 0), **resident),           # b1
                pl.BlockSpec((HIDDEN_PAD, HIDDEN_PAD), lambda i: (0, 0), **resident),  # w2
                pl.BlockSpec((1, HIDDEN_PAD), lambda i: (0, 0), **resident),           # b2
                pl.BlockSpec((HIDDEN_PAD, OUT_PAD), lambda i: (0, 0), **resident),     # w3
                pl.BlockSpec((1, OUT_PAD), lambda i: (0, 0), **resident),              # b3
            ],
            out_specs=pl.BlockSpec((tile, OUT_PAD), lambda i: (i, 0)),
        ),
        compiler_params=pltpu.CompilerParams(
            dimension_semantics=("parallel",),   # megacore sharding on v7x
            vmem_limit_bytes=40 << 20,           # <= v7x 64 MiB; plenty for 512-row f32 x tiles
        ),
    )(x2d, w1p, b1p, w2p, b2p, w3p, b3p)

    # Strip lane padding (and any partial-block garbage columns) outside the kernel.
    return out[:, :OUT]


def init_flat_weights(key, r_0=None):
    """Deterministic init matching FCNet.__init__: randn(D) rescaled to norm r_0."""
    if r_0 is None:
        r_0 = R_XAVIER
    w = jax.random.normal(key, (D,), dtype=jnp.float32)
    w = w * (r_0 / jnp.linalg.norm(w))
    return w


def _reference_quantized(x, flat_weights, compute_dtype=COMPUTE_DTYPE):
    """Plain-JAX reference matching the kernel's bf16-operand / f32-accumulate numerics."""
    x2d = jnp.reshape(x, (-1, INPUT_DIM)).astype(jnp.float32)
    w1, b1, w2, b2, w3, b3 = _split_params(flat_weights)

    def q(a):
        return a.astype(compute_dtype).astype(jnp.float32)

    h1 = jax.nn.relu(jnp.dot(q(x2d), q(w1), preferred_element_type=jnp.float32) + b1)
    h2 = jax.nn.relu(jnp.dot(q(h1), q(w2), preferred_element_type=jnp.float32) + b2)
    return jnp.dot(q(h2), q(w3), preferred_element_type=jnp.float32) + b3


def _reference_f32(x, flat_weights):
    """Pure f32 reference (matches the PyTorch module math)."""
    x2d = jnp.reshape(x, (-1, INPUT_DIM)).astype(jnp.float32)
    w1, b1, w2, b2, w3, b3 = _split_params(flat_weights)
    h1 = jax.nn.relu(x2d @ w1 + b1)
    h2 = jax.nn.relu(h1 @ w2 + b2)
    return h2 @ w3 + b3


if __name__ == "__main__":
    key = jax.random.PRNGKey(0)
    k_w, k_x = jax.random.split(key)

    flat_weights = init_flat_weights(k_w)
    # Small NCHW-like input consistent with input_dim = 3*32*32
    x = jax.random.normal(k_x, (8, 3, 32, 32), dtype=jnp.float32)

    # Prepare padded bf16 weights ONCE; reuse across forward calls.
    params = prepare_fcnet_params(flat_weights)

    fwd = jax.jit(functools.partial(fcnet_forward, batch_tile=DEFAULT_BATCH_TILE))
    out = fwd(x, params)
    out = jax.block_until_ready(out)
    assert out.shape == (8, OUT), out.shape

    ref_q = _reference_quantized(x, flat_weights)
    assert jnp.allclose(out, ref_q, atol=1e-2, rtol=1e-2), "mismatch vs bf16-operand reference"

    ref_f32 = _reference_f32(x, flat_weights)
    assert jnp.allclose(out, ref_f32, atol=1e-1, rtol=1e-1), "mismatch vs f32 reference"

    print("KERNEL_OK")
</pallas_src>

<mosaic_0001>
module attributes {stable_mosaic.version = 11 : i64} {
  func.func @fcnet_kernel(%arg0: i32, %arg1: memref<8x3072xf32, #tpu.memory_space<vmem>>, %arg2: memref<3072x256xbf16, #tpu.memory_space<vmem>>, %arg3: memref<1x256xf32, #tpu.memory_space<vmem>>, %arg4: memref<256x256xbf16, #tpu.memory_space<vmem>>, %arg5: memref<1x256xf32, #tpu.memory_space<vmem>>, %arg6: memref<256x128xbf16, #tpu.memory_space<vmem>>, %arg7: memref<1x128xf32, #tpu.memory_space<vmem>>, %arg8: memref<8x128xf32, #tpu.memory_space<vmem>>) attributes {dimension_semantics = [#tpu.dimension_semantics<parallel>], iteration_bounds = array<i64: 1>, scalar_prefetch = 0 : i64, scratch_operands = 0 : i64, tpu.core_type = #tpu.core_type<tc>, window_params = [{transform_indices = @transform_0, window_bounds = array<i64: 8, 3072>}, {pipeline_mode = #tpu.pipeline_mode<synchronous>, transform_indices = @transform_1, window_bounds = array<i64: 3072, 256>}, {pipeline_mode = #tpu.pipeline_mode<synchronous>, transform_indices = @transform_2, window_bounds = array<i64: 1, 256>}, {pipeline_mode = #tpu.pipeline_mode<synchronous>, transform_indices = @transform_3, window_bounds = array<i64: 256, 256>}, {pipeline_mode = #tpu.pipeline_mode<synchronous>, transform_indices = @transform_4, window_bounds = array<i64: 1, 256>}, {pipeline_mode = #tpu.pipeline_mode<synchronous>, transform_indices = @transform_5, window_bounds = array<i64: 256, 128>}, {pipeline_mode = #tpu.pipeline_mode<synchronous>, transform_indices = @transform_6, window_bounds = array<i64: 1, 128>}, {transform_indices = @transform_7, window_bounds = array<i64: 8, 128>}]} {
    %c0 = arith.constant 0 : index
    %c0_0 = arith.constant 0 : index
    %0 = vector.load %arg1[%c0, %c0_0] : memref<8x3072xf32, #tpu.memory_space<vmem>>, vector<8x3072xf32>
    %1 = arith.truncf %0 : vector<8x3072xf32> to vector<8x3072xbf16>
    %c0_1 = arith.constant 0 : index
    %c0_2 = arith.constant 0 : index
    %2 = vector.load %arg2[%c0_1, %c0_2] : memref<3072x256xbf16, #tpu.memory_space<vmem>>, vector<3072x256xbf16>
    %cst = arith.constant dense<0.000000e+00> : vector<8x256xf32>
    %3 = tpu.matmul %1, %2, %cst {dimension_numbers = #tpu.dot_dimension_numbers<[1], [0], [0], [1], [0, 0, 1, 1], [], []>} : vector<8x3072xbf16>, vector<3072x256xbf16>, vector<8x256xf32> -> vector<8x256xf32>
    %c0_3 = arith.constant 0 : index
    %c0_4 = arith.constant 0 : index
    %4 = vector.load %arg3[%c0_3, %c0_4] : memref<1x256xf32, #tpu.memory_space<vmem>>, vector<1x256xf32>
    %5 = vector.broadcast %4 : vector<1x256xf32> to vector<8x256xf32>
    %6 = arith.addf %3, %5 : vector<8x256xf32>
    %cst_5 = arith.constant 0.000000e+00 : f32
    %7 = vector.broadcast %cst_5 : f32 to vector<8x256xf32>
    %8 = arith.maximumf %6, %7 : vector<8x256xf32>
    %9 = arith.truncf %8 : vector<8x256xf32> to vector<8x256xbf16>
    %c0_6 = arith.constant 0 : index
    %c0_7 = arith.constant 0 : index
    %10 = vector.load %arg4[%c0_6, %c0_7] : memref<256x256xbf16, #tpu.memory_space<vmem>>, vector<256x256xbf16>
    %cst_8 = arith.constant dense<0.000000e+00> : vector<8x256xf32>
    %11 = tpu.matmul %9, %10, %cst_8 {dimension_numbers = #tpu.dot_dimension_numbers<[1], [0], [0], [1], [0, 0, 1, 1], [], []>} : vector<8x256xbf16>, vector<256x256xbf16>, vector<8x256xf32> -> vector<8x256xf32>
    %c0_9 = arith.constant 0 : index
    %c0_10 = arith.constant 0 : index
    %12 = vector.load %arg5[%c0_9, %c0_10] : memref<1x256xf32, #tpu.memory_space<vmem>>, vector<1x256xf32>
    %13 = vector.broadcast %12 : vector<1x256xf32> to vector<8x256xf32>
    %14 = arith.addf %11, %13 : vector<8x256xf32>
    %cst_11 = arith.constant 0.000000e+00 : f32
    %15 = vector.broadcast %cst_11 : f32 to vector<8x256xf32>
    %16 = arith.maximumf %14, %15 : vector<8x256xf32>
    %17 = arith.truncf %16 : vector<8x256xf32> to vector<8x256xbf16>
    %c0_12 = arith.constant 0 : index
    %c0_13 = arith.constant 0 : index
    %18 = vector.load %arg6[%c0_12, %c0_13] : memref<256x128xbf16, #tpu.memory_space<vmem>>, vector<256x128xbf16>
    %cst_14 = arith.constant dense<0.000000e+00> : vector<8x128xf32>
    %19 = tpu.matmul %17, %18, %cst_14 {dimension_numbers = #tpu.dot_dimension_numbers<[1], [0], [0], [1], [0, 0, 1, 1], [], []>} : vector<8x256xbf16>, vector<256x128xbf16>, vector<8x128xf32> -> vector<8x128xf32>
    %c0_15 = arith.constant 0 : index
    %c0_16 = arith.constant 0 : index
    %20 = vector.load %arg7[%c0_15, %c0_16] : memref<1x128xf32, #tpu.memory_space<vmem>>, vector<1x128xf32>
    %21 = vector.broadcast %20 : vector<1x128xf32> to vector<8x128xf32>
    %22 = arith.addf %19, %21 : vector<8x128xf32>
    %c0_17 = arith.constant 0 : index
    %c0_18 = arith.constant 0 : index
    %23 = vector.load %arg8[%c0_17, %c0_18] : memref<8x128xf32, #tpu.memory_space<vmem>>, vector<8x128xf32>
    tpu.vector_store %arg8[%c0_17, %c0_18], %22 {strides = array<i32>} : memref<8x128xf32, #tpu.memory_space<vmem>>, vector<8x128xf32>,
    return
  }
  func.func @transform_0(%arg0: i32) -> (i32, i32) {
    %c0_i32 = arith.constant 0 : i32
    %c0_i32_0 = arith.constant 0 : i32
    return %arg0, %c0_i32 : i32, i32
  }
  func.func @transform_1(%arg0: i32) -> (i32, i32) {
    %c0_i32 = arith.constant 0 : i32
    %c0_i32_0 = arith.constant 0 : i32
    %c0_i32_1 = arith.constant 0 : i32
    return %c0_i32, %c0_i32_0 : i32, i32
  }
  func.func @transform_2(%arg0: i32) -> (i32, i32) {
    %c0_i32 = arith.constant 0 : i32
    %c0_i32_0 = arith.constant 0 : i32
    %c0_i32_1 = arith.constant 0 : i32
    return %c0_i32, %c0_i32_0 : i32, i32
  }
  func.func @transform_3(%arg0: i32) -> (i32, i32) {
    %c0_i32 = arith.constant 0 : i32
    %c0_i32_0 = arith.constant 0 : i32
    %c0_i32_1 = arith.constant 0 : i32
    return %c0_i32, %c0_i32_0 : i32, i32
  }
  func.func @transform_4(%arg0: i32) -> (i32, i32) {
    %c0_i32 = arith.constant 0 : i32
    %c0_i32_0 = arith.constant 0 : i32
    %c0_i32_1 = arith.constant 0 : i32
    return %c0_i32, %c0_i32_0 : i32, i32
  }
  func.func @transform_5(%arg0: i32) -> (i32, i32) {
    %c0_i32 = arith.constant 0 : i32
    %c0_i32_0 = arith.constant 0 : i32
    %c0_i32_1 = arith.constant 0 : i32
    return %c0_i32, %c0_i32_0 : i32, i32
  }
  func.func @transform_6(%arg0: i32) -> (i32, i32) {
    %c0_i32 = arith.constant 0 : i32
    %c0_i32_0 = arith.constant 0 : i32
    %c0_i32_1 = arith.constant 0 : i32
    return %c0_i32, %c0_i32_0 : i32, i32
  }
  func.func @transform_7(%arg0: i32) -> (i32, i32) {
    %c0_i32 = arith.constant 0 : i32
    %c0_i32_0 = arith.constant 0 : i32
    return %arg0, %c0_i32 : i32, i32
  }
}

</mosaic_0001>

<bundles_post_ra>
// kernel: fcnet_forward.1
= control target key start
LH: loop header
LB: loop body
LE: loop exit
PB: predicated region body
PF: predicated region fallthrough
CT: control target
= control target key end

     0   :  { %12 = vsyncpa [#allocation3], 0  ;;  %s6161_s0 = inlined_call_operand.vmem [shape: f32[8,3072], index: 0, kind: input, shape index: {}]   ;;  %s6162_s1 = inlined_call_operand.hbm [shape: bf16[3072,256], index: 1, kind: input, shape index: {}]   ;;  %s6163_s2 = inlined_call_operand.hbm [shape: f32[1,256], index: 2, kind: input, shape index: {}]   ;;  %s6164_s3 = inlined_call_operand.hbm [shape: bf16[256,256], index: 3, kind: input, shape index: {}]   ;;  %s6165_s4 = inlined_call_operand.hbm [shape: f32[1,256], index: 4, kind: input, shape index: {}]   ;;  %s6166_s5 = inlined_call_operand.hbm [shape: bf16[256,128], index: 5, kind: input, shape index: {}]   ;;  %s6167_s6 = inlined_call_operand.hbm [shape: f32[1,128], index: 6, kind: input, shape index: {}]   ;;  %s6168_s7 = inlined_call_operand.hbm [shape: f32[8,128], index: 7, kind: output, shape index: {}]  }
   0x1   :  { %13 = vsyncpa [#allocation6], 0 }
   0x2   :  { %14 = vsyncpa [#allocation9], 0 }
   0x3   :  { %15 = vsyncpa [#allocation12], 0  ;;  %s37_s26 = sshll.u32 %s6163_s2, 4  ;;  %s38_s26 = int_to_ptr.hbm [resolvable:$true] %s37_s26 }
   0x4   :  { %16 = vsyncpa [#allocation4], 0  ;;  %s5885_s27 = smov [#allocation5]   ;;  %s61_s8 = sshll.u32 %s6165_s4, 4  ;;  %s62_s8 = int_to_ptr.hbm [resolvable:$true] %s61_s8 }
   0x5   :  { %s39_s28 = sshll.u32 %s5885_s27, 4  ;;  %s5886_s9 = smov [#allocation8]   ;;  %s40_s28 = int_to_ptr.vmem [resolvable:$true] %s39_s28 }
   0x6   :  { %42 = dma.hbm_to_vmem [thread:$0]  %s38_s26, 32, %s40_s28, [#allocation6]  }
   0x7   :  { %s63_s10 = sshll.u32 %s5886_s9, 4  ;;  %s23_s13 = sshll.u32 %s6162_s1, 4  ;;  %s64_s10 = int_to_ptr.vmem [resolvable:$true] %s63_s10  ;;  %s24_s13 = int_to_ptr.hbm [resolvable:$true] %s23_s13 }
   0x8   :  { %66 = dma.hbm_to_vmem [thread:$0]  %s62_s8, 32, %s64_s10, [#allocation9]  }
   0x9   :  { %s5887_s2 = smov [#allocation2]   ;;  %s47_s17 = sshll.u32 %s6164_s3, 4  ;;  %s48_s17 = int_to_ptr.hbm [resolvable:$true] %s47_s17 }
   0xa   :  { %s25_s14 = sshll.u32 %s5887_s2, 4  ;;  %s5888_s18 = smov 128   ;;  %s26_s14 = int_to_ptr.vmem [resolvable:$true] %s25_s14 }
   0xb   :  { %s5889_s4 = smov 8   ;;  %s5890_s19 = smov [#allocation7]  }
   0xc   :  { %31 = dma.hbm_to_vmem [thread:$0]  %s24_s13, 49152, %s26_s14, [#allocation3], %s5888_s18, %s5888_s18, %s5889_s4  }
   0xd   :  { %s49_s20 = sshll.u32 %s5890_s19, 4  ;;  %s71_s1 = sshll.u32 %s6166_s5, 4  ;;  %s50_s20 = int_to_ptr.vmem [resolvable:$true] %s49_s20  ;;  %s72_s1 = int_to_ptr.hbm [resolvable:$true] %s71_s1 }
   0xe   :  { %55 = dma.hbm_to_vmem [thread:$0]  %s48_s17, 4096, %s50_s20, [#allocation6], %s5888_s18, %s5888_s18, %s5889_s4  }
   0xf   :  { %s5891_s23 = smov [#allocation10]   ;;  %s85_s3 = sshll.u32 %s6167_s6, 4  ;;  %s86_s3 = int_to_ptr.hbm [resolvable:$true] %s85_s3 }
  0x10   :  { %s73_s24 = sshll.u32 %s5891_s23, 4  ;;  %s5892_s27 = smov 64   ;;  %s74_s24 = int_to_ptr.vmem [resolvable:$true] %s73_s24 }
  0x11   :  { %s5893_s28 = smov 4   ;;  %s5894_s29 = smov [#allocation11]  }
  0x12   :  { %79 = dma.hbm_to_vmem [thread:$0]  %s72_s1, 2048, %s74_s24, [#allocation9], %s5892_s27, %s5892_s27, %s5893_s28  }
  0x13   :  { %s87_s30 = sshll.u32 %s5894_s29, 4  ;;  %s88_s30 = int_to_ptr.vmem [resolvable:$true] %s87_s30 }
  0x14   :  { %90 = dma.hbm_to_vmem [thread:$0]  %s86_s3, 16, %s88_s30, [#allocation12]  }
  0x15   :  { %5875 = dma.done.wait [#allocation3], 49152  }
  0x16   :  { %5876 = vsyncadd [#allocation3], 4294918144 }
  0x17   :  { %5877 = dma.done.wait [#allocation6], 4128  }
  0x18   :  { %5878 = vsyncadd [#allocation6], 4294963168 }
  0x19   :  { %5879 = dma.done.wait [#allocation9], 2080  }
  0x1a   :  { %5880 = vsyncadd [#allocation9], 4294965216 }
  0x1b   :  { %5881 = dma.done.wait [#allocation12], 16  }
  0x1c   :  { %5882 = vsyncadd [#allocation12], 4294967280  ;;  %v3592_v0 = vld [vmem:[#allocation2 + $0x70] sm:$0xf]  ;;  %v5277_v1 = vld [vmem:[#allocation2 + $0x74] sm:$0xf0] }
  0x1d   :  { %v3656_v2 = vld [vmem:[#allocation2 + $0xf0] sm:$0xf]  ;;  %v3593_v3 = vor.u32 %v5277_v1, %v3592_v0  ;;  %v5293_v4 = vld [vmem:[#allocation2 + $0xf4] sm:$0xf0]  ;;  %v3584_v11 = vld [vmem:[#allocation2 + $0x60] sm:$0xf] }
  0x1e   :  { %v3720_v5 = vld [vmem:[#allocation2 + $0x170] sm:$0xf]  ;;  %v5309_v6 = vld [vmem:[#allocation2 + $0x174] sm:$0xf0]  ;;  %v3657_v7 = vor.u32 %v5293_v4, %v3656_v2  ;;  %v5275_v13 = vld [vmem:[#allocation2 + $0x64] sm:$0xf0] }
  0x1f   :  { %v3721_v8 = vor.u32 %v5309_v6, %v3720_v5  ;;  %v3784_v9 = vld [vmem:[#allocation2 + $0x1f0] sm:$0xf]  ;;  %v5325_v10 = vld [vmem:[#allocation2 + $0x1f4] sm:$0xf0]  ;;  %2473 = vmatpush.bf16.msra.mxu0 %v3593_v3  ;;  %v3648_v14 = vld [vmem:[#allocation2 + $0xe0] sm:$0xf]  ;;  %v3585_v16 = vor.u32 %v5275_v13, %v3584_v11 }
  0x20   :  { %v3785_v12 = vor.u32 %v5325_v10, %v3784_v9  ;;  %v5291_v15 = vld [vmem:[#allocation2 + $0xe4] sm:$0xf0]  ;;  %2486 = vmatpush.bf16.msra.mxu1 %v3657_v7  ;;  %v3712_v18 = vld [vmem:[#allocation2 + $0x160] sm:$0xf]  ;;  %v3576_v23 = vld [vmem:[#allocation2 + $0x50] sm:$0xf] }
  0x21   :  { %2499 = vmatpush.bf16.msra.mxu2 %v3721_v8  ;;  %v3649_v17 = vor.u32 %v5291_v15, %v3648_v14  ;;  %v5307_v19 = vld [vmem:[#allocation2 + $0x164] sm:$0xf0]  ;;  %v3776_v20 = vld [vmem:[#allocation2 + $0x1e0] sm:$0xf]  ;;  %v5273_v24 = vld [vmem:[#allocation2 + $0x54] sm:$0xf0] }
  0x22   :  { %2512 = vmatpush.bf16.msra.mxu3 %v3785_v12  ;;  %v3713_v21 = vor.u32 %v5307_v19, %v3712_v18  ;;  %v5323_v22 = vld [vmem:[#allocation2 + $0x1e4] sm:$0xf0]  ;;  %v3640_v26 = vld [vmem:[#allocation2 + $0xd0] sm:$0xf]  ;;  %v5289_v27 = vld [vmem:[#allocation2 + $0xd4] sm:$0xf0]  ;;  %v3577_v29 = vor.u32 %v5273_v24, %v3576_v23 }
  0x23   :  { %v3777_v25 = vor.u32 %v5323_v22, %v3776_v20  ;;  %v3704_v28 = vld [vmem:[#allocation2 + $0x150] sm:$0xf]  ;;  %2474 = vmatpush.bf16.msra.mxu0 %v3585_v16  ;;  %v5305_v30 = vld [vmem:[#allocation2 + $0x154] sm:$0xf0]  ;;  %v3641_v33 = vor.u32 %v5289_v27, %v3640_v26  ;;  %v3568_v35 = vld [vmem:[#allocation2 + $0x40] sm:$0xf] }
  0x24   :  { %v3768_v31 = vld [vmem:[#allocation2 + $0x1d0] sm:$0xf]  ;;  %v5321_v32 = vld [vmem:[#allocation2 + $0x1d4] sm:$0xf0]  ;;  %2487 = vmatpush.bf16.msra.mxu1 %v3649_v17  ;;  %v3705_v34 = vor.u32 %v5305_v30, %v3704_v28  ;;  %v5271_v36 = vld [vmem:[#allocation2 + $0x44] sm:$0xf0] }
  0x25   :  { %2500 = vmatpush.bf16.msra.mxu2 %v3713_v21  ;;  %v3632_v37 = vld [vmem:[#allocation2 + $0xc0] sm:$0xf]  ;;  %v3769_v38 = vor.u32 %v5321_v32, %v3768_v31  ;;  %v5287_v39 = vld [vmem:[#allocation2 + $0xc4] sm:$0xf0]  ;;  %v3569_v44 = vor.u32 %v5271_v36, %v3568_v35  ;;  %v3560_v47 = vld [vmem:[#allocation2 + $0x30] sm:$0xf] }
  0x26   :  { %2513 = vmatpush.bf16.msra.mxu3 %v3777_v25  ;;  %v3696_v40 = vld [vmem:[#allocation2 + $0x140] sm:$0xf]  ;;  %v5303_v41 = vld [vmem:[#allocation2 + $0x144] sm:$0xf0]  ;;  %v3633_v45 = vor.u32 %v5287_v39, %v3632_v37  ;;  %v5269_v48 = vld [vmem:[#allocation2 + $0x34] sm:$0xf0] }
  0x27   :  { %v3760_v42 = vld [vmem:[#allocation2 + $0x1c0] sm:$0xf]  ;;  %v5319_v43 = vld [vmem:[#allocation2 + $0x1c4] sm:$0xf0]  ;;  %2475 = vmatpush.bf16.msra.mxu0 %v3577_v29  ;;  %v3697_v46 = vor.u32 %v5303_v41, %v3696_v40  ;;  %v3624_v49 = vld [vmem:[#allocation2 + $0xb0] sm:$0xf]  ;;  %v3561_v56 = vor.u32 %v5269_v48, %v3560_v47 }
  0x28   :  { %2488 = vmatpush.bf16.msra.mxu1 %v3641_v33  ;;  %v3761_v50 = vor.u32 %v5319_v43, %v3760_v42  ;;  %v5285_v51 = vld [vmem:[#allocation2 + $0xb4] sm:$0xf0]  ;;  %v3688_v52 = vld [vmem:[#allocation2 + $0x130] sm:$0xf]  ;;  %v3552_v59 = vld [vmem:[#allocation2 + $0x20] sm:$0xf] }
  0x29   :  { %2501 = vmatpush.bf16.msra.mxu2 %v3705_v34  ;;  %v5301_v53 = vld [vmem:[#allocation2 + $0x134] sm:$0xf0]  ;;  %v3752_v54 = vld [vmem:[#allocation2 + $0x1b0] sm:$0xf]  ;;  %v3625_v57 = vor.u32 %v5285_v51, %v3624_v49  ;;  %v5267_v60 = vld [vmem:[#allocation2 + $0x24] sm:$0xf0] }
  0x2a   :  { %2514 = vmatpush.bf16.msra.mxu3 %v3769_v38  ;;  %v5317_v55 = vld [vmem:[#allocation2 + $0x1b4] sm:$0xf0]  ;;  %v3689_v58 = vor.u32 %v5301_v53, %v3688_v52  ;;  %v3616_v61 = vld [vmem:[#allocation2 + $0xa0] sm:$0xf]  ;;  %v5283_v63 = vld [vmem:[#allocation2 + $0xa4] sm:$0xf0]  ;;  %v3553_v4 = vor.u32 %v5267_v60, %v3552_v59 }
  0x2b   :  { %2476 = vmatpush.bf16.msra.mxu0 %v3569_v44  ;;  %v3753_v62 = vor.u32 %v5317_v55, %v3752_v54  ;;  %v3680_v0 = vld [vmem:[#allocation2 + $0x120] sm:$0xf]  ;;  %v5299_v1 = vld [vmem:[#allocation2 + $0x124] sm:$0xf0]  ;;  %v3617_v5 = vor.u32 %v5283_v63, %v3616_v61  ;;  %v3544_v7 = vld [vmem:[#allocation2 + $0x10] sm:$0xf] }
  0x2c   :  { %2489 = vmatpush.bf16.msra.mxu1 %v3633_v45  ;;  %v3744_v2 = vld [vmem:[#allocation2 + $0x1a0] sm:$0xf]  ;;  %v5315_v3 = vld [vmem:[#allocation2 + $0x1a4] sm:$0xf0]  ;;  %v3681_v6 = vor.u32 %v5299_v1, %v3680_v0  ;;  %v5265_v8 = vld [vmem:[#allocation2 + $0x14] sm:$0xf0] }
  0x2d   :  { %2502 = vmatpush.bf16.msra.mxu2 %v3697_v46  ;;  %v3608_v9 = vld [vmem:[#allocation2 + $0x90] sm:$0xf]  ;;  %v3745_v10 = vor.u32 %v5315_v3, %v3744_v2  ;;  %v5281_v11 = vld [vmem:[#allocation2 + $0x94] sm:$0xf0]  ;;  %v3545_v16 = vor.u32 %v5265_v8, %v3544_v7  ;;  %v3536_v17 = vld [vmem:[#allocation2] sm:$0xf] }
  0x2e   :  { %2515 = vmatpush.bf16.msra.mxu3 %v3761_v50  ;;  %v3672_v12 = vld [vmem:[#allocation2 + $0x110] sm:$0xf]  ;;  %v5297_v13 = vld [vmem:[#allocation2 + $0x114] sm:$0xf0]  ;;  %v5263_v18 = vld [vmem:[#allocation2 + $0x4] sm:$0xf0]  ;;  %v3609_v19 = vor.u32 %v5281_v11, %v3608_v9 }
  0x2f   :  { %2477 = vmatpush.bf16.msra.mxu0 %v3561_v56  ;;  %v3736_v14 = vld [vmem:[#allocation2 + $0x190] sm:$0xf]  ;;  %v5313_v15 = vld [vmem:[#allocation2 + $0x194] sm:$0xf0]  ;;  %v3673_v20 = vor.u32 %v5297_v13, %v3672_v12  ;;  %v3600_v21 = vld [vmem:[#allocation2 + $0x80] sm:$0xf]  ;;  %v3537_v31 = vor.u32 %v5263_v18, %v3536_v17 }
  0x30   :  { %2490 = vmatpush.bf16.msra.mxu1 %v3625_v57  ;;  %v5279_v22 = vld [vmem:[#allocation2 + $0x84] sm:$0xf0]  ;;  %v3664_v23 = vld [vmem:[#allocation2 + $0x100] sm:$0xf]  ;;  %v3737_v24 = vor.u32 %v5313_v15, %v3736_v14  ;;  %v3848_v28 = vld [vmem:[#allocation2 + $0x270] sm:$0xf] }
  0x31   :  { %2503 = vmatpush.bf16.msra.mxu2 %v3689_v58  ;;  %v5295_v25 = vld [vmem:[#allocation2 + $0x104] sm:$0xf0]  ;;  %v3728_v26 = vld [vmem:[#allocation2 + $0x180] sm:$0xf]  ;;  %v5341_v29 = vld [vmem:[#allocation2 + $0x274] sm:$0xf0]  ;;  %v3601_v35 = vor.u32 %v5279_v22, %v3600_v21 }
  0x32   :  { %2516 = vmatpush.bf16.msra.mxu3 %v3753_v62  ;;  %v5311_v27 = vld [vmem:[#allocation2 + $0x184] sm:$0xf0]  ;;  %v3912_v30 = vld [vmem:[#allocation2 + $0x2f0] sm:$0xf]  ;;  %v5357_v32 = vld [vmem:[#allocation2 + $0x2f4] sm:$0xf0]  ;;  %v3665_v36 = vor.u32 %v5295_v25, %v3664_v23  ;;  %v3849_v40 = vor.u32 %v5341_v29, %v3848_v28 }
  0x33   :  { %2478 = vmatpush.bf16.msra.mxu0 %v3553_v4  ;;  %v3976_v33 = vld [vmem:[#allocation2 + $0x370] sm:$0xf]  ;;  %v5373_v34 = vld [vmem:[#allocation2 + $0x374] sm:$0xf0]  ;;  %v3729_v39 = vor.u32 %v5311_v27, %v3728_v26  ;;  %v3913_v41 = vor.u32 %v5357_v32, %v3912_v30  ;;  %v3840_v43 = vld [vmem:[#allocation2 + $0x260] sm:$0xf] }
  0x34   :  { %2491 = vmatpush.bf16.msra.mxu1 %v3617_v5  ;;  %v4040_v37 = vld [vmem:[#allocation2 + $0x3f0] sm:$0xf]  ;;  %v5389_v38 = vld [vmem:[#allocation2 + $0x3f4] sm:$0xf0]  ;;  %v3977_v42 = vor.u32 %v5373_v34, %v3976_v33  ;;  %v5339_v44 = vld [vmem:[#allocation2 + $0x264] sm:$0xf0] }
  0x35   :  { %2504 = vmatpush.bf16.msra.mxu2 %v3681_v6  ;;  %v3904_v45 = vld [vmem:[#allocation2 + $0x2e0] sm:$0xf]  ;;  %v4041_v46 = vor.u32 %v5389_v38, %v4040_v37  ;;  %v5355_v47 = vld [vmem:[#allocation2 + $0x2e4] sm:$0xf0]  ;;  %v3841_v52 = vor.u32 %v5339_v44, %v3840_v43  ;;  %v3832_v53 = vld [vmem:[#allocation2 + $0x250] sm:$0xf] }
  0x36   :  { %2517 = vmatpush.bf16.msra.mxu3 %v3745_v10  ;;  %v3968_v48 = vld [vmem:[#allocation2 + $0x360] sm:$0xf]  ;;  %v5371_v49 = vld [vmem:[#allocation2 + $0x364] sm:$0xf0]  ;;  %v3905_v54 = vor.u32 %v5355_v47, %v3904_v45  ;;  %v5337_v56 = vld [vmem:[#allocation2 + $0x254] sm:$0xf0] }
  0x37   :  { %2479 = vmatpush.bf16.msra.mxu0 %v3545_v16  ;;  %v4032_v50 = vld [vmem:[#allocation2 + $0x3e0] sm:$0xf]  ;;  %v5387_v51 = vld [vmem:[#allocation2 + $0x3e4] sm:$0xf0]  ;;  %v3969_v55 = vor.u32 %v5371_v49, %v3968_v48  ;;  %v3896_v57 = vld [vmem:[#allocation2 + $0x2d0] sm:$0xf]  ;;  %v3833_v0 = vor.u32 %v5337_v56, %v3832_v53 }
  0x38   :  { %2492 = vmatpush.bf16.msra.mxu1 %v3609_v19  ;;  %v5353_v58 = vld [vmem:[#allocation2 + $0x2d4] sm:$0xf0]  ;;  %v4033_v59 = vor.u32 %v5387_v51, %v4032_v50  ;;  %v3960_v60 = vld [vmem:[#allocation2 + $0x350] sm:$0xf]  ;;  %v3824_v2 = vld [vmem:[#allocation2 + $0x240] sm:$0xf] }
  0x39   :  { %2505 = vmatpush.bf16.msra.mxu2 %v3673_v20  ;;  %v5369_v61 = vld [vmem:[#allocation2 + $0x354] sm:$0xf0]  ;;  %v4024_v62 = vld [vmem:[#allocation2 + $0x3d0] sm:$0xf]  ;;  %v3897_v1 = vor.u32 %v5353_v58, %v3896_v57  ;;  %v115_v4 = vld [vmem:[%s6161_s0] sm:$0xff]  ;;  %s3521_s25 = sshll.u32 %s6168_s7, 4  ;;  %s3522_s25 = int_to_ptr.hbm [resolvable:$true] %s3521_s25 }
  0x3a   :  { %2518 = vmatpush.bf16.msra.mxu3 %v3737_v24  ;;  %v5385_v63 = vld [vmem:[#allocation2 + $0x3d4] sm:$0xf0]  ;;  %v117_v3 = vld [vmem:[%s6161_s0 + $0x10] sm:$0xff]  ;;  %v3961_v5 = vor.u32 %v5369_v61, %v3960_v60  ;;  %v5335_v6 = vld [vmem:[#allocation2 + $0x244] sm:$0xf0]  ;;  %v5962_v9 = vpack.c.bf16 %v115_v4, %v115_v4 }
  0x3b   :  { %2480 = vmatpush.bf16.msra.mxu0 %v3537_v31  ;;  %v3888_v7 = vld [vmem:[#allocation2 + $0x2c0] sm:$0xf]  ;;  %v5960_v8 = vpack.c.bf16 %v117_v3, %v117_v3  ;;  %v118_v10 = vld [vmem:[%s6161_s0 + $0x18] sm:$0xff]  ;;  %v4025_v11 = vor.u32 %v5385_v63, %v4024_v62  ;;  %v5351_v12 = vld [vmem:[#allocation2 + $0x2c4] sm:$0xf0]  ;;  %v3825_v18 = vor.u32 %v5335_v6, %v3824_v2 }
  0x3c   :  { %2493 = vmatpush.bf16.msra.mxu1 %v3601_v35  ;;  %v3952_v13 = vld [vmem:[#allocation2 + $0x340] sm:$0xf]  ;;  %v5367_v14 = vld [vmem:[#allocation2 + $0x344] sm:$0xf0]  ;;  %v5967_v15 = vpack.c.bf16 %v118_v10, %v118_v10  ;;  %v3889_v20 = vor.u32 %v5351_v12, %v3888_v7  ;;  %v3816_v22 = vld [vmem:[#allocation2 + $0x230] sm:$0xf] }
  0x3d   :  { %2506 = vmatpush.bf16.msra.mxu2 %v3665_v36  ;;  %v4016_v16 = vld [vmem:[#allocation2 + $0x3c0] sm:$0xf]  ;;  %v5383_v17 = vld [vmem:[#allocation2 + $0x3c4] sm:$0xf0]  ;;  %v3953_v21 = vor.u32 %v5367_v14, %v3952_v13  ;;  %v5333_v23 = vld [vmem:[#allocation2 + $0x234] sm:$0xf0] }
  0x3e   :  { %2519 = vmatpush.bf16.msra.mxu3 %v3729_v39  ;;  %2481 = vmatmul.bf16.vlgmr.msra.gmra.mxu0 %v5962_v9  ;;  %v116_v19 = vld [vmem:[%s6161_s0 + $0x8] sm:$0xff]  ;;  %v3880_v24 = vld [vmem:[#allocation2 + $0x2b0] sm:$0xf]  ;;  %v4017_v26 = vor.u32 %v5383_v17, %v4016_v16  ;;  %v5349_v27 = vld [vmem:[#allocation2 + $0x2b4] sm:$0xf0]  ;;  %v3817_v32 = vor.u32 %v5333_v23, %v3816_v22 }
  0x3f   :  { %2525 = vmatpush.bf16.msrb.mxu0 %v3849_v40  ;;  %v5975_v25 = vpack.c.bf16 %v116_v19, %v116_v19  ;;  %v3944_v28 = vld [vmem:[#allocation2 + $0x330] sm:$0xf]  ;;  %v5365_v29 = vld [vmem:[#allocation2 + $0x334] sm:$0xf0]  ;;  %v3881_v33 = vor.u32 %v5349_v27, %v3880_v24  ;;  %v3808_v35 = vld [vmem:[#allocation2 + $0x220] sm:$0xf] }
  0x40   :  { %2538 = vmatpush.bf16.msrb.mxu1 %v3913_v41  ;;  %2507 = vmatmul.bf16.vlgmr.msra.gmra.mxu2 %v5960_v8  ;;  %v4008_v30 = vld [vmem:[#allocation2 + $0x3b0] sm:$0xf]  ;;  %v5381_v31 = vld [vmem:[#allocation2 + $0x3b4] sm:$0xf0]  ;;  %v3945_v34 = vor.u32 %v5365_v29, %v3944_v28  ;;  %v5331_v36 = vld [vmem:[#allocation2 + $0x224] sm:$0xf0] }
  0x41   :  { %2551 = vmatpush.bf16.msrb.mxu2 %v3977_v42  ;;  %2520 = vmatmul.bf16.vlgmr.msra.gmra.mxu3 %v5967_v15  ;;  %v3872_v37 = vld [vmem:[#allocation2 + $0x2a0] sm:$0xf]  ;;  %v4009_v38 = vor.u32 %v5381_v31, %v4008_v30  ;;  %v5347_v39 = vld [vmem:[#allocation2 + $0x2a4] sm:$0xf0]  ;;  %v3809_v44 = vor.u32 %v5331_v36, %v3808_v35  ;;  %v3800_v47 = vld [vmem:[#allocation2 + $0x210] sm:$0xf] }
  0x42   :  { %2564 = vmatpush.bf16.msrb.mxu3 %v4041_v46  ;;  %2494 = vmatmul.bf16.vlgmr.msra.gmra.mxu1 %v5975_v25  ;;  %v3936_v40 = vld [vmem:[#allocation2 + $0x320] sm:$0xf]  ;;  %v5363_v41 = vld [vmem:[#allocation2 + $0x324] sm:$0xf0]  ;;  %v3873_v45 = vor.u32 %v5347_v39, %v3872_v37  ;;  %v5329_v48 = vld [vmem:[#allocation2 + $0x214] sm:$0xf0] }
  0x43   :  { %2526 = vmatpush.bf16.msrb.mxu0 %v3841_v52  ;;  %v4000_v42 = vld [vmem:[#allocation2 + $0x3a0] sm:$0xf]  ;;  %v5379_v43 = vld [vmem:[#allocation2 + $0x3a4] sm:$0xf0]  ;;  %v3937_v46 = vor.u32 %v5363_v41, %v3936_v40  ;;  %v3864_v49 = vld [vmem:[#allocation2 + $0x290] sm:$0xf]  ;;  %v3801_v56 = vor.u32 %v5329_v48, %v3800_v47 }
  0x44   :  { %2539 = vmatpush.bf16.msrb.mxu1 %v3905_v54  ;;  %v4001_v50 = vor.u32 %v5379_v43, %v4000_v42  ;;  %v5345_v51 = vld [vmem:[#allocation2 + $0x294] sm:$0xf0]  ;;  %v3928_v52 = vld [vmem:[#allocation2 + $0x310] sm:$0xf]  ;;  %v3792_v57 = vld [vmem:[#allocation2 + $0x200] sm:$0xf] }
  0x45   :  { %2552 = vmatpush.bf16.msrb.mxu2 %v3969_v55  ;;  %v5361_v53 = vld [vmem:[#allocation2 + $0x314] sm:$0xf0]  ;;  %v3992_v54 = vld [vmem:[#allocation2 + $0x390] sm:$0xf]  ;;  %v5327_v58 = vld [vmem:[#allocation2 + $0x204] sm:$0xf0] }
  0x46   :  { %2565 = vmatpush.bf16.msrb.mxu3 %v4033_v59  ;;  %v5377_v55 = vld [vmem:[#allocation2 + $0x394] sm:$0xf0]  ;;  %v3865_v59 = vor.u32 %v5345_v51, %v3864_v49  ;;  %v3929_v60 = vor.u32 %v5361_v53, %v3928_v52  ;;  %v3856_v61 = vld [vmem:[#allocation2 + $0x280] sm:$0xf]  ;;  %v5343_v62 = vld [vmem:[#allocation2 + $0x284] sm:$0xf0]  ;;  %v3793_v7 = vor.u32 %v5327_v58, %v3792_v57 }
  0x47   :  { %2527 = vmatpush.bf16.msrb.mxu0 %v3833_v0  ;;  %v3920_v63 = vld [vmem:[#allocation2 + $0x300] sm:$0xf]  ;;  %v3993_v0 = vor.u32 %v5377_v55, %v3992_v54  ;;  %v5375_v3 = vld [vmem:[#allocation2 + $0x384] sm:$0xf0]  ;;  %v4104_v4 = vld [vmem:[#allocation2 + $0x470] sm:$0xf]  ;;  %v3857_v13 = vor.u32 %v5343_v62, %v3856_v61 }
  0x48   :  { %2540 = vmatpush.bf16.msrb.mxu1 %v3897_v1  ;;  %v5359_v1 = vld [vmem:[#allocation2 + $0x304] sm:$0xf0]  ;;  %v3984_v2 = vld [vmem:[#allocation2 + $0x380] sm:$0xf]  ;;  %v4168_v6 = vld [vmem:[#allocation2 + $0x4f0] sm:$0xf] }
  0x49   :  { %2553 = vmatpush.bf16.msrb.mxu2 %v3961_v5  ;;  %v5405_v5 = vld [vmem:[#allocation2 + $0x474] sm:$0xf0]  ;;  %v3921_v14 = vor.u32 %v5359_v1, %v3920_v63  ;;  %v4296_v16 = vld [vmem:[#allocation2 + $0x5f0] sm:$0xf]  ;;  %v3985_v19 = vor.u32 %v5375_v3, %v3984_v2  ;;  %v119_v22 = vld [vmem:[%s6161_s0 + $0x20] sm:$0xff] }
  0x4a   :  { %2566 = vmatpush.bf16.msrb.mxu3 %v4025_v11  ;;  %v5421_v10 = vld [vmem:[#allocation2 + $0x4f4] sm:$0xf0]  ;;  %v4232_v11 = vld [vmem:[#allocation2 + $0x570] sm:$0xf]  ;;  %v5403_v27 = vld [vmem:[#allocation2 + $0x464] sm:$0xf0]  ;;  %v5992_v37 = vpack.c.bf16 %v119_v22, %v119_v22 }
  0x4b   :  { %2528 = vmatpush.bf16.msrb.mxu0 %v3825_v18  ;;  %v5437_v12 = vld [vmem:[#allocation2 + $0x574] sm:$0xf0]  ;;  %v121_v18 = vld [vmem:[%s6161_s0 + $0x30] sm:$0xff]  ;;  %v4169_v24 = vor.u32 %v5421_v10, %v4168_v6  ;;  %v4160_v28 = vld [vmem:[#allocation2 + $0x4e0] sm:$0xf] }
  0x4c   :  { %2541 = vmatpush.bf16.msrb.mxu1 %v3889_v20  ;;  %v5453_v17 = vld [vmem:[#allocation2 + $0x5f4] sm:$0xf0]  ;;  %v4105_v20 = vor.u32 %v5405_v5, %v4104_v4  ;;  %v120_v29 = vld [vmem:[%s6161_s0 + $0x28] sm:$0xff]  ;;  %v4288_v35 = vld [vmem:[#allocation2 + $0x5e0] sm:$0xf] }
  0x4d   :  { %2554 = vmatpush.bf16.msrb.mxu2 %v3953_v21  ;;  %v4096_v21 = vld [vmem:[#allocation2 + $0x460] sm:$0xf]  ;;  %v122_v23 = vld [vmem:[%s6161_s0 + $0x38] sm:$0xff]  ;;  %v4297_v30 = vor.u32 %v5453_v17, %v4296_v16  ;;  %v5419_v31 = vld [vmem:[#allocation2 + $0x4e4] sm:$0xf0]  ;;  %v5996_v40 = vpack.c.bf16 %v120_v29, %v120_v29 }
  0x4e   :  { %2567 = vmatpush.bf16.msrb.mxu3 %v4017_v26  ;;  %v4233_v26 = vor.u32 %v5437_v12, %v4232_v11  ;;  %v5451_v36 = vld [vmem:[#allocation2 + $0x5e4] sm:$0xf0]  ;;  %v4097_v39 = vor.u32 %v5403_v27, %v4096_v21  ;;  %v4161_v41 = vor.u32 %v5419_v31, %v4160_v28  ;;  %v4088_v43 = vld [vmem:[#allocation2 + $0x450] sm:$0xf]  ;;  %v5417_v47 = vld [vmem:[#allocation2 + $0x4d4] sm:$0xf0] }
  0x4f   :  { %2529 = vmatpush.bf16.msrb.mxu0 %v3817_v32  ;;  %v4224_v32 = vld [vmem:[#allocation2 + $0x560] sm:$0xf]  ;;  %v4216_v48 = vld [vmem:[#allocation2 + $0x550] sm:$0xf]  ;;  %v5433_v49 = vld [vmem:[#allocation2 + $0x554] sm:$0xf0] }
  0x50   :  { %2542 = vmatpush.bf16.msrb.mxu1 %v3881_v33  ;;  %v5435_v33 = vld [vmem:[#allocation2 + $0x564] sm:$0xf0]  ;;  %v5449_v51 = vld [vmem:[#allocation2 + $0x5d4] sm:$0xf0]  ;;  %v4217_v54 = vor.u32 %v5433_v49, %v4216_v48  ;;  %v4080_v55 = vld [vmem:[#allocation2 + $0x440] sm:$0xf] }
  0x51   :  { %2555 = vmatpush.bf16.msrb.mxu2 %v3945_v34  ;;  %v5990_v34 = vpack.c.bf16 %v121_v18, %v121_v18  ;;  %v4225_v42 = vor.u32 %v5435_v33, %v4224_v32  ;;  %v4144_v57 = vld [vmem:[#allocation2 + $0x4c0] sm:$0xf]  ;;  %v5431_v61 = vld [vmem:[#allocation2 + $0x544] sm:$0xf0]  ;;  %v4072_v3 = vld [vmem:[#allocation2 + $0x430] sm:$0xf] }
  0x52   :  { %2568 = vmatpush.bf16.msrb.mxu3 %v4009_v38  ;;  %v5994_v38 = vpack.c.bf16 %v122_v23, %v122_v23  ;;  %v4272_v62 = vld [vmem:[#allocation2 + $0x5c0] sm:$0xf]  ;;  %v5447_v63 = vld [vmem:[#allocation2 + $0x5c4] sm:$0xf0]  ;;  %v5397_v4 = vld [vmem:[#allocation2 + $0x434] sm:$0xf0] }
  0x53   :  { %2530 = vmatpush.bf16.msrb.mxu0 %v3809_v44  ;;  %v5401_v44 = vld [vmem:[#allocation2 + $0x454] sm:$0xf0]  ;;  %v4136_v5 = vld [vmem:[#allocation2 + $0x4b0] sm:$0xf]  ;;  %v4273_v6 = vor.u32 %v5447_v63, %v4272_v62  ;;  %v4064_v18 = vld [vmem:[#allocation2 + $0x420] sm:$0xf] }
  0x54   :  { %2543 = vmatpush.bf16.msrb.mxu1 %v3873_v45  ;;  %v4152_v45 = vld [vmem:[#allocation2 + $0x4d0] sm:$0xf]  ;;  %v4089_v52 = vor.u32 %v5401_v44, %v4088_v43  ;;  %v5429_v11 = vld [vmem:[#allocation2 + $0x534] sm:$0xf0]  ;;  %v5411_v22 = vld [vmem:[#allocation2 + $0x4a4] sm:$0xf0] }
  0x55   :  { %2556 = vmatpush.bf16.msrb.mxu2 %v3937_v46  ;;  %v4289_v46 = vor.u32 %v5451_v36, %v4288_v35  ;;  %v4153_v53 = vor.u32 %v5417_v47, %v4152_v45  ;;  %v4200_v10 = vld [vmem:[#allocation2 + $0x530] sm:$0xf]  ;;  %v4192_v23 = vld [vmem:[#allocation2 + $0x520] sm:$0xf]  ;;  %v5443_v27 = vld [vmem:[#allocation2 + $0x5a4] sm:$0xf0] }
  0x56   :  { %2569 = vmatpush.bf16.msrb.mxu3 %v4001_v50  ;;  %v4280_v50 = vld [vmem:[#allocation2 + $0x5d0] sm:$0xf]  ;;  %v4201_v17 = vor.u32 %v5429_v11, %v4200_v10  ;;  %v5393_v32 = vld [vmem:[#allocation2 + $0x414] sm:$0xf0]  ;;  %v4048_v45 = vld [vmem:[#allocation2 + $0x400] sm:$0xf] }
  0x57   :  { %2531 = vmatpush.bf16.msrb.mxu0 %v3801_v56  ;;  %v5399_v56 = vld [vmem:[#allocation2 + $0x444] sm:$0xf0]  ;;  %v4281_v58 = vor.u32 %v5449_v51, %v4280_v50  ;;  %v4264_v12 = vld [vmem:[#allocation2 + $0x5b0] sm:$0xf]  ;;  %v5409_v36 = vld [vmem:[#allocation2 + $0x494] sm:$0xf0] }
  0x58   :  { %2544 = vmatpush.bf16.msrb.mxu1 %v3865_v59  ;;  %v5415_v59 = vld [vmem:[#allocation2 + $0x4c4] sm:$0xf0]  ;;  %v4056_v31 = vld [vmem:[#allocation2 + $0x410] sm:$0xf]  ;;  %v5441_v43 = vld [vmem:[#allocation2 + $0x594] sm:$0xf0] }
  0x59   :  { %2557 = vmatpush.bf16.msrb.mxu2 %v3929_v60  ;;  %v4208_v60 = vld [vmem:[#allocation2 + $0x540] sm:$0xf]  ;;  %v4145_v1 = vor.u32 %v5415_v59, %v4144_v57  ;;  %v4120_v33 = vld [vmem:[#allocation2 + $0x490] sm:$0xf]  ;;  %v4057_v44 = vor.u32 %v5393_v32, %v4056_v31  ;;  %v5407_v50 = vld [vmem:[#allocation2 + $0x484] sm:$0xf0] }
  0x5a   :  { %2570 = vmatpush.bf16.msrb.mxu3 %v3993_v0  ;;  %v4081_v0 = vor.u32 %v5399_v56, %v4080_v55  ;;  %v4209_v2 = vor.u32 %v5431_v61, %v4208_v60  ;;  %v4112_v47 = vld [vmem:[#allocation2 + $0x480] sm:$0xf]  ;;  %v4121_v48 = vor.u32 %v5409_v36, %v4120_v33  ;;  %v5439_v55 = vld [vmem:[#allocation2 + $0x584] sm:$0xf0]  ;;  %v4360_v56 = vld [vmem:[#allocation2 + $0x670] sm:$0xf] }
  0x5b   :  { %2532 = vmatpush.bf16.msrb.mxu0 %v3793_v7  ;;  %v5413_v7 = vld [vmem:[#allocation2 + $0x4b4] sm:$0xf0]  ;;  %v4176_v51 = vld [vmem:[#allocation2 + $0x500] sm:$0xf]  ;;  %v4488_v61 = vld [vmem:[#allocation2 + $0x770] sm:$0xf]  ;;  %v4113_v63 = vor.u32 %v5407_v50, %v4112_v47 }
  0x5c   :  { %2545 = vmatpush.bf16.msrb.mxu1 %v3857_v13  ;;  %v5445_v13 = vld [vmem:[#allocation2 + $0x5b4] sm:$0xf0]  ;;  %v4137_v16 = vor.u32 %v5413_v7, %v4136_v5  ;;  %v124_v7 = vld [vmem:[%s6161_s0 + $0x48] sm:$0xff]  ;;  %v4344_v31 = vld [vmem:[#allocation2 + $0x650] sm:$0xf] }
  0x5d   :  { %2558 = vmatpush.bf16.msrb.mxu2 %v3921_v14  ;;  %v4073_v14 = vor.u32 %v5397_v4, %v4072_v3  ;;  %v4265_v21 = vor.u32 %v5445_v13, %v4264_v12  ;;  %v5469_v57 = vld [vmem:[#allocation2 + $0x674] sm:$0xf0]  ;;  %v123_v3 = vld [vmem:[%s6161_s0 + $0x40] sm:$0xff]  ;;  %v4408_v33 = vld [vmem:[#allocation2 + $0x6d0] sm:$0xf] }
  0x5e   :  { %2571 = vmatpush.bf16.msrb.mxu3 %v3985_v19  ;;  %2533 = vmatmul.bf16.vlgmr.msrb.gmra.mxu0 %v5992_v37  ;;  %v5395_v19 = vld [vmem:[#allocation2 + $0x424] sm:$0xf0]  ;;  %v5485_v60 = vld [vmem:[#allocation2 + $0x6f4] sm:$0xf0]  ;;  %v4361_v5 = vor.u32 %v5469_v57, %v4360_v56  ;;  %v4352_v13 = vld [vmem:[#allocation2 + $0x660] sm:$0xf] }
  0x5f   :  { %2577 = vmatpush.bf16.msra.mxu0 %v4105_v20  ;;  %2546 = vmatmul.bf16.vlgmr.msrb.gmra.mxu1 %v5996_v40  ;;  %v4128_v20 = vld [vmem:[#allocation2 + $0x4a0] sm:$0xf]  ;;  %v4065_v28 = vor.u32 %v5395_v19, %v4064_v18  ;;  %v5501_v62 = vld [vmem:[#allocation2 + $0x774] sm:$0xf0]  ;;  %v6014_v18 = vpack.c.bf16 %v123_v3, %v123_v3  ;;  %v5483_v19 = vld [vmem:[#allocation2 + $0x6e4] sm:$0xf0] }
  0x60   :  { %2590 = vmatpush.bf16.msra.mxu1 %v4169_v24  ;;  %2559 = vmatmul.bf16.vlgmr.msrb.gmra.mxu2 %v5990_v34  ;;  %v5427_v24 = vld [vmem:[#allocation2 + $0x524] sm:$0xf0]  ;;  %v4129_v29 = vor.u32 %v5411_v22, %v4128_v20  ;;  %v126_v10 = vld [vmem:[%s6161_s0 + $0x58] sm:$0xff]  ;;  %v4489_v12 = vor.u32 %v5501_v62, %v4488_v61  ;;  %v4480_v20 = vld [vmem:[#allocation2 + $0x760] sm:$0xf] }
  0x61   :  { %2603 = vmatpush.bf16.msra.mxu2 %v4233_v26  ;;  %2572 = vmatmul.bf16.vlgmr.msrb.gmra.mxu3 %v5994_v38  ;;  %v4256_v26 = vld [vmem:[#allocation2 + $0x5a0] sm:$0xf]  ;;  %v5465_v32 = vld [vmem:[#allocation2 + $0x654] sm:$0xf0]  ;;  %v4392_v61 = vld [vmem:[#allocation2 + $0x6b0] sm:$0xf] }
  0x62   :  { %2616 = vmatpush.bf16.msra.mxu3 %v4297_v30  ;;  %v4193_v30 = vor.u32 %v5427_v24, %v4192_v23  ;;  %v4257_v35 = vor.u32 %v5443_v27, %v4256_v26  ;;  %v6018_v23 = vpack.c.bf16 %v124_v7, %v124_v7  ;;  %v4544_v24 = vld [vmem:[#allocation2 + $0x7e0] sm:$0xf]  ;;  %v5515_v26 = vld [vmem:[#allocation2 + $0x7e4] sm:$0xf0]  ;;  %v6020_v27 = vpack.c.bf16 %v126_v10, %v126_v10  ;;  %v5481_v36 = vld [vmem:[#allocation2 + $0x6d4] sm:$0xf0] }
  0x63   :  { %2578 = vmatpush.bf16.msra.mxu0 %v4097_v39  ;;  %v4184_v39 = vld [vmem:[#allocation2 + $0x510] sm:$0xf]  ;;  %v4336_v47 = vld [vmem:[#allocation2 + $0x640] sm:$0xf]  ;;  %v5509_v3 = vld [vmem:[#allocation2 + $0x7b4] sm:$0xf0] }
  0x64   :  { %2591 = vmatpush.bf16.msra.mxu1 %v4161_v41  ;;  %v5425_v41 = vld [vmem:[#allocation2 + $0x514] sm:$0xf0]  ;;  %v4320_v7 = vld [vmem:[#allocation2 + $0x620] sm:$0xf]  ;;  %v5459_v10 = vld [vmem:[#allocation2 + $0x624] sm:$0xf0] }
  0x65   :  { %2604 = vmatpush.bf16.msra.mxu2 %v4225_v42  ;;  %v4248_v42 = vld [vmem:[#allocation2 + $0x590] sm:$0xf]  ;;  %v4185_v49 = vor.u32 %v5425_v41, %v4184_v39  ;;  %v5497_v41 = vld [vmem:[#allocation2 + $0x754] sm:$0xf0] }
  0x66   :  { %2617 = vmatpush.bf16.msra.mxu3 %v4289_v46  ;;  %v5391_v46 = vld [vmem:[#allocation2 + $0x404] sm:$0xf0]  ;;  %v4472_v39 = vld [vmem:[#allocation2 + $0x750] sm:$0xf] }
  0x67   :  { %2579 = vmatpush.bf16.msra.mxu0 %v4089_v52  ;;  %v5423_v52 = vld [vmem:[#allocation2 + $0x504] sm:$0xf0]  ;;  %v4049_v59 = vor.u32 %v5391_v46, %v4048_v45  ;;  %v4409_v45 = vor.u32 %v5481_v36, %v4408_v33  ;;  %v4473_v46 = vor.u32 %v5497_v41, %v4472_v39  ;;  %v5489_v33 = vld [vmem:[#allocation2 + $0x714] sm:$0xf0]  ;;  %v4304_v41 = vld [vmem:[#allocation2 + $0x600] sm:$0xf] }
  0x68   :  { %2592 = vmatpush.bf16.msra.mxu1 %v4153_v53  ;;  %v4249_v53 = vor.u32 %v5441_v43, %v4248_v42  ;;  %v4536_v42 = vld [vmem:[#allocation2 + $0x7d0] sm:$0xf]  ;;  %v5513_v43 = vld [vmem:[#allocation2 + $0x7d4] sm:$0xf0] }
  0x69   :  { %2605 = vmatpush.bf16.msra.mxu2 %v4217_v54  ;;  %v4240_v54 = vld [vmem:[#allocation2 + $0x580] sm:$0xf]  ;;  %v4537_v50 = vor.u32 %v5513_v43, %v4536_v42  ;;  %v5505_v36 = vld [vmem:[#allocation2 + $0x794] sm:$0xf0]  ;;  %v5455_v42 = vld [vmem:[#allocation2 + $0x604] sm:$0xf0] }
  0x6a   :  { %2618 = vmatpush.bf16.msra.mxu3 %v4281_v58  ;;  %v4424_v58 = vld [vmem:[#allocation2 + $0x6f0] sm:$0xf]  ;;  %v4241_v4 = vor.u32 %v5439_v55, %v4240_v54  ;;  %v4528_v54 = vld [vmem:[#allocation2 + $0x7c0] sm:$0xf]  ;;  %v5511_v55 = vld [vmem:[#allocation2 + $0x7c4] sm:$0xf0] }
  0x6b   :  { %2580 = vmatpush.bf16.msra.mxu0 %v4081_v0  ;;  %v4177_v0 = vor.u32 %v5423_v52, %v4176_v51  ;;  %v4425_v11 = vor.u32 %v5485_v60, %v4424_v58  ;;  %v5479_v51 = vld [vmem:[#allocation2 + $0x6c4] sm:$0xf0]  ;;  %v4464_v52 = vld [vmem:[#allocation2 + $0x740] sm:$0xf]  ;;  %v5461_v60 = vld [vmem:[#allocation2 + $0x634] sm:$0xf0]  ;;  %v4529_v62 = vor.u32 %v5511_v55, %v4528_v54  ;;  %v4305_v55 = vor.u32 %v5455_v42, %v4304_v41 }
  0x6c   :  { %2593 = vmatpush.bf16.msra.mxu1 %v4145_v1  ;;  %v4552_v1 = vld [vmem:[#allocation2 + $0x7f0] sm:$0xf]  ;;  %v5561_v41 = vld [vmem:[#allocation2 + $0x954] sm:$0xf0] }
  0x6d   :  { %2606 = vmatpush.bf16.msra.mxu2 %v4209_v2  ;;  %v5517_v2 = vld [vmem:[#allocation2 + $0x7f4] sm:$0xf0]  ;;  %v4680_v54 = vld [vmem:[#allocation2 + $0x8f0] sm:$0xf] }
  0x6e   :  { %2619 = vmatpush.bf16.msra.mxu3 %v4273_v6  ;;  %v125_v6 = vld [vmem:[%s6161_s0 + $0x50] sm:$0xff] }
  0x6f   :  { %2581 = vmatpush.bf16.msra.mxu0 %v4073_v14  ;;  %v5467_v14 = vld [vmem:[#allocation2 + $0x664] sm:$0xf0]  ;;  %v6016_v22 = vpack.c.bf16 %v125_v6, %v125_v6  ;;  %v4792_v42 = vld [vmem:[#allocation2 + $0x9d0] sm:$0xf] }
  0x70   :  { %2594 = vmatpush.bf16.msra.mxu1 %v4137_v16  ;;  %v4416_v16 = vld [vmem:[#allocation2 + $0x6e0] sm:$0xf] }
  0x71   :  { %2607 = vmatpush.bf16.msra.mxu2 %v4201_v17  ;;  %v4553_v17 = vor.u32 %v5517_v2, %v4552_v1  ;;  %v5493_v1 = vld [vmem:[#allocation2 + $0x734] sm:$0xf0]  ;;  %v4520_v2 = vld [vmem:[#allocation2 + $0x7b0] sm:$0xf] }
  0x72   :  { %2620 = vmatpush.bf16.msra.mxu3 %v4265_v21  ;;  %v5499_v21 = vld [vmem:[#allocation2 + $0x764] sm:$0xf0] }
  0x73   :  { %2582 = vmatpush.bf16.msra.mxu0 %v4065_v28  ;;  %v4353_v28 = vor.u32 %v5467_v14, %v4352_v13  ;;  %v5475_v13 = vld [vmem:[#allocation2 + $0x6a4] sm:$0xf0]  ;;  %v4448_v14 = vld [vmem:[#allocation2 + $0x720] sm:$0xf] }
  0x74   :  { %2595 = vmatpush.bf16.msra.mxu1 %v4129_v29  ;;  %v4417_v29 = vor.u32 %v5483_v19, %v4416_v16  ;;  %v5491_v16 = vld [vmem:[#allocation2 + $0x724] sm:$0xf0] }
  0x75   :  { %2608 = vmatpush.bf16.msra.mxu2 %v4193_v30  ;;  %v4481_v30 = vor.u32 %v5499_v21, %v4480_v20  ;;  %v5507_v19 = vld [vmem:[#allocation2 + $0x7a4] sm:$0xf0]  ;;  %v4321_v20 = vor.u32 %v5459_v10, %v4320_v7  ;;  %v4608_v7 = vld [vmem:[#allocation2 + $0x860] sm:$0xf] }
  0x76   :  { %2621 = vmatpush.bf16.msra.mxu3 %v4257_v35  ;;  %v4545_v35 = vor.u32 %v5515_v26, %v4544_v24  ;;  %v4449_v24 = vor.u32 %v5491_v16, %v4448_v14  ;;  %v4312_v26 = vld [vmem:[#allocation2 + $0x610] sm:$0xf]  ;;  %v5531_v10 = vld [vmem:[#allocation2 + $0x864] sm:$0xf0]  ;;  %v4736_v16 = vld [vmem:[#allocation2 + $0x960] sm:$0xf] }
  0x77   :  { %2583 = vmatpush.bf16.msra.mxu0 %v4057_v44  ;;  %v4345_v44 = vor.u32 %v5465_v32, %v4344_v31  ;;  %v5473_v31 = vld [vmem:[#allocation2 + $0x694] sm:$0xf0]  ;;  %v4440_v32 = vld [vmem:[#allocation2 + $0x710] sm:$0xf]  ;;  %v5547_v14 = vld [vmem:[#allocation2 + $0x8e4] sm:$0xf0] }
  0x78   :  { %2596 = vmatpush.bf16.msra.mxu1 %v4121_v48  ;;  %v5463_v48 = vld [vmem:[#allocation2 + $0x644] sm:$0xf0] }
  0x79   :  { %2609 = vmatpush.bf16.msra.mxu2 %v4185_v49  ;;  %v4400_v49 = vld [vmem:[#allocation2 + $0x6c0] sm:$0xf]  ;;  %v4337_v56 = vor.u32 %v5463_v48, %v4336_v47 }
  0x7a   :  { %2622 = vmatpush.bf16.msra.mxu3 %v4249_v53  ;;  %v5495_v53 = vld [vmem:[#allocation2 + $0x744] sm:$0xf0]  ;;  %v4401_v57 = vor.u32 %v5479_v51, %v4400_v49  ;;  %v4432_v47 = vld [vmem:[#allocation2 + $0x700] sm:$0xf] }
  0x7b   :  { %2584 = vmatpush.bf16.msra.mxu0 %v4049_v59  ;;  %v4465_v58 = vor.u32 %v5495_v53, %v4464_v52  ;;  %v4328_v59 = vld [vmem:[#allocation2 + $0x630] sm:$0xf]  ;;  %v5487_v49 = vld [vmem:[#allocation2 + $0x704] sm:$0xf0]  ;;  %v5533_v53 = vld [vmem:[#allocation2 + $0x874] sm:$0xf0] }
  0x7c   :  { %2597 = vmatpush.bf16.msra.mxu1 %v4113_v63  ;;  %v5477_v63 = vld [vmem:[#allocation2 + $0x6b4] sm:$0xf0]  ;;  %v5503_v51 = vld [vmem:[#allocation2 + $0x784] sm:$0xf0]  ;;  %v4616_v52 = vld [vmem:[#allocation2 + $0x870] sm:$0xf] }
  0x7d   :  { %2610 = vmatpush.bf16.msra.mxu2 %v4177_v0  ;;  %v4456_v0 = vld [vmem:[#allocation2 + $0x730] sm:$0xf] }
  0x7e   :  { %2623 = vmatpush.bf16.msra.mxu3 %v4241_v4  ;;  %2585 = vmatmul.bf16.vlgmr.msra.gmra.mxu0 %v6014_v18  ;;  %v4329_v4 = vor.u32 %v5461_v60, %v4328_v59  ;;  %v4457_v6 = vor.u32 %v5493_v1, %v4456_v0  ;;  %v4433_v60 = vor.u32 %v5487_v49, %v4432_v47  ;;  %v4592_v47 = vld [vmem:[#allocation2 + $0x840] sm:$0xf] }
  0x7f   :  { %2629 = vmatpush.bf16.msrb.mxu0 %v4361_v5  ;;  %2598 = vmatmul.bf16.vlgmr.msra.gmra.mxu1 %v6018_v23  ;;  %v4393_v5 = vor.u32 %v5477_v63, %v4392_v61  ;;  %v4808_v61 = vld [vmem:[#allocation2 + $0x9f0] sm:$0xf]  ;;  %v127_v63 = vld [vmem:[%s6161_s0 + $0x60] sm:$0xff]  ;;  %v4617_v1 = vor.u32 %v5533_v53, %v4616_v52  ;;  %v5559_v53 = vld [vmem:[#allocation2 + $0x944] sm:$0xf0] }
  0x80   :  { %2642 = vmatpush.bf16.msrb.mxu1 %v4425_v11  ;;  %2611 = vmatmul.bf16.vlgmr.msra.gmra.mxu2 %v6016_v22  ;;  %v4384_v11 = vld [vmem:[#allocation2 + $0x6a0] sm:$0xf] }
  0x81   :  { %2655 = vmatpush.bf16.msrb.mxu2 %v4489_v12  ;;  %2624 = vmatmul.bf16.vlgmr.msra.gmra.mxu3 %v6020_v27  ;;  %v4521_v12 = vor.u32 %v5509_v3, %v4520_v2  ;;  %v4385_v21 = vor.u32 %v5475_v13, %v4384_v11  ;;  %v129_v2 = vld [vmem:[%s6161_s0 + $0x70] sm:$0xff]  ;;  %v128_v3 = vld [vmem:[%s6161_s0 + $0x68] sm:$0xff]  ;;  %v4672_v11 = vld [vmem:[#allocation2 + $0x8e0] sm:$0xf]  ;;  %v6038_v13 = vpack.c.bf16 %v127_v63, %v127_v63 }
  0x82   :  { %2668 = vmatpush.bf16.msrb.mxu3 %v4553_v17  ;;  %v4512_v17 = vld [vmem:[#allocation2 + $0x7a0] sm:$0xf]  ;;  %v5541_v63 = vld [vmem:[#allocation2 + $0x8b4] sm:$0xf0] }
  0x83   :  { %2630 = vmatpush.bf16.msrb.mxu0 %v4353_v28  ;;  %v5457_v28 = vld [vmem:[#allocation2 + $0x614] sm:$0xf0]  ;;  %v4656_v49 = vld [vmem:[#allocation2 + $0x8c0] sm:$0xf] }
  0x84   :  { %2643 = vmatpush.bf16.msrb.mxu1 %v4417_v29  ;;  %v4376_v29 = vld [vmem:[#allocation2 + $0x690] sm:$0xf]  ;;  %v4313_v39 = vor.u32 %v5457_v28, %v4312_v26  ;;  %v4609_v28 = vor.u32 %v5531_v10, %v4608_v7  ;;  %v4720_v52 = vld [vmem:[#allocation2 + $0x940] sm:$0xf]  ;;  %v5523_v10 = vld [vmem:[#allocation2 + $0x824] sm:$0xf0] }
  0x85   :  { %2656 = vmatpush.bf16.msrb.mxu2 %v4481_v30  ;;  %v4513_v30 = vor.u32 %v5507_v19, %v4512_v17  ;;  %v4377_v43 = vor.u32 %v5473_v31, %v4376_v29  ;;  %v5563_v17 = vld [vmem:[#allocation2 + $0x964] sm:$0xf0]  ;;  %v6040_v19 = vpack.c.bf16 %v129_v2, %v129_v2  ;;  %v4673_v29 = vor.u32 %v5547_v14, %v4672_v11  ;;  %v4600_v31 = vld [vmem:[#allocation2 + $0x850] sm:$0xf]  ;;  %v4576_v7 = vld [vmem:[#allocation2 + $0x820] sm:$0xf] }
  0x86   :  { %2669 = vmatpush.bf16.msrb.mxu3 %v4545_v35  ;;  %v4504_v35 = vld [vmem:[#allocation2 + $0x790] sm:$0xf]  ;;  %v4640_v11 = vld [vmem:[#allocation2 + $0x8a0] sm:$0xf]  ;;  %v5539_v14 = vld [vmem:[#allocation2 + $0x8a4] sm:$0xf0] }
  0x87   :  { %2631 = vmatpush.bf16.msrb.mxu0 %v4345_v44  ;;  %v4441_v44 = vor.u32 %v5489_v33, %v4440_v32  ;;  %v4505_v48 = vor.u32 %v5505_v36, %v4504_v35  ;;  %v5529_v32 = vld [vmem:[#allocation2 + $0x854] sm:$0xf0]  ;;  %v4664_v33 = vld [vmem:[#allocation2 + $0x8d0] sm:$0xf] }
  0x88   :  { %2644 = vmatpush.bf16.msrb.mxu1 %v4409_v45  ;;  %v4368_v45 = vld [vmem:[#allocation2 + $0x680] sm:$0xf]  ;;  %v5545_v36 = vld [vmem:[#allocation2 + $0x8d4] sm:$0xf0]  ;;  %v4776_v2 = vld [vmem:[#allocation2 + $0x9b0] sm:$0xf] }
  0x89   :  { %2657 = vmatpush.bf16.msrb.mxu2 %v4473_v46  ;;  %v5471_v46 = vld [vmem:[#allocation2 + $0x684] sm:$0xf0] }
  0x8a   :  { %2670 = vmatpush.bf16.msrb.mxu3 %v4537_v50  ;;  %v4496_v50 = vld [vmem:[#allocation2 + $0x780] sm:$0xf]  ;;  %v4369_v59 = vor.u32 %v5471_v46, %v4368_v45  ;;  %v4665_v45 = vor.u32 %v5545_v36, %v4664_v33  ;;  %v4632_v33 = vld [vmem:[#allocation2 + $0x890] sm:$0xf]  ;;  %v5537_v36 = vld [vmem:[#allocation2 + $0x894] sm:$0xf0] }
  0x8b   :  { %2632 = vmatpush.bf16.msrb.mxu0 %v4337_v56  ;;  %v5549_v56 = vld [vmem:[#allocation2 + $0x8f4] sm:$0xf0]  ;;  %v4497_v0 = vor.u32 %v5503_v51, %v4496_v50  ;;  %v5543_v51 = vld [vmem:[#allocation2 + $0x8c4] sm:$0xf0] }
  0x8c   :  { %2645 = vmatpush.bf16.msrb.mxu1 %v4401_v57  ;;  %v4744_v57 = vld [vmem:[#allocation2 + $0x970] sm:$0xf] }
  0x8d   :  { %2658 = vmatpush.bf16.msrb.mxu2 %v4465_v58  ;;  %v5565_v58 = vld [vmem:[#allocation2 + $0x974] sm:$0xf0] }
  0x8e   :  { %2671 = vmatpush.bf16.msrb.mxu3 %v4529_v62  ;;  %v5581_v62 = vld [vmem:[#allocation2 + $0x9f4] sm:$0xf0] }
  0x8f   :  { %2633 = vmatpush.bf16.msrb.mxu0 %v4329_v4  ;;  %v130_v4 = vld [vmem:[%s6161_s0 + $0x78] sm:$0xff] }
  0x90   :  { %2646 = vmatpush.bf16.msrb.mxu1 %v4393_v5  ;;  %v4681_v5 = vor.u32 %v5549_v56, %v4680_v54  ;;  %v6044_v26 = vpack.c.bf16 %v130_v4, %v130_v4  ;;  %v4784_v54 = vld [vmem:[#allocation2 + $0x9c0] sm:$0xf] }
  0x91   :  { %2659 = vmatpush.bf16.msrb.mxu2 %v4457_v6  ;;  %v4745_v6 = vor.u32 %v5565_v58, %v4744_v57  ;;  %v4657_v57 = vor.u32 %v5543_v51, %v4656_v49  ;;  %v4721_v58 = vor.u32 %v5559_v53, %v4720_v52  ;;  %v4624_v49 = vld [vmem:[#allocation2 + $0x880] sm:$0xf]  ;;  %v5551_v53 = vld [vmem:[#allocation2 + $0x904] sm:$0xf0] }
  0x92   :  { %2672 = vmatpush.bf16.msrb.mxu3 %v4521_v12  ;;  %v4809_v12 = vor.u32 %v5581_v62, %v4808_v61  ;;  %v4648_v61 = vld [vmem:[#allocation2 + $0x8b0] sm:$0xf]  ;;  %v4688_v51 = vld [vmem:[#allocation2 + $0x900] sm:$0xf] }
  0x93   :  { %2634 = vmatpush.bf16.msrb.mxu0 %v4321_v20  ;;  %v6042_v20 = vpack.c.bf16 %v128_v3, %v128_v3  ;;  %v5573_v3 = vld [vmem:[#allocation2 + $0x9b4] sm:$0xf0] }
  0x94   :  { %2647 = vmatpush.bf16.msrb.mxu1 %v4385_v21  ;;  %v4800_v21 = vld [vmem:[#allocation2 + $0x9e0] sm:$0xf] }
  0x95   :  { %2660 = vmatpush.bf16.msrb.mxu2 %v4449_v24  ;;  %v5579_v24 = vld [vmem:[#allocation2 + $0x9e4] sm:$0xf0] }
  0x96   :  { %2673 = vmatpush.bf16.msrb.mxu3 %v4513_v30  ;;  %v4737_v30 = vor.u32 %v5563_v17, %v4736_v16  ;;  %v4801_v35 = vor.u32 %v5579_v24, %v4800_v21  ;;  %v4704_v16 = vld [vmem:[#allocation2 + $0x920] sm:$0xf]  ;;  %v5555_v17 = vld [vmem:[#allocation2 + $0x924] sm:$0xf0] }
  0x97   :  { %2635 = vmatpush.bf16.msrb.mxu0 %v4313_v39  ;;  %v4728_v39 = vld [vmem:[#allocation2 + $0x950] sm:$0xf]  ;;  %v4768_v21 = vld [vmem:[#allocation2 + $0x9a0] sm:$0xf]  ;;  %v5571_v24 = vld [vmem:[#allocation2 + $0x9a4] sm:$0xf0] }
  0x98   :  { %2648 = vmatpush.bf16.msrb.mxu1 %v4377_v43  ;;  %v5577_v43 = vld [vmem:[#allocation2 + $0x9d4] sm:$0xf0]  ;;  %v4729_v46 = vor.u32 %v5561_v41, %v4728_v39  ;;  %v4696_v39 = vld [vmem:[#allocation2 + $0x910] sm:$0xf] }
  0x99   :  { %2661 = vmatpush.bf16.msrb.mxu2 %v4441_v44  ;;  %v4601_v44 = vor.u32 %v5529_v32, %v4600_v31  ;;  %v4793_v50 = vor.u32 %v5577_v43, %v4792_v42  ;;  %v4568_v31 = vld [vmem:[#allocation2 + $0x810] sm:$0xf]  ;;  %v5521_v32 = vld [vmem:[#allocation2 + $0x814] sm:$0xf0] }
  0x9a   :  { %2674 = vmatpush.bf16.msrb.mxu3 %v4505_v48  ;;  %v5527_v48 = vld [vmem:[#allocation2 + $0x844] sm:$0xf0]  ;;  %v5553_v41 = vld [vmem:[#allocation2 + $0x914] sm:$0xf0]  ;;  %v4760_v42 = vld [vmem:[#allocation2 + $0x990] sm:$0xf] }
  0x9b   :  { %2636 = vmatpush.bf16.msrb.mxu0 %v4305_v55  ;;  %v5575_v55 = vld [vmem:[#allocation2 + $0x9c4] sm:$0xf0]  ;;  %v4593_v56 = vor.u32 %v5527_v48, %v4592_v47  ;;  %v5569_v43 = vld [vmem:[#allocation2 + $0x994] sm:$0xf0]  ;;  %v4633_v47 = vor.u32 %v5537_v36, %v4632_v33  ;;  %v4697_v48 = vor.u32 %v5553_v41, %v4696_v39  ;;  %v5056_v33 = vld [vmem:[#allocation2 + $0xbe0] sm:$0xf] }
  0x9c   :  { %2649 = vmatpush.bf16.msrb.mxu1 %v4369_v59  ;;  %v4584_v59 = vld [vmem:[#allocation2 + $0x830] sm:$0xf]  ;;  %v4785_v62 = vor.u32 %v5575_v55, %v4784_v54  ;;  %v4761_v52 = vor.u32 %v5569_v43, %v4760_v42  ;;  %v4752_v54 = vld [vmem:[#allocation2 + $0x980] sm:$0xf]  ;;  %v5567_v55 = vld [vmem:[#allocation2 + $0x984] sm:$0xf0] }
  0x9d   :  { %2662 = vmatpush.bf16.msrb.mxu2 %v4433_v60  ;;  %v5525_v60 = vld [vmem:[#allocation2 + $0x834] sm:$0xf0]  ;;  %v4856_v43 = vld [vmem:[#allocation2 + $0xa50] sm:$0xf] }
  0x9e   :  { %2675 = vmatpush.bf16.msrb.mxu3 %v4497_v0  ;;  %2637 = vmatmul.bf16.vlgmr.msrb.gmra.mxu0 %v6038_v13  ;;  %v4712_v0 = vld [vmem:[#allocation2 + $0x930] sm:$0xf]  ;;  %v4585_v4 = vor.u32 %v5525_v60, %v4584_v59  ;;  %v5613_v60 = vld [vmem:[#allocation2 + $0xaf4] sm:$0xf0] }
  0x9f   :  { %2681 = vmatpush.bf16.msra.mxu0 %v4617_v1  ;;  %2650 = vmatmul.bf16.vlgmr.msrb.gmra.mxu1 %v6042_v20  ;;  %v5557_v1 = vld [vmem:[#allocation2 + $0x934] sm:$0xf0] }
  0xa0   :  { %2694 = vmatpush.bf16.msra.mxu1 %v4681_v5  ;;  %2663 = vmatmul.bf16.vlgmr.msrb.gmra.mxu2 %v6040_v19  ;;  %v4649_v5 = vor.u32 %v5541_v63, %v4648_v61  ;;  %v5000_v61 = vld [vmem:[#allocation2 + $0xb70] sm:$0xf] }
  0xa1   :  { %2707 = vmatpush.bf16.msra.mxu2 %v4745_v6  ;;  %2676 = vmatmul.bf16.vlgmr.msrb.gmra.mxu3 %v6044_v26  ;;  %v4713_v6 = vor.u32 %v5557_v1, %v4712_v0  ;;  %v4689_v0 = vor.u32 %v5551_v53, %v4688_v51  ;;  %v5064_v1 = vld [vmem:[#allocation2 + $0xbf0] sm:$0xf]  ;;  %v5641_v51 = vld [vmem:[#allocation2 + $0xbd4] sm:$0xf0]  ;;  %v4848_v53 = vld [vmem:[#allocation2 + $0xa40] sm:$0xf] }
  0xa2   :  { %2720 = vmatpush.bf16.msra.mxu3 %v4809_v12  ;;  %v4777_v12 = vor.u32 %v5573_v3, %v4776_v2  ;;  %v5645_v2 = vld [vmem:[#allocation2 + $0xbf4] sm:$0xf0]  ;;  %v131_v3 = vld [vmem:[%s6161_s0 + $0x80] sm:$0xff] }
  0xa3   :  { %2682 = vmatpush.bf16.msra.mxu0 %v4609_v28  ;;  %v4577_v28 = vor.u32 %v5523_v10, %v4576_v7  ;;  %v132_v7 = vld [vmem:[%s6161_s0 + $0x88] sm:$0xff]  ;;  %v134_v10 = vld [vmem:[%s6161_s0 + $0x98] sm:$0xff] }
  0xa4   :  { %2695 = vmatpush.bf16.msra.mxu1 %v4673_v29  ;;  %v4641_v29 = vor.u32 %v5539_v14, %v4640_v11  ;;  %v4864_v14 = vld [vmem:[#allocation2 + $0xa60] sm:$0xf]  ;;  %v6068_v36 = vpack.c.bf16 %v134_v10, %v134_v10 }
  0xa5   :  { %2708 = vmatpush.bf16.msra.mxu2 %v4737_v30  ;;  %v4705_v30 = vor.u32 %v5555_v17, %v4704_v16  ;;  %v5595_v16 = vld [vmem:[#allocation2 + $0xa64] sm:$0xf0]  ;;  %v4928_v17 = vld [vmem:[#allocation2 + $0xae0] sm:$0xf] }
  0xa6   :  { %2721 = vmatpush.bf16.msra.mxu3 %v4801_v35  ;;  %v4769_v35 = vor.u32 %v5571_v24, %v4768_v21  ;;  %v5065_v21 = vor.u32 %v5645_v2, %v5064_v1  ;;  %v6062_v24 = vpack.c.bf16 %v131_v3, %v131_v3  ;;  %v4865_v39 = vor.u32 %v5595_v16, %v4864_v14  ;;  %v4840_v2 = vld [vmem:[#allocation2 + $0xa30] sm:$0xf]  ;;  %v5621_v14 = vld [vmem:[#allocation2 + $0xb34] sm:$0xf0] }
  0xa7   :  { %2683 = vmatpush.bf16.msra.mxu0 %v4601_v44  ;;  %v4569_v44 = vor.u32 %v5521_v32, %v4568_v31  ;;  %v6066_v32 = vpack.c.bf16 %v132_v7, %v132_v7  ;;  %v5032_v16 = vld [vmem:[#allocation2 + $0xbb0] sm:$0xf] }
  0xa8   :  { %2696 = vmatpush.bf16.msra.mxu1 %v4665_v45  ;;  %v4560_v45 = vld [vmem:[#allocation2 + $0x800] sm:$0xf] }
  0xa9   :  { %2709 = vmatpush.bf16.msra.mxu2 %v4729_v46  ;;  %v5519_v46 = vld [vmem:[#allocation2 + $0x804] sm:$0xf0] }
  0xaa   :  { %2722 = vmatpush.bf16.msra.mxu3 %v4793_v50  ;;  %v5535_v50 = vld [vmem:[#allocation2 + $0x884] sm:$0xf0]  ;;  %v4561_v59 = vor.u32 %v5519_v46, %v4560_v45  ;;  %v4920_v45 = vld [vmem:[#allocation2 + $0xad0] sm:$0xf] }
  0xab   :  { %2684 = vmatpush.bf16.msra.mxu0 %v4593_v56  ;;  %v4872_v56 = vld [vmem:[#allocation2 + $0xa70] sm:$0xf]  ;;  %v4625_v63 = vor.u32 %v5535_v50, %v4624_v49  ;;  %v5625_v49 = vld [vmem:[#allocation2 + $0xb54] sm:$0xf0] }
  0xac   :  { %2697 = vmatpush.bf16.msra.mxu1 %v4657_v57  ;;  %v5597_v57 = vld [vmem:[#allocation2 + $0xa74] sm:$0xf0]  ;;  %v5048_v50 = vld [vmem:[#allocation2 + $0xbd0] sm:$0xf] }
  0xad   :  { %2710 = vmatpush.bf16.msra.mxu2 %v4721_v58  ;;  %v4936_v58 = vld [vmem:[#allocation2 + $0xaf0] sm:$0xf] }
  0xae   :  { %2723 = vmatpush.bf16.msra.mxu3 %v4785_v62  ;;  %v5629_v62 = vld [vmem:[#allocation2 + $0xb74] sm:$0xf0]  ;;  %v4937_v11 = vor.u32 %v5613_v60, %v4936_v58  ;;  %v5607_v58 = vld [vmem:[#allocation2 + $0xac4] sm:$0xf0]  ;;  %v4976_v60 = vld [vmem:[#allocation2 + $0xb40] sm:$0xf] }
  0xaf   :  { %2685 = vmatpush.bf16.msra.mxu0 %v4585_v4  ;;  %v4753_v4 = vor.u32 %v5567_v55, %v4752_v54 }
  0xb0   :  { %2698 = vmatpush.bf16.msra.mxu1 %v4649_v5  ;;  %v4873_v5 = vor.u32 %v5597_v57, %v4872_v56  ;;  %v5591_v56 = vld [vmem:[#allocation2 + $0xa44] sm:$0xf0]  ;;  %v4912_v57 = vld [vmem:[#allocation2 + $0xac0] sm:$0xf] }
  0xb1   :  { %2711 = vmatpush.bf16.msra.mxu2 %v4713_v6  ;;  %v133_v6 = vld [vmem:[%s6161_s0 + $0x90] sm:$0xff]  ;;  %v4849_v1 = vor.u32 %v5591_v56, %v4848_v53  ;;  %v4913_v3 = vor.u32 %v5607_v58, %v4912_v57  ;;  %v5585_v53 = vld [vmem:[#allocation2 + $0xa14] sm:$0xf0] }
  0xb2   :  { %2724 = vmatpush.bf16.msra.mxu3 %v4777_v12  ;;  %v5001_v12 = vor.u32 %v5629_v62, %v5000_v61  ;;  %v6064_v31 = vpack.c.bf16 %v133_v6, %v133_v6  ;;  %v5623_v61 = vld [vmem:[#allocation2 + $0xb44] sm:$0xf0]  ;;  %v547_v62 = vld [vmem:[#allocation5] sm:$0x3]  ;;  %v4904_v6 = vld [vmem:[#allocation2 + $0xab0] sm:$0xf] }
  0xb3   :  { %2686 = vmatpush.bf16.msra.mxu0 %v4577_v28  ;;  %v5611_v28 = vld [vmem:[#allocation2 + $0xae4] sm:$0xf0]  ;;  %v549_v7 = vperm.slane %v547_v62, 0  ;;  %v5601_v57 = vld [vmem:[#allocation2 + $0xa94] sm:$0xf0] }
  0xb4   :  { %2699 = vmatpush.bf16.msra.mxu1 %v4641_v29  ;;  %v4992_v29 = vld [vmem:[#allocation2 + $0xb60] sm:$0xf]  ;;  %v4929_v41 = vor.u32 %v5611_v28, %v4928_v17  ;;  %v5637_v17 = vld [vmem:[#allocation2 + $0xbb4] sm:$0xf0]  ;;  %v4952_v58 = vld [vmem:[#allocation2 + $0xb10] sm:$0xf] }
  0xb5   :  { %2712 = vmatpush.bf16.msra.mxu2 %v4705_v30  ;;  %v5627_v30 = vld [vmem:[#allocation2 + $0xb64] sm:$0xf0]  ;;  %v5633_v62 = vld [vmem:[#allocation2 + $0xb94] sm:$0xf0] }
  0xb6   :  { %2725 = vmatpush.bf16.msra.mxu3 %v4769_v35  ;;  %v5643_v35 = vld [vmem:[#allocation2 + $0xbe4] sm:$0xf0]  ;;  %v4993_v42 = vor.u32 %v5627_v30, %v4992_v29 }
  0xb7   :  { %2687 = vmatpush.bf16.msra.mxu0 %v4569_v44  ;;  %v5593_v44 = vld [vmem:[#allocation2 + $0xa54] sm:$0xf0]  ;;  %v5057_v46 = vor.u32 %v5643_v35, %v5056_v33  ;;  %v4832_v33 = vld [vmem:[#allocation2 + $0xa20] sm:$0xf]  ;;  %v5587_v35 = vld [vmem:[#allocation2 + $0xa24] sm:$0xf0] }
  0xb8   :  { %2700 = vmatpush.bf16.msra.mxu1 %v4633_v47  ;;  %v5609_v47 = vld [vmem:[#allocation2 + $0xad4] sm:$0xf0] }
  0xb9   :  { %2713 = vmatpush.bf16.msra.mxu2 %v4697_v48  ;;  %v4984_v48 = vld [vmem:[#allocation2 + $0xb50] sm:$0xf]  ;;  %v4921_v54 = vor.u32 %v5609_v47, %v4920_v45  ;;  %v5619_v45 = vld [vmem:[#allocation2 + $0xb24] sm:$0xf0] }
  0xba   :  { %2726 = vmatpush.bf16.msra.mxu3 %v4761_v52  ;;  %v4857_v52 = vor.u32 %v5593_v44, %v4856_v43  ;;  %v4985_v55 = vor.u32 %v5625_v49, %v4984_v48  ;;  %v5603_v43 = vld [vmem:[#allocation2 + $0xaa4] sm:$0xf0]  ;;  %v4960_v44 = vld [vmem:[#allocation2 + $0xb20] sm:$0xf]  ;;  %v4833_v48 = vor.u32 %v5587_v35, %v4832_v33  ;;  %v3658_v35 = vld [vmem:[#allocation2 + $0xf8] sm:$0xf0] }
  0xbb   :  { %2688 = vmatpush.bf16.msra.mxu0 %v4561_v59  ;;  %v5049_v59 = vor.u32 %v5641_v51, %v5048_v50  ;;  %v2482_v28 = vpop.f32.mrf.mxu0  ;;  %v5635_v47 = vld [vmem:[#allocation2 + $0xba4] sm:$0xf0]  ;;  %v4961_v51 = vor.u32 %v5619_v45, %v4960_v44  ;;  %v5324_v45 = vld [vmem:[#allocation2 + $0x1f4] sm:$0xf] }
  0xbc   :  { %2701 = vmatpush.bf16.msra.mxu1 %v4625_v63  ;;  %v5040_v63 = vld [vmem:[#allocation2 + $0xbc0] sm:$0xf] }
  0xbd   :  { %2714 = vmatpush.bf16.msra.mxu2 %v4689_v0  ;;  %v5639_v0 = vld [vmem:[#allocation2 + $0xbc4] sm:$0xf0] }
  0xbe   :  { %2727 = vmatpush.bf16.msra.mxu3 %v4753_v4  ;;  %2689 = vmatmul.bf16.vlgmr.msra.gmra.mxu0 %v6062_v24  ;;  %v4977_v4 = vor.u32 %v5623_v61, %v4976_v60  ;;  %v5041_v10 = vor.u32 %v5639_v0, %v5040_v63  ;;  %v5016_v61 = vld [vmem:[#allocation2 + $0xb90] sm:$0xf] }
  0xbf   :  { %2733 = vmatpush.bf16.msrb.mxu0 %v4873_v5  ;;  %2702 = vmatmul.bf16.vlgmr.msra.gmra.mxu1 %v6066_v32  ;;  %v5589_v5 = vld [vmem:[#allocation2 + $0xa34] sm:$0xf0]  ;;  %v2495_v49 = vpop.f32.mrf.mxu1 }
  0xc0   :  { %2746 = vmatpush.bf16.msrb.mxu1 %v4937_v11  ;;  %2715 = vmatmul.bf16.vlgmr.msra.gmra.mxu2 %v6064_v31  ;;  %v5605_v11 = vld [vmem:[#allocation2 + $0xab4] sm:$0xf0] }
  0xc1   :  { %2759 = vmatpush.bf16.msrb.mxu2 %v5001_v12  ;;  %2728 = vmatmul.bf16.vlgmr.msra.gmra.mxu3 %v6068_v36  ;;  %v4968_v12 = vld [vmem:[#allocation2 + $0xb30] sm:$0xf]  ;;  %v4905_v29 = vor.u32 %v5605_v11, %v4904_v6  ;;  %v4944_v11 = vld [vmem:[#allocation2 + $0xb00] sm:$0xf] }
  0xc2   :  { %2772 = vmatpush.bf16.msrb.mxu3 %v5065_v21  ;;  %v4841_v21 = vor.u32 %v5589_v5, %v4840_v2  ;;  %v4969_v30 = vor.u32 %v5621_v14, %v4968_v12  ;;  %v4816_v2 = vld [vmem:[#allocation2 + $0xa00] sm:$0xf]  ;;  %v5017_v14 = vor.u32 %v5633_v62, %v5016_v61  ;;  %v3650_v62 = vld [vmem:[#allocation2 + $0xe8] sm:$0xf0] }
  0xc3   :  { %2734 = vmatpush.bf16.msrb.mxu0 %v4865_v39  ;;  %v4896_v39 = vld [vmem:[#allocation2 + $0xaa0] sm:$0xf]  ;;  %v2508_v60 = vpop.f32.mrf.mxu2 }
  0xc4   :  { %2747 = vmatpush.bf16.msrb.mxu1 %v4929_v41  ;;  %v2483_v41 = vadd.f32 %v2482_v28, %v549_v7  ;;  %v4897_v50 = vor.u32 %v5603_v43, %v4896_v39  ;;  %v2521_v0 = vpop.f32.mrf.mxu3  ;;  %v4880_v7 = vld [vmem:[#allocation2 + $0xa80] sm:$0xf]  ;;  %v5276_v28 = vld [vmem:[#allocation2 + $0x74] sm:$0xf] }
  0xc5   :  { %2760 = vmatpush.bf16.msrb.mxu2 %v4993_v42  ;;  %v5033_v42 = vor.u32 %v5637_v17, %v5032_v16  ;;  %v5615_v16 = vld [vmem:[#allocation2 + $0xb04] sm:$0xf0]  ;;  %v5008_v17 = vld [vmem:[#allocation2 + $0xb80] sm:$0xf]  ;;  %v5308_v39 = vld [vmem:[#allocation2 + $0x174] sm:$0xf] }
  0xc6   :  { %2773 = vmatpush.bf16.msrb.mxu3 %v5057_v46  ;;  %v5024_v46 = vld [vmem:[#allocation2 + $0xba0] sm:$0xf]  ;;  %v4945_v44 = vor.u32 %v5615_v16, %v4944_v11  ;;  %v5272_v11 = vld [vmem:[#allocation2 + $0x54] sm:$0xf] }
  0xc7   :  { %2735 = vmatpush.bf16.msrb.mxu0 %v4857_v52  ;;  %v4824_v52 = vld [vmem:[#allocation2 + $0xa10] sm:$0xf]  ;;  %v5025_v56 = vor.u32 %v5635_v47, %v5024_v46  ;;  %v3786_v46 = vld [vmem:[#allocation2 + $0x1f8] sm:$0xf0]  ;;  %v135_v47 = vld [vmem:[%s6161_s0 + $0xa0] sm:$0xff] }
  0xc8   :  { %2748 = vmatpush.bf16.msrb.mxu1 %v4921_v54  ;;  %v4888_v54 = vld [vmem:[#allocation2 + $0xa90] sm:$0xf]  ;;  %v6088_v61 = vpack.c.bf16 %v135_v47, %v135_v47  ;;  %v5288_v16 = vld [vmem:[#allocation2 + $0xd4] sm:$0xf]  ;;  %v5302_v47 = vld [vmem:[#allocation2 + $0x144] sm:$0xf] }
  0xc9   :  { %2761 = vmatpush.bf16.msrb.mxu2 %v4985_v55  ;;  %v2496_v55 = vadd.f32 %v2495_v49, %v2483_v41  ;;  %v4889_v5 = vor.u32 %v5601_v57, %v4888_v54  ;;  %v3722_v41 = vld [vmem:[#allocation2 + $0x178] sm:$0xf0]  ;;  %v3586_v57 = vld [vmem:[#allocation2 + $0x68] sm:$0xf0] }
  0xca   :  { %2774 = vmatpush.bf16.msrb.mxu3 %v5049_v59  ;;  %v5617_v59 = vld [vmem:[#allocation2 + $0xb14] sm:$0xf0] }
  0xcb   :  { %2736 = vmatpush.bf16.msrb.mxu0 %v4849_v1  ;;  %v2509_v63 = vadd.f32 %v2508_v60, %v2496_v55  ;;  %v4825_v1 = vor.u32 %v5585_v53, %v4824_v52  ;;  %v4953_v6 = vor.u32 %v5617_v59, %v4952_v58  ;;  %v138_v52 = vld [vmem:[%s6161_s0 + $0xb8] sm:$0xff]  ;;  %v2510_v53 = vpop.f32.mrf.mxu2  ;;  %v3725_v55 = vor.u32 %v5308_v39, %v3722_v41  ;;  %v5290_v58 = vld [vmem:[#allocation2 + $0xe4] sm:$0xf] }
  0xcc   :  { %2749 = vmatpush.bf16.msrb.mxu1 %v4913_v3  ;;  %v5583_v3 = vld [vmem:[#allocation2 + $0xa04] sm:$0xf0]  ;;  %v2523_v59 = vpop.f32.mrf.mxu3  ;;  %v3789_v60 = vor.u32 %v5324_v45, %v3786_v46  ;;  %v3634_v46 = vld [vmem:[#allocation2 + $0xc8] sm:$0xf0] }
  0xcd   :  { %2762 = vmatpush.bf16.msrb.mxu2 %v4977_v4  ;;  %v2484_v4 = vpop.f32.mrf.mxu0  ;;  %v6074_v12 = vadd.f32 %v2521_v0, %v2509_v63  ;;  %v4817_v33 = vor.u32 %v5583_v3, %v4816_v2  ;;  %v5306_v63 = vld [vmem:[#allocation2 + $0x164] sm:$0xf]  ;;  %v3714_v0 = vld [vmem:[#allocation2 + $0x168] sm:$0xf0] }
  0xce   :  { %2775 = vmatpush.bf16.msrb.mxu3 %v5041_v10  ;;  %v5599_v10 = vld [vmem:[#allocation2 + $0xa84] sm:$0xf0]  ;;  %v5322_v3 = vld [vmem:[#allocation2 + $0x1e4] sm:$0xf]  ;;  %v3778_v4 = vld [vmem:[#allocation2 + $0x1e8] sm:$0xf0] }
  0xcf   :  { %2737 = vmatpush.bf16.msrb.mxu0 %v4841_v21  ;;  %v5631_v21 = vld [vmem:[#allocation2 + $0xb84] sm:$0xf0]  ;;  %v4881_v43 = vor.u32 %v5599_v10, %v4880_v7  ;;  %v3653_v7 = vor.u32 %v5290_v58, %v3650_v62  ;;  %v3717_v10 = vor.u32 %v5306_v63, %v3714_v0  ;;  %v3626_v62 = vld [vmem:[#allocation2 + $0xb8] sm:$0xf0]  ;;  %v5300_v63 = vld [vmem:[#allocation2 + $0x134] sm:$0xf] }
  0xd0   :  { %2750 = vmatpush.bf16.msrb.mxu1 %v4905_v29  ;;  %v3594_v29 = vld [vmem:[#allocation2 + $0x78] sm:$0xf0] }
  0xd1   :  { %2763 = vmatpush.bf16.msrb.mxu2 %v4969_v30  ;;  %v5292_v30 = vld [vmem:[#allocation2 + $0xf4] sm:$0xf]  ;;  %v3597_v49 = vor.u32 %v5276_v28, %v3594_v29  ;;  %v3706_v29 = vld [vmem:[#allocation2 + $0x158] sm:$0xf0] }
  0xd2   :  { %2776 = vmatpush.bf16.msrb.mxu3 %v5033_v42  ;;  %v2497_v42 = vpop.f32.mrf.mxu1  ;;  %v3661_v54 = vor.u32 %v5292_v30, %v3658_v35  ;;  %v5304_v28 = vld [vmem:[#allocation2 + $0x154] sm:$0xf]  ;;  %v3690_v0 = vld [vmem:[#allocation2 + $0x138] sm:$0xf0] }
  0xd3   :  { %2738 = vmatpush.bf16.msrb.mxu0 %v4833_v48  ;;  %v5009_v48 = vor.u32 %v5631_v21, %v5008_v17  ;;  %v3781_v17 = vor.u32 %v5322_v3, %v3778_v4  ;;  %v3642_v21 = vld [vmem:[#allocation2 + $0xd8] sm:$0xf0]  ;;  %v5320_v30 = vld [vmem:[#allocation2 + $0x1d4] sm:$0xf]  ;;  %v3709_v41 = vor.u32 %v5304_v28, %v3706_v29  ;;  %v5270_v42 = vld [vmem:[#allocation2 + $0x44] sm:$0xf] }
  0xd4   :  { %2751 = vmatpush.bf16.msrb.mxu1 %v4897_v50  ;;  %v137_v50 = vld [vmem:[%s6161_s0 + $0xb0] sm:$0xff]  ;;  %v3645_v39 = vor.u32 %v5288_v16, %v3642_v21  ;;  %v3754_v4 = vld [vmem:[#allocation2 + $0x1b8] sm:$0xf0]  ;;  %v3554_v16 = vld [vmem:[#allocation2 + $0x28] sm:$0xf0] }
  0xd5   :  { %2764 = vmatpush.bf16.msrb.mxu2 %v4961_v51  ;;  %v136_v51 = vld [vmem:[%s6161_s0 + $0xa8] sm:$0xff]  ;;  %v5316_v3 = vld [vmem:[#allocation2 + $0x1b4] sm:$0xf]  ;;  %v5298_v29 = vld [vmem:[#allocation2 + $0x124] sm:$0xf]  ;;  %s5895_s0 = smov [#allocation13]  }
  0xd6   :  { %2777 = vmatpush.bf16.msrb.mxu3 %v5025_v56  ;;  %v5274_v56 = vld [vmem:[#allocation2 + $0x64] sm:$0xf]  ;;  %v6092_v2 = vpack.c.bf16 %v136_v51, %v136_v51  ;;  %v3618_v28 = vld [vmem:[#allocation2 + $0xa8] sm:$0xf0]  ;;  %s3519_s1 = sshll.u32 %s5895_s0, 4  ;;  %s3520_s1 = int_to_ptr.vmem [resolvable:$true] %s3519_s1 }
  0xd7   :  { %2739 = vmatpush.bf16.msrb.mxu0 %v4825_v1  ;;  %v6090_v1 = vpack.c.bf16 %v137_v50, %v137_v50  ;;  %v3762_v50 = vld [vmem:[#allocation2 + $0x1c8] sm:$0xf0] }
  0xd8   :  { %2752 = vmatpush.bf16.msrb.mxu1 %v4889_v5  ;;  %v6094_v5 = vpack.c.bf16 %v138_v52, %v138_v52 }
  0xd9   :  { %2765 = vmatpush.bf16.msrb.mxu2 %v4953_v6  ;;  %v3589_v6 = vor.u32 %v5274_v56, %v3586_v57  ;;  %v3562_v56 = vld [vmem:[#allocation2 + $0x38] sm:$0xf0]  ;;  %v5284_v57 = vld [vmem:[#allocation2 + $0xb4] sm:$0xf] }
  0xda   :  { %2778 = vmatpush.bf16.msrb.mxu3 %v5017_v14  ;;  %v3578_v14 = vld [vmem:[#allocation2 + $0x58] sm:$0xf0] }
  0xdb   :  { %2740 = vmatpush.bf16.msrb.mxu0 %v4817_v33  ;;  %v3770_v33 = vld [vmem:[#allocation2 + $0x1d8] sm:$0xf0]  ;;  %v3581_v35 = vor.u32 %v5272_v11, %v3578_v14  ;;  %v2534_v52 = vpop.f32.mrf.mxu0  ;;  %v3693_v11 = vor.u32 %v5300_v63, %v3690_v0  ;;  %v5266_v14 = vld [vmem:[#allocation2 + $0x24] sm:$0xf]  ;;  %v3602_v0 = vld [vmem:[#allocation2 + $0x88] sm:$0xf0] }
  0xdc   :  { %2753 = vmatpush.bf16.msrb.mxu1 %v4881_v43  ;;  %v3570_v43 = vld [vmem:[#allocation2 + $0x48] sm:$0xf0]  ;;  %v3773_v45 = vor.u32 %v5320_v30, %v3770_v33  ;;  %v2535_v58 = vadd.f32 %v2534_v52, %v6074_v12  ;;  %v2547_v59 = vpop.f32.mrf.mxu1  ;;  %v3757_v12 = vor.u32 %v5316_v3, %v3754_v4  ;;  %v3610_v52 = vld [vmem:[#allocation2 + $0x98] sm:$0xf0]  ;;  %v5278_v63 = vld [vmem:[#allocation2 + $0x84] sm:$0xf] }
  0xdd   :  { %2766 = vmatpush.bf16.msrb.mxu2 %v4945_v44  ;;  %v5286_v44 = vld [vmem:[#allocation2 + $0xc4] sm:$0xf]  ;;  %v3573_v51 = vor.u32 %v5270_v42, %v3570_v43  ;;  %v3682_v30 = vld [vmem:[#allocation2 + $0x128] sm:$0xf0]  ;;  %v3557_v42 = vor.u32 %v5266_v14, %v3554_v16  ;;  %v5340_v16 = vld [vmem:[#allocation2 + $0x274] sm:$0xf] }
  0xde   :  { %2779 = vmatpush.bf16.msrb.mxu3 %v5009_v48  ;;  %2741 = vmatmul.bf16.vlgmr.msrb.gmra.mxu0 %v6088_v61  ;;  %v3698_v48 = vld [vmem:[#allocation2 + $0x148] sm:$0xf0]  ;;  %v3637_v53 = vor.u32 %v5286_v44, %v3634_v46  ;;  %v3685_v46 = vor.u32 %v5298_v29, %v3682_v30  ;;  %v5294_v3 = vld [vmem:[#allocation2 + $0x104] sm:$0xf]  ;;  %v5372_v29 = vld [vmem:[#allocation2 + $0x374] sm:$0xf] }
  0xdf   :  { %2785 = vmatpush.bf16.msra.mxu0 %v3597_v49  ;;  %2754 = vmatmul.bf16.vlgmr.msrb.gmra.mxu1 %v6092_v2  ;;  %v5318_v49 = vld [vmem:[#allocation2 + $0x1c4] sm:$0xf]  ;;  %v3978_v30 = vld [vmem:[#allocation2 + $0x378] sm:$0xf0] }
  0xe0   :  { %2798 = vmatpush.bf16.msra.mxu1 %v3661_v54  ;;  %2767 = vmatmul.bf16.vlgmr.msrb.gmra.mxu2 %v6090_v1  ;;  %v3701_v54 = vor.u32 %v5302_v47, %v3698_v48  ;;  %v5264_v47 = vld [vmem:[#allocation2 + $0x14] sm:$0xf]  ;;  %v3546_v48 = vld [vmem:[#allocation2 + $0x18] sm:$0xf0] }
  0xe1   :  { %2811 = vmatpush.bf16.msra.mxu2 %v3725_v55  ;;  %2780 = vmatmul.bf16.vlgmr.msrb.gmra.mxu3 %v6094_v5  ;;  %v5268_v55 = vld [vmem:[#allocation2 + $0x34] sm:$0xf] }
  0xe2   :  { %2824 = vmatpush.bf16.msra.mxu3 %v3789_v60  ;;  %v3765_v60 = vor.u32 %v5318_v49, %v3762_v50  ;;  %v5280_v49 = vld [vmem:[#allocation2 + $0x94] sm:$0xf] }
  0xe3   :  { %2786 = vmatpush.bf16.msra.mxu0 %v3589_v6  ;;  %v2548_v6 = vadd.f32 %v2547_v59, %v2535_v58  ;;  %v2560_v21 = vpop.f32.mrf.mxu2  ;;  %v2536_v44 = vpop.f32.mrf.mxu0  ;;  %v5262_v58 = vld [vmem:[#allocation2 + $0x4] sm:$0xf]  ;;  %v3538_v59 = vld [vmem:[#allocation2 + $0x8] sm:$0xf0] }
  0xe4   :  { %2799 = vmatpush.bf16.msra.mxu1 %v3653_v7  ;;  %v3565_v7 = vor.u32 %v5268_v55, %v3562_v56  ;;  %v2549_v50 = vpop.f32.mrf.mxu1  ;;  %v5312_v55 = vld [vmem:[#allocation2 + $0x194] sm:$0xf]  ;;  %v3738_v56 = vld [vmem:[#allocation2 + $0x198] sm:$0xf0] }
  0xe5   :  { %2812 = vmatpush.bf16.msra.mxu2 %v3717_v10  ;;  %v3629_v10 = vor.u32 %v5284_v57, %v3626_v62  ;;  %v2561_v33 = vadd.f32 %v2560_v21, %v2548_v6  ;;  %v3549_v57 = vor.u32 %v5264_v47, %v3546_v48  ;;  %v3741_v6 = vor.u32 %v5312_v55, %v3738_v56  ;;  %v5356_v21 = vld [vmem:[#allocation2 + $0x2f4] sm:$0xf]  ;;  %v5338_v47 = vld [vmem:[#allocation2 + $0x264] sm:$0xf]  ;;  %v3842_v48 = vld [vmem:[#allocation2 + $0x268] sm:$0xf0] }
  0xe6   :  { %2825 = vmatpush.bf16.msra.mxu3 %v3781_v17  ;;  %v5282_v17 = vld [vmem:[#allocation2 + $0xa4] sm:$0xf]  ;;  %v4034_v55 = vld [vmem:[#allocation2 + $0x3e8] sm:$0xf0]  ;;  %v3845_v56 = vor.u32 %v5338_v47, %v3842_v48  ;;  %v3882_v48 = vld [vmem:[#allocation2 + $0x2b8] sm:$0xf0] }
  0xe7   :  { %2787 = vmatpush.bf16.msra.mxu0 %v3581_v35  ;;  %v2573_v35 = vpop.f32.mrf.mxu3 }
  0xe8   :  { %2800 = vmatpush.bf16.msra.mxu1 %v3645_v39  ;;  %v5314_v39 = vld [vmem:[#allocation2 + $0x1a4] sm:$0xf]  ;;  %v6101_v43 = vadd.f32 %v2573_v35, %v2561_v33  ;;  %v3605_v33 = vor.u32 %v5278_v63, %v3602_v0  ;;  %v3898_v0 = vld [vmem:[#allocation2 + $0x2d8] sm:$0xf0] }
  0xe9   :  { %2813 = vmatpush.bf16.msra.mxu2 %v3709_v41  ;;  %v3746_v41 = vld [vmem:[#allocation2 + $0x1a8] sm:$0xf0] }
  0xea   :  { %2826 = vmatpush.bf16.msra.mxu3 %v3773_v45  ;;  %v3621_v45 = vor.u32 %v5282_v17, %v3618_v28  ;;  %v3850_v17 = vld [vmem:[#allocation2 + $0x278] sm:$0xf0] }
  0xeb   :  { %2788 = vmatpush.bf16.msra.mxu0 %v3573_v51  ;;  %v3749_v51 = vor.u32 %v5314_v39, %v3746_v41  ;;  %v2562_v4 = vpop.f32.mrf.mxu2  ;;  %v3914_v28 = vld [vmem:[#allocation2 + $0x2f8] sm:$0xf0]  ;;  %v5388_v39 = vld [vmem:[#allocation2 + $0x3f4] sm:$0xf]  ;;  %v3853_v44 = vor.u32 %v5340_v16, %v3850_v17  ;;  %v5334_v16 = vld [vmem:[#allocation2 + $0x244] sm:$0xf] }
  0xec   :  { %2801 = vmatpush.bf16.msra.mxu1 %v3637_v53  ;;  %v5296_v53 = vld [vmem:[#allocation2 + $0x114] sm:$0xf]  ;;  %v4042_v41 = vld [vmem:[#allocation2 + $0x3f8] sm:$0xf0]  ;;  %v3826_v17 = vld [vmem:[#allocation2 + $0x248] sm:$0xf0] }
  0xed   :  { %2814 = vmatpush.bf16.msra.mxu2 %v3701_v54  ;;  %v3674_v54 = vld [vmem:[#allocation2 + $0x118] sm:$0xf0]  ;;  %v4045_v50 = vor.u32 %v5388_v39, %v4042_v41 }
  0xee   :  { %2827 = vmatpush.bf16.msra.mxu3 %v3765_v60  ;;  %v3613_v60 = vor.u32 %v5280_v49, %v3610_v52  ;;  %v3677_v62 = vor.u32 %v5296_v53, %v3674_v54  ;;  %v5354_v49 = vld [vmem:[#allocation2 + $0x2e4] sm:$0xf]  ;;  %v3970_v53 = vld [vmem:[#allocation2 + $0x368] sm:$0xf0]  ;;  %v3962_v4 = vld [vmem:[#allocation2 + $0x358] sm:$0xf0] }
  0xef   :  { %2789 = vmatpush.bf16.msra.mxu0 %v3565_v7  ;;  %v3666_v7 = vld [vmem:[#allocation2 + $0x108] sm:$0xf0]  ;;  %v2575_v14 = vpop.f32.mrf.mxu3  ;;  %v5370_v52 = vld [vmem:[#allocation2 + $0x364] sm:$0xf] }
  0xf0   :  { %2802 = vmatpush.bf16.msra.mxu1 %v3629_v10  ;;  %v5310_v10 = vld [vmem:[#allocation2 + $0x184] sm:$0xf]  ;;  %v3669_v35 = vor.u32 %v5294_v3, %v3666_v7  ;;  %v5368_v3 = vld [vmem:[#allocation2 + $0x354] sm:$0xf]  ;;  %v4026_v7 = vld [vmem:[#allocation2 + $0x3d8] sm:$0xf0] }
  0xf1   :  { %2815 = vmatpush.bf16.msra.mxu2 %v3693_v11  ;;  %v3730_v11 = vld [vmem:[#allocation2 + $0x188] sm:$0xf0]  ;;  %v5386_v54 = vld [vmem:[#allocation2 + $0x3e4] sm:$0xf]  ;;  %v3965_v14 = vor.u32 %v5368_v3, %v3962_v4 }
  0xf2   :  { %2828 = vmatpush.bf16.msra.mxu3 %v3757_v12  ;;  %v3541_v12 = vor.u32 %v5262_v58, %v3538_v59  ;;  %v3973_v58 = vor.u32 %v5370_v52, %v3970_v53  ;;  %v5336_v59 = vld [vmem:[#allocation2 + $0x254] sm:$0xf]  ;;  %v4037_v63 = vor.u32 %v5386_v54, %v4034_v55  ;;  %v4010_v52 = vld [vmem:[#allocation2 + $0x3b8] sm:$0xf0]  ;;  %v5330_v55 = vld [vmem:[#allocation2 + $0x224] sm:$0xf] }
  0xf3   :  { %2790 = vmatpush.bf16.msra.mxu0 %v3557_v42  ;;  %v3733_v42 = vor.u32 %v5310_v10, %v3730_v11  ;;  %v5378_v4 = vld [vmem:[#allocation2 + $0x3a4] sm:$0xf] }
  0xf4   :  { %2803 = vmatpush.bf16.msra.mxu1 %v3621_v45  ;;  %v3917_v45 = vor.u32 %v5356_v21, %v3914_v28  ;;  %v5350_v21 = vld [vmem:[#allocation2 + $0x2c4] sm:$0xf] }
  0xf5   :  { %2816 = vmatpush.bf16.msra.mxu2 %v3685_v46  ;;  %v3981_v46 = vor.u32 %v5372_v29, %v3978_v30  ;;  %v5366_v28 = vld [vmem:[#allocation2 + $0x344] sm:$0xf]  ;;  %v3954_v29 = vld [vmem:[#allocation2 + $0x348] sm:$0xf0] }
  0xf6   :  { %2829 = vmatpush.bf16.msra.mxu3 %v3749_v51  ;;  %v3906_v51 = vld [vmem:[#allocation2 + $0x2e8] sm:$0xf0]  ;;  %v3957_v41 = vor.u32 %v5366_v28, %v3954_v29  ;;  %v3866_v29 = vld [vmem:[#allocation2 + $0x298] sm:$0xf0] }
  0xf7   :  { %2791 = vmatpush.bf16.msra.mxu0 %v3549_v57  ;;  %v3909_v57 = vor.u32 %v5354_v49, %v3906_v51  ;;  %v5364_v49 = vld [vmem:[#allocation2 + $0x334] sm:$0xf] }
  0xf8   :  { %2804 = vmatpush.bf16.msra.mxu1 %v3613_v60  ;;  %v3834_v60 = vld [vmem:[#allocation2 + $0x258] sm:$0xf0]  ;;  %v5380_v51 = vld [vmem:[#allocation2 + $0x3b4] sm:$0xf] }
  0xf9   :  { %2817 = vmatpush.bf16.msra.mxu2 %v3677_v62  ;;  %v5352_v62 = vld [vmem:[#allocation2 + $0x2d4] sm:$0xf]  ;;  %v3837_v10 = vor.u32 %v5336_v59, %v3834_v60  ;;  %v3874_v60 = vld [vmem:[#allocation2 + $0x2a8] sm:$0xf0] }
  0xfa   :  { %2830 = vmatpush.bf16.msra.mxu3 %v3741_v6  ;;  %v5384_v6 = vld [vmem:[#allocation2 + $0x3d4] sm:$0xf]  ;;  %v3901_v11 = vor.u32 %v5352_v62, %v3898_v0  ;;  %v5362_v62 = vld [vmem:[#allocation2 + $0x324] sm:$0xf] }
  0xfb   :  { %2792 = vmatpush.bf16.msra.mxu0 %v3541_v12  ;;  %v4029_v12 = vor.u32 %v5384_v6, %v4026_v7  ;;  %v2586_v30 = vpop.f32.mrf.mxu0  ;;  %v4002_v6 = vld [vmem:[#allocation2 + $0x3a8] sm:$0xf0] }
  0xfc   :  { %2805 = vmatpush.bf16.msra.mxu1 %v3605_v33  ;;  %v4018_v33 = vld [vmem:[#allocation2 + $0x3c8] sm:$0xf0]  ;;  %v4005_v28 = vor.u32 %v5378_v4, %v4002_v6 }
  0xfd   :  { %2818 = vmatpush.bf16.msra.mxu2 %v3669_v35  ;;  %v3829_v35 = vor.u32 %v5334_v16, %v3826_v17 }
  0xfe   :  { %2831 = vmatpush.bf16.msra.mxu3 %v3733_v42  ;;  %2793 = vmatmul.bf16.vlgmr.msra.gmra.mxu0 %v5962_v9  ;;  %v5382_v9 = vld [vmem:[#allocation2 + $0x3c4] sm:$0xf]  ;;  %v5332_v42 = vld [vmem:[#allocation2 + $0x234] sm:$0xf] }
  0xff   :  { %2837 = vmatpush.bf16.msrb.mxu0 %v3853_v44  ;;  %2806 = vmatmul.bf16.vlgmr.msra.gmra.mxu1 %v5975_v25  ;;  %v2599_v25 = vpop.f32.mrf.mxu1  ;;  %v3818_v44 = vld [vmem:[#allocation2 + $0x238] sm:$0xf0] }
 0x100   :  { %2850 = vmatpush.bf16.msrb.mxu1 %v3917_v45  ;;  %2819 = vmatmul.bf16.vlgmr.msra.gmra.mxu2 %v5960_v8  ;;  %v3890_v8 = vld [vmem:[#allocation2 + $0x2c8] sm:$0xf0]  ;;  %v5348_v45 = vld [vmem:[#allocation2 + $0x2b4] sm:$0xf]  ;;  %v3821_v53 = vor.u32 %v5332_v42, %v3818_v44  ;;  %v5342_v44 = vld [vmem:[#allocation2 + $0x284] sm:$0xf] }
 0x101   :  { %2863 = vmatpush.bf16.msrb.mxu2 %v3981_v46  ;;  %2832 = vmatmul.bf16.vlgmr.msra.gmra.mxu3 %v5967_v15  ;;  %v2587_v15 = vadd.f32 %v2586_v30, %v6101_v43  ;;  %v3893_v39 = vor.u32 %v5350_v21, %v3890_v8  ;;  %v4021_v46 = vor.u32 %v5382_v9, %v4018_v33  ;;  %v5328_v21 = vld [vmem:[#allocation2 + $0x214] sm:$0xf]  ;;  %v3930_v9 = vld [vmem:[#allocation2 + $0x318] sm:$0xf0] }
 0x102   :  { %2876 = vmatpush.bf16.msrb.mxu3 %v4045_v50  ;;  %v3946_v50 = vld [vmem:[#allocation2 + $0x338] sm:$0xf0]  ;;  %v3885_v43 = vor.u32 %v5348_v45, %v3882_v48  ;;  %v5344_v8 = vld [vmem:[#allocation2 + $0x294] sm:$0xf]  ;;  %v3858_v45 = vld [vmem:[#allocation2 + $0x288] sm:$0xf0] }
 0x103   :  { %2838 = vmatpush.bf16.msrb.mxu0 %v3845_v56  ;;  %v2600_v47 = vadd.f32 %v2599_v25, %v2587_v15  ;;  %v3949_v54 = vor.u32 %v5364_v49, %v3946_v50  ;;  %v3810_v56 = vld [vmem:[#allocation2 + $0x228] sm:$0xf0]  ;;  %v2612_v59 = vpop.f32.mrf.mxu2  ;;  %v2588_v7 = vpop.f32.mrf.mxu0  ;;  %v5360_v30 = vld [vmem:[#allocation2 + $0x314] sm:$0xf]  ;;  %v3994_v15 = vld [vmem:[#allocation2 + $0x398] sm:$0xf0] }
 0x104   :  { %2851 = vmatpush.bf16.msrb.mxu1 %v3909_v57  ;;  %v5346_v57 = vld [vmem:[#allocation2 + $0x2a4] sm:$0xf]  ;;  %v2625_v3 = vpop.f32.mrf.mxu3  ;;  %v5376_v33 = vld [vmem:[#allocation2 + $0x394] sm:$0xf]  ;;  %v3933_v42 = vor.u32 %v5360_v30, %v3930_v9  ;;  %v3922_v48 = vld [vmem:[#allocation2 + $0x308] sm:$0xf0] }
 0x105   :  { %2864 = vmatpush.bf16.msrb.mxu2 %v3973_v58  ;;  %v4013_v58 = vor.u32 %v5380_v51, %v4010_v52  ;;  %v2613_v0 = vadd.f32 %v2612_v59, %v2600_v47  ;;  %v3877_v16 = vor.u32 %v5346_v57, %v3874_v60  ;;  %v5326_v25 = vld [vmem:[#allocation2 + $0x204] sm:$0xf]  ;;  %v3997_v47 = vor.u32 %v5376_v33, %v3994_v15  ;;  %v3986_v50 = vld [vmem:[#allocation2 + $0x388] sm:$0xf0]  ;;  %v5404_v52 = vld [vmem:[#allocation2 + $0x474] sm:$0xf] }
 0x106   :  { %2877 = vmatpush.bf16.msrb.mxu3 %v4037_v63  ;;  %v3938_v63 = vld [vmem:[#allocation2 + $0x328] sm:$0xf0]  ;;  %v5374_v49 = vld [vmem:[#allocation2 + $0x384] sm:$0xf]  ;;  %v5436_v57 = vld [vmem:[#allocation2 + $0x574] sm:$0xf]  ;;  %v3861_v59 = vor.u32 %v5342_v44, %v3858_v45 }
 0x107   :  { %2839 = vmatpush.bf16.msrb.mxu0 %v3837_v10  ;;  %v3813_v10 = vor.u32 %v5330_v55, %v3810_v56  ;;  %v3941_v17 = vor.u32 %v5362_v62, %v3938_v63  ;;  %v4170_v56 = vld [vmem:[#allocation2 + $0x4f8] sm:$0xf0]  ;;  %v5452_v62 = vld [vmem:[#allocation2 + $0x5f4] sm:$0xf]  ;;  %v5402_v7 = vld [vmem:[#allocation2 + $0x464] sm:$0xf] }
 0x108   :  { %2852 = vmatpush.bf16.msrb.mxu1 %v3901_v11  ;;  %v2601_v11 = vpop.f32.mrf.mxu1  ;;  %v4298_v63 = vld [vmem:[#allocation2 + $0x5f8] sm:$0xf0]  ;;  %v5400_v33 = vld [vmem:[#allocation2 + $0x454] sm:$0xf] }
 0x109   :  { %2865 = vmatpush.bf16.msrb.mxu2 %v3965_v14  ;;  %v6108_v14 = vadd.f32 %v2625_v3, %v2613_v0  ;;  %v3989_v0 = vor.u32 %v5374_v49, %v3986_v50  ;;  %v5418_v11 = vld [vmem:[#allocation2 + $0x4e4] sm:$0xf]  ;;  %v4090_v15 = vld [vmem:[#allocation2 + $0x458] sm:$0xf0]  ;;  %v5448_v44 = vld [vmem:[#allocation2 + $0x5d4] sm:$0xf] }
 0x10a   :  { %2878 = vmatpush.bf16.msrb.mxu3 %v4029_v12  ;;  %v3802_v12 = vld [vmem:[#allocation2 + $0x218] sm:$0xf0]  ;;  %v5398_v49 = vld [vmem:[#allocation2 + $0x444] sm:$0xf]  ;;  %v4082_v50 = vld [vmem:[#allocation2 + $0x448] sm:$0xf0] }
 0x10b   :  { %2840 = vmatpush.bf16.msrb.mxu0 %v3829_v35  ;;  %v3805_v35 = vor.u32 %v5328_v21, %v3802_v12  ;;  %v2614_v51 = vpop.f32.mrf.mxu2  ;;  %v5434_v21 = vld [vmem:[#allocation2 + $0x564] sm:$0xf]  ;;  %v4226_v12 = vld [vmem:[#allocation2 + $0x568] sm:$0xf0]  ;;  %v4282_v45 = vld [vmem:[#allocation2 + $0x5d8] sm:$0xf0] }
 0x10c   :  { %2853 = vmatpush.bf16.msrb.mxu1 %v3893_v39  ;;  %v3794_v39 = vld [vmem:[#allocation2 + $0x208] sm:$0xf0]  ;;  %v4229_v9 = vor.u32 %v5434_v21, %v4226_v12  ;;  %v4285_v51 = vor.u32 %v5448_v44, %v4282_v45  ;;  %v5410_v12 = vld [vmem:[#allocation2 + $0x4a4] sm:$0xf] }
 0x10d   :  { %2866 = vmatpush.bf16.msrb.mxu2 %v3957_v41  ;;  %v3869_v41 = vor.u32 %v5344_v8, %v3866_v29  ;;  %v3797_v55 = vor.u32 %v5326_v25, %v3794_v39  ;;  %v5450_v8 = vld [vmem:[#allocation2 + $0x5e4] sm:$0xf]  ;;  %v4154_v39 = vld [vmem:[#allocation2 + $0x4d8] sm:$0xf0]  ;;  %v4066_v21 = vld [vmem:[#allocation2 + $0x428] sm:$0xf0] }
 0x10e   :  { %2879 = vmatpush.bf16.msrb.mxu3 %v4021_v46  ;;  %v5358_v46 = vld [vmem:[#allocation2 + $0x304] sm:$0xf] }
 0x10f   :  { %2841 = vmatpush.bf16.msrb.mxu0 %v3821_v53  ;;  %v4106_v53 = vld [vmem:[#allocation2 + $0x478] sm:$0xf0]  ;;  %v3925_v60 = vor.u32 %v5358_v46, %v3922_v48  ;;  %v4093_v46 = vor.u32 %v5400_v33, %v4090_v15 }
 0x110   :  { %2854 = vmatpush.bf16.msrb.mxu1 %v3885_v43  ;;  %v5420_v43 = vld [vmem:[#allocation2 + $0x4f4] sm:$0xf]  ;;  %v4109_v3 = vor.u32 %v5404_v52, %v4106_v53  ;;  %v4146_v52 = vld [vmem:[#allocation2 + $0x4c8] sm:$0xf0]  ;;  %v5430_v53 = vld [vmem:[#allocation2 + $0x544] sm:$0xf] }
 0x111   :  { %2867 = vmatpush.bf16.msrb.mxu2 %v3949_v54  ;;  %v2627_v54 = vpop.f32.mrf.mxu3  ;;  %v4173_v4 = vor.u32 %v5420_v43, %v4170_v56  ;;  %v4210_v43 = vld [vmem:[#allocation2 + $0x548] sm:$0xf0]  ;;  %v4085_v56 = vor.u32 %v5398_v49, %v4082_v50  ;;  %v5408_v49 = vld [vmem:[#allocation2 + $0x494] sm:$0xf] }
 0x112   :  { %2880 = vmatpush.bf16.msrb.mxu3 %v4013_v58  ;;  %v4234_v58 = vld [vmem:[#allocation2 + $0x578] sm:$0xf0] }
 0x113   :  { %2842 = vmatpush.bf16.msrb.mxu0 %v3813_v10  ;;  %v4237_v6 = vor.u32 %v5436_v57, %v4234_v58  ;;  %v4098_v10 = vld [vmem:[#allocation2 + $0x468] sm:$0xf0]  ;;  %v4213_v58 = vor.u32 %v5430_v53, %v4210_v43  ;;  %v5440_v53 = vld [vmem:[#allocation2 + $0x594] sm:$0xf]  ;;  %v4250_v43 = vld [vmem:[#allocation2 + $0x598] sm:$0xf0] }
 0x114   :  { %2855 = vmatpush.bf16.msrb.mxu1 %v3877_v16  ;;  %v4301_v16 = vor.u32 %v5452_v62, %v4298_v63  ;;  %v4101_v29 = vor.u32 %v5402_v7, %v4098_v10  ;;  %v5412_v62 = vld [vmem:[#allocation2 + $0x4b4] sm:$0xf]  ;;  %v4266_v10 = vld [vmem:[#allocation2 + $0x5b8] sm:$0xf0] }
 0x115   :  { %2868 = vmatpush.bf16.msrb.mxu2 %v3941_v17  ;;  %v4162_v17 = vld [vmem:[#allocation2 + $0x4e8] sm:$0xf0]  ;;  %v5444_v7 = vld [vmem:[#allocation2 + $0x5b4] sm:$0xf] }
 0x116   :  { %2881 = vmatpush.bf16.msrb.mxu3 %v4005_v28  ;;  %v4290_v28 = vld [vmem:[#allocation2 + $0x5e8] sm:$0xf0]  ;;  %v4165_v30 = vor.u32 %v5418_v11, %v4162_v17  ;;  %v5394_v17 = vld [vmem:[#allocation2 + $0x424] sm:$0xf] }
 0x117   :  { %2843 = vmatpush.bf16.msrb.mxu0 %v3805_v35  ;;  %v5416_v35 = vld [vmem:[#allocation2 + $0x4d4] sm:$0xf]  ;;  %v4293_v25 = vor.u32 %v5450_v8, %v4290_v28  ;;  %v4269_v8 = vor.u32 %v5444_v7, %v4266_v10 }
 0x118   :  { %2856 = vmatpush.bf16.msrb.mxu1 %v3869_v41  ;;  %v5432_v41 = vld [vmem:[#allocation2 + $0x554] sm:$0xf] }
 0x119   :  { %2869 = vmatpush.bf16.msrb.mxu2 %v3933_v42  ;;  %v4218_v42 = vld [vmem:[#allocation2 + $0x558] sm:$0xf0] }
 0x11a   :  { %2882 = vmatpush.bf16.msrb.mxu3 %v3997_v47  ;;  %v4157_v47 = vor.u32 %v5416_v35, %v4154_v39  ;;  %v4221_v48 = vor.u32 %v5432_v41, %v4218_v42  ;;  %v5442_v35 = vld [vmem:[#allocation2 + $0x5a4] sm:$0xf]  ;;  %v4069_v41 = vor.u32 %v5394_v17, %v4066_v21 }
 0x11b   :  { %2844 = vmatpush.bf16.msrb.mxu0 %v3797_v55  ;;  %v2638_v54 = vpop.f32.mrf.mxu0  ;;  %v4274_v55 = vld [vmem:[#allocation2 + $0x5c8] sm:$0xf0] }
 0x11c   :  { %2857 = vmatpush.bf16.msrb.mxu1 %v3861_v59  ;;  %v5396_v59 = vld [vmem:[#allocation2 + $0x434] sm:$0xf] }
 0x11d   :  { %2870 = vmatpush.bf16.msrb.mxu2 %v3925_v60  ;;  %v4074_v60 = vld [vmem:[#allocation2 + $0x438] sm:$0xf0] }
 0x11e   :  { %2883 = vmatpush.bf16.msrb.mxu3 %v3989_v0  ;;  %2845 = vmatmul.bf16.vlgmr.msrb.gmra.mxu0 %v5992_v37  ;;  %v5446_v37 = vld [vmem:[#allocation2 + $0x5c4] sm:$0xf]  ;;  %v4077_v11 = vor.u32 %v5396_v59, %v4074_v60  ;;  %v4253_v59 = vor.u32 %v5440_v53, %v4250_v43  ;;  %v4178_v60 = vld [vmem:[#allocation2 + $0x508] sm:$0xf0]  ;;  %v4410_v53 = vld [vmem:[#allocation2 + $0x6d8] sm:$0xf0] }
 0x11f   :  { %2889 = vmatpush.bf16.msra.mxu0 %v4109_v3  ;;  %2858 = vmatmul.bf16.vlgmr.msrb.gmra.mxu1 %v5996_v40  ;;  %v2651_v40 = vpop.f32.mrf.mxu1  ;;  %v4277_v63 = vor.u32 %v5446_v37, %v4274_v55  ;;  %v4138_v3 = vld [vmem:[#allocation2 + $0x4b8] sm:$0xf0]  ;;  %v5390_v37 = vld [vmem:[#allocation2 + $0x404] sm:$0xf]  ;;  %v4050_v55 = vld [vmem:[#allocation2 + $0x408] sm:$0xf0] }
 0x120   :  { %2902 = vmatpush.bf16.msra.mxu1 %v4173_v4  ;;  %2871 = vmatmul.bf16.vlgmr.msrb.gmra.mxu2 %v5990_v34  ;;  %v5414_v34 = vld [vmem:[#allocation2 + $0x4c4] sm:$0xf]  ;;  %v5428_v4 = vld [vmem:[#allocation2 + $0x534] sm:$0xf]  ;;  %v4053_v10 = vor.u32 %v5390_v37, %v4050_v55  ;;  %v4538_v55 = vld [vmem:[#allocation2 + $0x7d8] sm:$0xf0] }
 0x121   :  { %2915 = vmatpush.bf16.msra.mxu2 %v4237_v6  ;;  %2884 = vmatmul.bf16.vlgmr.msrb.gmra.mxu3 %v5994_v38  ;;  %v2639_v38 = vadd.f32 %v2638_v54, %v6108_v14  ;;  %v4149_v57 = vor.u32 %v5414_v34, %v4146_v52  ;;  %v4202_v6 = vld [vmem:[#allocation2 + $0x538] sm:$0xf0]  ;;  %v4141_v14 = vor.u32 %v5412_v62, %v4138_v3  ;;  %v5438_v62 = vld [vmem:[#allocation2 + $0x584] sm:$0xf]  ;;  %v5468_v3 = vld [vmem:[#allocation2 + $0x674] sm:$0xf] }
 0x122   :  { %2928 = vmatpush.bf16.msra.mxu3 %v4301_v16  ;;  %v4205_v16 = vor.u32 %v5428_v4, %v4202_v6  ;;  %v4122_v34 = vld [vmem:[#allocation2 + $0x498] sm:$0xf0]  ;;  %v5484_v6 = vld [vmem:[#allocation2 + $0x6f4] sm:$0xf] }
 0x123   :  { %2890 = vmatpush.bf16.msra.mxu0 %v4101_v29  ;;  %v2652_v0 = vadd.f32 %v2651_v40, %v2639_v38  ;;  %v2664_v28 = vpop.f32.mrf.mxu2  ;;  %v4130_v29 = vld [vmem:[#allocation2 + $0x4a8] sm:$0xf0]  ;;  %v2640_v39 = vpop.f32.mrf.mxu0  ;;  %v4186_v52 = vld [vmem:[#allocation2 + $0x518] sm:$0xf0]  ;;  %v4125_v38 = vor.u32 %v5408_v49, %v4122_v34  ;;  %v5406_v40 = vld [vmem:[#allocation2 + $0x484] sm:$0xf] }
 0x124   :  { %2903 = vmatpush.bf16.msra.mxu1 %v4165_v30  ;;  %v5426_v30 = vld [vmem:[#allocation2 + $0x524] sm:$0xf]  ;;  %v2677_v15 = vpop.f32.mrf.mxu3  ;;  %v4133_v45 = vor.u32 %v5410_v12, %v4130_v29  ;;  %v4362_v4 = vld [vmem:[#allocation2 + $0x678] sm:$0xf0]  ;;  %v5516_v12 = vld [vmem:[#allocation2 + $0x7f4] sm:$0xf] }
 0x125   :  { %2916 = vmatpush.bf16.msra.mxu2 %v4229_v9  ;;  %v4194_v9 = vld [vmem:[#allocation2 + $0x528] sm:$0xf0]  ;;  %v2665_v33 = vadd.f32 %v2664_v28, %v2652_v0  ;;  %v4365_v29 = vor.u32 %v5468_v3, %v4362_v4  ;;  %v4346_v34 = vld [vmem:[#allocation2 + $0x658] sm:$0xf0]  ;;  %v5496_v43 = vld [vmem:[#allocation2 + $0x754] sm:$0xf] }
 0x126   :  { %2929 = vmatpush.bf16.msra.mxu3 %v4293_v25  ;;  %v4258_v25 = vld [vmem:[#allocation2 + $0x5a8] sm:$0xf0]  ;;  %v5512_v37 = vld [vmem:[#allocation2 + $0x7d4] sm:$0xf] }
 0x127   :  { %2891 = vmatpush.bf16.msra.mxu0 %v4093_v46  ;;  %v2653_v42 = vpop.f32.mrf.mxu1  ;;  %v6115_v44 = vadd.f32 %v2677_v15, %v2665_v33  ;;  %v4197_v46 = vor.u32 %v5426_v30, %v4194_v9  ;;  %v4261_v50 = vor.u32 %v5442_v35, %v4258_v25  ;;  %v5466_v33 = vld [vmem:[#allocation2 + $0x664] sm:$0xf]  ;;  %v4354_v15 = vld [vmem:[#allocation2 + $0x668] sm:$0xf0] }
 0x128   :  { %2904 = vmatpush.bf16.msra.mxu1 %v4157_v47  ;;  %v5392_v47 = vld [vmem:[#allocation2 + $0x414] sm:$0xf]  ;;  %v5482_v35 = vld [vmem:[#allocation2 + $0x6e4] sm:$0xf]  ;;  %v4418_v39 = vld [vmem:[#allocation2 + $0x6e8] sm:$0xf0] }
 0x129   :  { %2917 = vmatpush.bf16.msra.mxu2 %v4221_v48  ;;  %v4058_v48 = vld [vmem:[#allocation2 + $0x418] sm:$0xf0]  ;;  %v4482_v42 = vld [vmem:[#allocation2 + $0x768] sm:$0xf0] }
 0x12a   :  { %2930 = vmatpush.bf16.msra.mxu3 %v4285_v51  ;;  %v5424_v51 = vld [vmem:[#allocation2 + $0x514] sm:$0xf]  ;;  %v4061_v54 = vor.u32 %v5392_v47, %v4058_v48  ;;  %v4357_v47 = vor.u32 %v5466_v33, %v4354_v15  ;;  %v4421_v48 = vor.u32 %v5482_v35, %v4418_v39  ;;  %v5458_v33 = vld [vmem:[#allocation2 + $0x624] sm:$0xf]  ;;  %v4322_v15 = vld [vmem:[#allocation2 + $0x628] sm:$0xf0] }
 0x12b   :  { %2892 = vmatpush.bf16.msra.mxu0 %v4085_v56  ;;  %v4189_v56 = vor.u32 %v5424_v51, %v4186_v52  ;;  %v2666_v0 = vpop.f32.mrf.mxu2  ;;  %v5480_v51 = vld [vmem:[#allocation2 + $0x6d4] sm:$0xf]  ;;  %v5474_v35 = vld [vmem:[#allocation2 + $0x6a4] sm:$0xf] }
 0x12c   :  { %2905 = vmatpush.bf16.msra.mxu1 %v4149_v57  ;;  %v4114_v57 = vld [vmem:[#allocation2 + $0x488] sm:$0xf0]  ;;  %v2679_v7 = vpop.f32.mrf.mxu3 }
 0x12d   :  { %2918 = vmatpush.bf16.msra.mxu2 %v4213_v58  ;;  %v5422_v58 = vld [vmem:[#allocation2 + $0x504] sm:$0xf]  ;;  %v4117_v17 = vor.u32 %v5406_v40, %v4114_v57  ;;  %v4530_v0 = vld [vmem:[#allocation2 + $0x7c8] sm:$0xf0] }
 0x12e   :  { %2931 = vmatpush.bf16.msra.mxu3 %v4277_v63  ;;  %v4242_v63 = vld [vmem:[#allocation2 + $0x588] sm:$0xf0]  ;;  %v4181_v21 = vor.u32 %v5422_v58, %v4178_v60  ;;  %v5462_v57 = vld [vmem:[#allocation2 + $0x644] sm:$0xf] }
 0x12f   :  { %2893 = vmatpush.bf16.msra.mxu0 %v4077_v11  ;;  %v4426_v11 = vld [vmem:[#allocation2 + $0x6f8] sm:$0xf0]  ;;  %v4245_v28 = vor.u32 %v5438_v62, %v4242_v63  ;;  %v5478_v58 = vld [vmem:[#allocation2 + $0x6c4] sm:$0xf]  ;;  %v4402_v60 = vld [vmem:[#allocation2 + $0x6c8] sm:$0xf0] }
 0x130   :  { %2906 = vmatpush.bf16.msra.mxu1 %v4141_v14  ;;  %v5500_v14 = vld [vmem:[#allocation2 + $0x774] sm:$0xf]  ;;  %v4429_v30 = vor.u32 %v5484_v6, %v4426_v11  ;;  %v5494_v62 = vld [vmem:[#allocation2 + $0x744] sm:$0xf]  ;;  %v4405_v6 = vor.u32 %v5478_v58, %v4402_v60  ;;  %v4330_v11 = vld [vmem:[#allocation2 + $0x638] sm:$0xf0] }
 0x131   :  { %2919 = vmatpush.bf16.msra.mxu2 %v4205_v16  ;;  %v4490_v16 = vld [vmem:[#allocation2 + $0x778] sm:$0xf0]  ;;  %v5454_v60 = vld [vmem:[#allocation2 + $0x604] sm:$0xf] }
 0x132   :  { %2932 = vmatpush.bf16.msra.mxu3 %v4269_v8  ;;  %v4554_v8 = vld [vmem:[#allocation2 + $0x7f8] sm:$0xf0]  ;;  %v4493_v9 = vor.u32 %v5500_v14, %v4490_v16  ;;  %v5476_v14 = vld [vmem:[#allocation2 + $0x6b4] sm:$0xf] }
 0x133   :  { %2894 = vmatpush.bf16.msra.mxu0 %v4069_v41  ;;  %v4557_v25 = vor.u32 %v5516_v12, %v4554_v8  ;;  %v5498_v41 = vld [vmem:[#allocation2 + $0x764] sm:$0xf]  ;;  %v5492_v12 = vld [vmem:[#allocation2 + $0x734] sm:$0xf]  ;;  %v4458_v8 = vld [vmem:[#allocation2 + $0x738] sm:$0xf0] }
 0x134   :  { %2907 = vmatpush.bf16.msra.mxu1 %v4133_v45  ;;  %v5514_v45 = vld [vmem:[#allocation2 + $0x7e4] sm:$0xf]  ;;  %v4485_v49 = vor.u32 %v5498_v41, %v4482_v42  ;;  %v4386_v41 = vld [vmem:[#allocation2 + $0x6a8] sm:$0xf0]  ;;  %v4506_v58 = vld [vmem:[#allocation2 + $0x798] sm:$0xf0] }
 0x135   :  { %2920 = vmatpush.bf16.msra.mxu2 %v4197_v46  ;;  %v4546_v46 = vld [vmem:[#allocation2 + $0x7e8] sm:$0xf0]  ;;  %v5490_v42 = vld [vmem:[#allocation2 + $0x724] sm:$0xf] }
 0x136   :  { %2933 = vmatpush.bf16.msra.mxu3 %v4261_v50  ;;  %v5464_v50 = vld [vmem:[#allocation2 + $0x654] sm:$0xf]  ;;  %v4549_v52 = vor.u32 %v5514_v45, %v4546_v46  ;;  %v4450_v45 = vld [vmem:[#allocation2 + $0x728] sm:$0xf0] }
 0x137   :  { %2895 = vmatpush.bf16.msra.mxu0 %v4061_v54  ;;  %v4474_v54 = vld [vmem:[#allocation2 + $0x758] sm:$0xf0] }
 0x138   :  { %2908 = vmatpush.bf16.msra.mxu1 %v4125_v38  ;;  %v4349_v38 = vor.u32 %v5464_v50, %v4346_v34  ;;  %v4477_v40 = vor.u32 %v5496_v43, %v4474_v54  ;;  %v4325_v34 = vor.u32 %v5458_v33, %v4322_v15  ;;  %v4453_v43 = vor.u32 %v5490_v42, %v4450_v45  ;;  %v5456_v54 = vld [vmem:[#allocation2 + $0x614] sm:$0xf]  ;;  %v5546_v42 = vld [vmem:[#allocation2 + $0x8e4] sm:$0xf] }
 0x139   :  { %2921 = vmatpush.bf16.msra.mxu2 %v4189_v56  ;;  %v4413_v56 = vor.u32 %v5480_v51, %v4410_v53  ;;  %v4389_v53 = vor.u32 %v5474_v35, %v4386_v41  ;;  %v4610_v41 = vld [vmem:[#allocation2 + $0x868] sm:$0xf0] }
 0x13a   :  { %2934 = vmatpush.bf16.msra.mxu3 %v4253_v59  ;;  %v4541_v59 = vor.u32 %v5512_v37, %v4538_v55  ;;  %v4314_v37 = vld [vmem:[#allocation2 + $0x618] sm:$0xf0]  ;;  %v5472_v55 = vld [vmem:[#allocation2 + $0x694] sm:$0xf] }
 0x13b   :  { %2896 = vmatpush.bf16.msra.mxu0 %v4053_v10  ;;  %v2690_v63 = vpop.f32.mrf.mxu0  ;;  %v5460_v10 = vld [vmem:[#allocation2 + $0x634] sm:$0xf] }
 0x13c   :  { %2909 = vmatpush.bf16.msra.mxu1 %v4117_v17  ;;  %v2703_v4 = vpop.f32.mrf.mxu1 }
 0x13d   :  { %2922 = vmatpush.bf16.msra.mxu2 %v4181_v21  ;;  %v4394_v21 = vld [vmem:[#allocation2 + $0x6b8] sm:$0xf0] }
 0x13e   :  { %2935 = vmatpush.bf16.msra.mxu3 %v4245_v28  ;;  %2897 = vmatmul.bf16.vlgmr.msra.gmra.mxu0 %v6014_v18  ;;  %v4338_v18 = vld [vmem:[#allocation2 + $0x648] sm:$0xf0]  ;;  %v5508_v28 = vld [vmem:[#allocation2 + $0x7b4] sm:$0xf] }
 0x13f   :  { %2941 = vmatpush.bf16.msrb.mxu0 %v4365_v29  ;;  %2910 = vmatmul.bf16.vlgmr.msra.gmra.mxu1 %v6018_v23  ;;  %v5510_v23 = vld [vmem:[#allocation2 + $0x7c4] sm:$0xf]  ;;  %v4341_v3 = vor.u32 %v5462_v57, %v4338_v18  ;;  %v4522_v29 = vld [vmem:[#allocation2 + $0x7b8] sm:$0xf0]  ;;  %v5504_v18 = vld [vmem:[#allocation2 + $0x794] sm:$0xf] }
 0x140   :  { %2954 = vmatpush.bf16.msrb.mxu1 %v4429_v30  ;;  %2923 = vmatmul.bf16.vlgmr.msra.gmra.mxu2 %v6016_v22  ;;  %v4466_v22 = vld [vmem:[#allocation2 + $0x748] sm:$0xf0]  ;;  %v4533_v16 = vor.u32 %v5510_v23, %v4530_v0  ;;  %v4333_v30 = vor.u32 %v5460_v10, %v4330_v11  ;;  %v4442_v57 = vld [vmem:[#allocation2 + $0x718] sm:$0xf0]  ;;  %v5470_v23 = vld [vmem:[#allocation2 + $0x684] sm:$0xf] }
 0x141   :  { %2967 = vmatpush.bf16.msrb.mxu2 %v4493_v9  ;;  %2936 = vmatmul.bf16.vlgmr.msra.gmra.mxu3 %v6020_v27  ;;  %v2691_v27 = vadd.f32 %v2690_v63, %v6115_v44  ;;  %v4469_v7 = vor.u32 %v5494_v62, %v4466_v22  ;;  %v4397_v44 = vor.u32 %v5476_v14, %v4394_v21  ;;  %v4306_v62 = vld [vmem:[#allocation2 + $0x608] sm:$0xf0]  ;;  %v5532_v11 = vld [vmem:[#allocation2 + $0x874] sm:$0xf]  ;;  %v4618_v14 = vld [vmem:[#allocation2 + $0x878] sm:$0xf0] }
 0x142   :  { %2980 = vmatpush.bf16.msrb.mxu3 %v4557_v25  ;;  %v4461_v9 = vor.u32 %v5492_v12, %v4458_v8  ;;  %v4525_v25 = vor.u32 %v5508_v28, %v4522_v29  ;;  %v4370_v0 = vld [vmem:[#allocation2 + $0x688] sm:$0xf0]  ;;  %v4309_v21 = vor.u32 %v5454_v60, %v4306_v62  ;;  %v4682_v12 = vld [vmem:[#allocation2 + $0x8f8] sm:$0xf0]  ;;  %v5564_v8 = vld [vmem:[#allocation2 + $0x974] sm:$0xf]  ;;  %v4621_v15 = vor.u32 %v5532_v11, %v4618_v14 }
 0x143   :  { %2942 = vmatpush.bf16.msrb.mxu0 %v4357_v47  ;;  %v2704_v17 = vadd.f32 %v2703_v4, %v2691_v27  ;;  %v2716_v39 = vpop.f32.mrf.mxu2  ;;  %v2692_v50 = vpop.f32.mrf.mxu0  ;;  %v5486_v27 = vld [vmem:[#allocation2 + $0x704] sm:$0xf]  ;;  %v4434_v4 = vld [vmem:[#allocation2 + $0x708] sm:$0xf0]  ;;  %v4746_v28 = vld [vmem:[#allocation2 + $0x978] sm:$0xf0]  ;;  %v4373_v29 = vor.u32 %v5470_v23, %v4370_v0 }
 0x144   :  { %2955 = vmatpush.bf16.msrb.mxu1 %v4421_v48  ;;  %v2729_v47 = vpop.f32.mrf.mxu3  ;;  %v5506_v48 = vld [vmem:[#allocation2 + $0x7a4] sm:$0xf]  ;;  %v2705_v51 = vpop.f32.mrf.mxu1  ;;  %v4802_v50 = vld [vmem:[#allocation2 + $0x9e8] sm:$0xf0]  ;;  %v5524_v11 = vld [vmem:[#allocation2 + $0x834] sm:$0xf] }
 0x145   :  { %2968 = vmatpush.bf16.msrb.mxu2 %v4485_v49  ;;  %v2717_v46 = vadd.f32 %v2716_v39, %v2704_v17  ;;  %v4514_v49 = vld [vmem:[#allocation2 + $0x7a8] sm:$0xf0]  ;;  %v5530_v39 = vld [vmem:[#allocation2 + $0x864] sm:$0xf]  ;;  %v4586_v14 = vld [vmem:[#allocation2 + $0x838] sm:$0xf0] }
 0x146   :  { %2981 = vmatpush.bf16.msrb.mxu3 %v4549_v52  ;;  %v5526_v62 = vld [vmem:[#allocation2 + $0x844] sm:$0xf]  ;;  %v4658_v23 = vld [vmem:[#allocation2 + $0x8c8] sm:$0xf0] }
 0x147   :  { %2943 = vmatpush.bf16.msrb.mxu0 %v4349_v38  ;;  %v6122_v52 = vadd.f32 %v2729_v47, %v2717_v46  ;;  %v4517_v38 = vor.u32 %v5506_v48, %v4514_v49  ;;  %v4674_v46 = vld [vmem:[#allocation2 + $0x8e8] sm:$0xf0]  ;;  %v5562_v47 = vld [vmem:[#allocation2 + $0x964] sm:$0xf] }
 0x148   :  { %2956 = vmatpush.bf16.msrb.mxu1 %v4413_v56  ;;  %v4378_v56 = vld [vmem:[#allocation2 + $0x698] sm:$0xf0]  ;;  %v4738_v48 = vld [vmem:[#allocation2 + $0x968] sm:$0xf0]  ;;  %v5578_v49 = vld [vmem:[#allocation2 + $0x9e4] sm:$0xf]  ;;  %v4677_v51 = vor.u32 %v5546_v42, %v4674_v46 }
 0x149   :  { %2969 = vmatpush.bf16.msrb.mxu2 %v4477_v40  ;;  %v5488_v40 = vld [vmem:[#allocation2 + $0x714] sm:$0xf]  ;;  %v4381_v22 = vor.u32 %v5472_v55, %v4378_v56  ;;  %v4805_v55 = vor.u32 %v5578_v49, %v4802_v50  ;;  %v5558_v0 = vld [vmem:[#allocation2 + $0x944] sm:$0xf]  ;;  %v4770_v49 = vld [vmem:[#allocation2 + $0x9a8] sm:$0xf0] }
 0x14a   :  { %2982 = vmatpush.bf16.msrb.mxu3 %v4541_v59  ;;  %v4317_v59 = vor.u32 %v5456_v54, %v4314_v37  ;;  %v4445_v63 = vor.u32 %v5488_v40, %v4442_v57  ;;  %v4602_v54 = vld [vmem:[#allocation2 + $0x858] sm:$0xf0]  ;;  %v5544_v37 = vld [vmem:[#allocation2 + $0x8d4] sm:$0xf]  ;;  %v5554_v42 = vld [vmem:[#allocation2 + $0x924] sm:$0xf] }
 0x14b   :  { %2944 = vmatpush.bf16.msrb.mxu0 %v4341_v3  ;;  %v4509_v3 = vor.u32 %v5504_v18, %v4506_v58  ;;  %v2718_v10 = vpop.f32.mrf.mxu2  ;;  %v5560_v56 = vld [vmem:[#allocation2 + $0x954] sm:$0xf]  ;;  %v4730_v40 = vld [vmem:[#allocation2 + $0x958] sm:$0xf0] }
 0x14c   :  { %2957 = vmatpush.bf16.msrb.mxu1 %v4405_v6  ;;  %v5502_v6 = vld [vmem:[#allocation2 + $0x784] sm:$0xf]  ;;  %v2731_v17 = vpop.f32.mrf.mxu3  ;;  %v5576_v57 = vld [vmem:[#allocation2 + $0x9d4] sm:$0xf]  ;;  %v4794_v18 = vld [vmem:[#allocation2 + $0x9d8] sm:$0xf0]  ;;  %v4733_v60 = vor.u32 %v5560_v56, %v4730_v40 }
 0x14d   :  { %2970 = vmatpush.bf16.msrb.mxu2 %v4469_v7  ;;  %v4498_v7 = vld [vmem:[#allocation2 + $0x788] sm:$0xf0]  ;;  %v4634_v40 = vld [vmem:[#allocation2 + $0x898] sm:$0xf0] }
 0x14e   :  { %2983 = vmatpush.bf16.msrb.mxu3 %v4533_v16  ;;  %v5548_v16 = vld [vmem:[#allocation2 + $0x8f4] sm:$0xf]  ;;  %v4501_v33 = vor.u32 %v5502_v6, %v4498_v7 }
 0x14f   :  { %2945 = vmatpush.bf16.msrb.mxu0 %v4333_v30  ;;  %v4437_v30 = vor.u32 %v5486_v27, %v4434_v4  ;;  %v4685_v35 = vor.u32 %v5548_v16, %v4682_v12  ;;  %v5540_v16 = vld [vmem:[#allocation2 + $0x8b4] sm:$0xf]  ;;  %v4650_v12 = vld [vmem:[#allocation2 + $0x8b8] sm:$0xf0] }
 0x150   :  { %2958 = vmatpush.bf16.msrb.mxu1 %v4397_v44  ;;  %v5580_v44 = vld [vmem:[#allocation2 + $0x9f4] sm:$0xf] }
 0x151   :  { %2971 = vmatpush.bf16.msrb.mxu2 %v4461_v9  ;;  %v4810_v9 = vld [vmem:[#allocation2 + $0x9f8] sm:$0xf0] }
 0x152   :  { %2984 = vmatpush.bf16.msrb.mxu3 %v4525_v25  ;;  %v4749_v25 = vor.u32 %v5564_v8, %v4746_v28  ;;  %v4813_v45 = vor.u32 %v5580_v44, %v4810_v9  ;;  %v5556_v8 = vld [vmem:[#allocation2 + $0x934] sm:$0xf]  ;;  %v4714_v28 = vld [vmem:[#allocation2 + $0x938] sm:$0xf0]  ;;  %v4589_v44 = vor.u32 %v5524_v11, %v4586_v14 }
 0x153   :  { %2946 = vmatpush.bf16.msrb.mxu0 %v4325_v34  ;;  %v4613_v34 = vor.u32 %v5530_v39, %v4610_v41  ;;  %v4717_v9 = vor.u32 %v5556_v8, %v4714_v28  ;;  %v4642_v41 = vld [vmem:[#allocation2 + $0x8a8] sm:$0xf0]  ;;  %v5644_v28 = vld [vmem:[#allocation2 + $0xbf4] sm:$0xf] }
 0x154   :  { %2959 = vmatpush.bf16.msrb.mxu1 %v4389_v53  ;;  %v4741_v53 = vor.u32 %v5562_v47, %v4738_v48  ;;  %v5570_v48 = vld [vmem:[#allocation2 + $0x9a4] sm:$0xf] }
 0x155   :  { %2972 = vmatpush.bf16.msrb.mxu2 %v4453_v43  ;;  %v5528_v43 = vld [vmem:[#allocation2 + $0x854] sm:$0xf]  ;;  %v4773_v56 = vor.u32 %v5570_v48, %v4770_v49 }
 0x156   :  { %2985 = vmatpush.bf16.msrb.mxu3 %v4517_v38  ;;  %v4666_v38 = vld [vmem:[#allocation2 + $0x8d8] sm:$0xf0]  ;;  %v4605_v58 = vor.u32 %v5528_v43, %v4602_v54 }
 0x157   :  { %2947 = vmatpush.bf16.msrb.mxu0 %v4317_v59  ;;  %v4669_v59 = vor.u32 %v5544_v37, %v4666_v38  ;;  %v5520_v37 = vld [vmem:[#allocation2 + $0x814] sm:$0xf] }
 0x158   :  { %2960 = vmatpush.bf16.msrb.mxu1 %v4381_v22  ;;  %v5542_v22 = vld [vmem:[#allocation2 + $0x8c4] sm:$0xf]  ;;  %v5536_v38 = vld [vmem:[#allocation2 + $0x894] sm:$0xf] }
 0x159   :  { %2973 = vmatpush.bf16.msrb.mxu2 %v4445_v63  ;;  %v4797_v63 = vor.u32 %v5576_v57, %v4794_v18  ;;  %v4661_v7 = vor.u32 %v5542_v22, %v4658_v23  ;;  %v5552_v57 = vld [vmem:[#allocation2 + $0x914] sm:$0xf]  ;;  %v4698_v18 = vld [vmem:[#allocation2 + $0x918] sm:$0xf0]  ;;  %v4637_v22 = vor.u32 %v5536_v38, %v4634_v40  ;;  %v5534_v23 = vld [vmem:[#allocation2 + $0x884] sm:$0xf] }
 0x15a   :  { %2986 = vmatpush.bf16.msrb.mxu3 %v4509_v3  ;;  %v4786_v3 = vld [vmem:[#allocation2 + $0x9c8] sm:$0xf0]  ;;  %v5640_v38 = vld [vmem:[#allocation2 + $0xbd4] sm:$0xf] }
 0x15b   :  { %2948 = vmatpush.bf16.msrb.mxu0 %v4309_v21  ;;  %v2742_v27 = vpop.f32.mrf.mxu0 }
 0x15c   :  { %2961 = vmatpush.bf16.msrb.mxu1 %v4373_v29  ;;  %v2755_v6 = vpop.f32.mrf.mxu1  ;;  %v5572_v29 = vld [vmem:[#allocation2 + $0x9b4] sm:$0xf] }
 0x15d   :  { %2974 = vmatpush.bf16.msrb.mxu2 %v4437_v30  ;;  %v4778_v30 = vld [vmem:[#allocation2 + $0x9b8] sm:$0xf0] }
 0x15e   :  { %2987 = vmatpush.bf16.msrb.mxu3 %v4501_v33  ;;  %2949 = vmatmul.bf16.vlgmr.msrb.gmra.mxu0 %v6038_v13  ;;  %v4594_v13 = vld [vmem:[#allocation2 + $0x848] sm:$0xf0]  ;;  %v5522_v33 = vld [vmem:[#allocation2 + $0x824] sm:$0xf] }
 0x15f   :  { %2993 = vmatpush.bf16.msra.mxu0 %v4621_v15  ;;  %2962 = vmatmul.bf16.vlgmr.msrb.gmra.mxu1 %v6042_v20  ;;  %v5574_v20 = vld [vmem:[#allocation2 + $0x9c4] sm:$0xf]  ;;  %v4597_v4 = vor.u32 %v5526_v62, %v4594_v13  ;;  %v4578_v15 = vld [vmem:[#allocation2 + $0x828] sm:$0xf0] }
 0x160   :  { %3006 = vmatpush.bf16.msra.mxu1 %v4685_v35  ;;  %2975 = vmatmul.bf16.vlgmr.msrb.gmra.mxu2 %v6040_v19  ;;  %v4722_v19 = vld [vmem:[#allocation2 + $0x948] sm:$0xf0]  ;;  %v4789_v17 = vor.u32 %v5574_v20, %v4786_v3  ;;  %v5538_v35 = vld [vmem:[#allocation2 + $0x8a4] sm:$0xf] }
 0x161   :  { %3019 = vmatpush.bf16.msra.mxu2 %v4749_v25  ;;  %2988 = vmatmul.bf16.vlgmr.msrb.gmra.mxu3 %v6044_v26  ;;  %v2743_v26 = vadd.f32 %v2742_v27, %v6122_v52  ;;  %v4725_v10 = vor.u32 %v5558_v0, %v4722_v19  ;;  %v4653_v52 = vor.u32 %v5540_v16, %v4650_v12  ;;  %v5518_v62 = vld [vmem:[#allocation2 + $0x804] sm:$0xf]  ;;  %v4562_v13 = vld [vmem:[#allocation2 + $0x808] sm:$0xf0]  ;;  %v4938_v16 = vld [vmem:[#allocation2 + $0xaf8] sm:$0xf0] }
 0x162   :  { %3032 = vmatpush.bf16.msra.mxu3 %v4813_v45  ;;  %v4781_v25 = vor.u32 %v5572_v29, %v4778_v30  ;;  %v4706_v45 = vld [vmem:[#allocation2 + $0x928] sm:$0xf0]  ;;  %v4645_v43 = vor.u32 %v5538_v35, %v4642_v41  ;;  %v5550_v19 = vld [vmem:[#allocation2 + $0x904] sm:$0xf]  ;;  %v4565_v14 = vor.u32 %v5518_v62, %v4562_v13  ;;  %v5066_v29 = vld [vmem:[#allocation2 + $0xbf8] sm:$0xf0] }
 0x163   :  { %2994 = vmatpush.bf16.msra.mxu0 %v4613_v34  ;;  %v2756_v21 = vadd.f32 %v2755_v6, %v2743_v26  ;;  %v2768_v39 = vpop.f32.mrf.mxu2  ;;  %v2744_v50 = vpop.f32.mrf.mxu0  ;;  %v4581_v34 = vor.u32 %v5522_v33, %v4578_v15  ;;  %v4709_v54 = vor.u32 %v5554_v42, %v4706_v45  ;;  %v4626_v0 = vld [vmem:[#allocation2 + $0x888] sm:$0xf0]  ;;  %v5566_v3 = vld [vmem:[#allocation2 + $0x984] sm:$0xf]  ;;  %v5596_v6 = vld [vmem:[#allocation2 + $0xa74] sm:$0xf] }
 0x164   :  { %3007 = vmatpush.bf16.msra.mxu1 %v4677_v51  ;;  %v2781_v47 = vpop.f32.mrf.mxu3  ;;  %v2757_v51 = vpop.f32.mrf.mxu1  ;;  %v4690_v20 = vld [vmem:[#allocation2 + $0x908] sm:$0xf0]  ;;  %v4629_v12 = vor.u32 %v5534_v23, %v4626_v0  ;;  %v5594_v33 = vld [vmem:[#allocation2 + $0xa64] sm:$0xf]  ;;  %v5592_v50 = vld [vmem:[#allocation2 + $0xa54] sm:$0xf] }
 0x165   :  { %3020 = vmatpush.bf16.msra.mxu2 %v4741_v53  ;;  %v2769_v46 = vadd.f32 %v2768_v39, %v2756_v21  ;;  %v4754_v26 = vld [vmem:[#allocation2 + $0x988] sm:$0xf0]  ;;  %v5002_v21 = vld [vmem:[#allocation2 + $0xb78] sm:$0xf0]  ;;  %v4693_v8 = vor.u32 %v5550_v19, %v4690_v20  ;;  %v5610_v35 = vld [vmem:[#allocation2 + $0xae4] sm:$0xf] }
 0x166   :  { %3033 = vmatpush.bf16.msra.mxu3 %v4805_v55  ;;  %v4570_v55 = vld [vmem:[#allocation2 + $0x818] sm:$0xf0]  ;;  %v4757_v30 = vor.u32 %v5566_v3, %v4754_v26  ;;  %v4866_v15 = vld [vmem:[#allocation2 + $0xa68] sm:$0xf0]  ;;  %v5626_v41 = vld [vmem:[#allocation2 + $0xb64] sm:$0xf] }
 0x167   :  { %2995 = vmatpush.bf16.msra.mxu0 %v4605_v58  ;;  %v6129_v53 = vadd.f32 %v2781_v47, %v2769_v46  ;;  %v5568_v58 = vld [vmem:[#allocation2 + $0x994] sm:$0xf]  ;;  %v4930_v39 = vld [vmem:[#allocation2 + $0xae8] sm:$0xf0]  ;;  %v5642_v45 = vld [vmem:[#allocation2 + $0xbe4] sm:$0xf]  ;;  %v4869_v47 = vor.u32 %v5594_v33, %v4866_v15 }
 0x168   :  { %3008 = vmatpush.bf16.msra.mxu1 %v4669_v59  ;;  %v4762_v59 = vld [vmem:[#allocation2 + $0x998] sm:$0xf0]  ;;  %v4994_v42 = vld [vmem:[#allocation2 + $0xb68] sm:$0xf0]  ;;  %v4933_v48 = vor.u32 %v5610_v35, %v4930_v39  ;;  %v5608_v51 = vld [vmem:[#allocation2 + $0xad4] sm:$0xf] }
 0x169   :  { %3021 = vmatpush.bf16.msra.mxu2 %v4733_v60  ;;  %v4573_v60 = vor.u32 %v5520_v37, %v4570_v55  ;;  %v4765_v27 = vor.u32 %v5568_v58, %v4762_v59  ;;  %v5058_v46 = vld [vmem:[#allocation2 + $0xbe8] sm:$0xf0]  ;;  %v4997_v49 = vor.u32 %v5626_v41, %v4994_v42  ;;  %v5624_v37 = vld [vmem:[#allocation2 + $0xb54] sm:$0xf]  ;;  %v4986_v55 = vld [vmem:[#allocation2 + $0xb58] sm:$0xf0] }
 0x16a   :  { %3034 = vmatpush.bf16.msra.mxu3 %v4797_v63  ;;  %v4701_v63 = vor.u32 %v5552_v57, %v4698_v18  ;;  %v5590_v57 = vld [vmem:[#allocation2 + $0xa44] sm:$0xf]  ;;  %v4989_v58 = vor.u32 %v5624_v37, %v4986_v55  ;;  %v5042_v23 = vld [vmem:[#allocation2 + $0xbc8] sm:$0xf0]  ;;  %v5588_v20 = vld [vmem:[#allocation2 + $0xa34] sm:$0xf] }
 0x16b   :  { %2996 = vmatpush.bf16.msra.mxu0 %v4597_v4  ;;  %v2770_v4 = vpop.f32.mrf.mxu2  ;;  %v5606_v59 = vld [vmem:[#allocation2 + $0xac4] sm:$0xf]  ;;  %v4842_v3 = vld [vmem:[#allocation2 + $0xa38] sm:$0xf0]  ;;  %v5604_v26 = vld [vmem:[#allocation2 + $0xab4] sm:$0xf] }
 0x16c   :  { %3009 = vmatpush.bf16.msra.mxu1 %v4661_v7  ;;  %v4874_v7 = vld [vmem:[#allocation2 + $0xa78] sm:$0xf0]  ;;  %v2783_v11 = vpop.f32.mrf.mxu3  ;;  %v4898_v33 = vld [vmem:[#allocation2 + $0xaa8] sm:$0xf0]  ;;  %v5618_v15 = vld [vmem:[#allocation2 + $0xb24] sm:$0xf] }
 0x16d   :  { %3022 = vmatpush.bf16.msra.mxu2 %v4725_v10  ;;  %v5612_v10 = vld [vmem:[#allocation2 + $0xaf4] sm:$0xf]  ;;  %v4962_v35 = vld [vmem:[#allocation2 + $0xb28] sm:$0xf0]  ;;  %v5634_v41 = vld [vmem:[#allocation2 + $0xba4] sm:$0xf] }
 0x16e   :  { %3035 = vmatpush.bf16.msra.mxu3 %v4789_v17  ;;  %v5628_v17 = vld [vmem:[#allocation2 + $0xb74] sm:$0xf]  ;;  %v5026_v42 = vld [vmem:[#allocation2 + $0xba8] sm:$0xf0]  ;;  %v4890_v37 = vld [vmem:[#allocation2 + $0xa98] sm:$0xf0] }
 0x16f   :  { %2997 = vmatpush.bf16.msra.mxu0 %v4589_v44  ;;  %v4877_v44 = vor.u32 %v5596_v6, %v4874_v7  ;;  %v5620_v11 = vld [vmem:[#allocation2 + $0xb34] sm:$0xf] }
 0x170   :  { %3010 = vmatpush.bf16.msra.mxu1 %v4653_v52  ;;  %v4941_v52 = vor.u32 %v5612_v10, %v4938_v16  ;;  %v4906_v10 = vld [vmem:[#allocation2 + $0xab8] sm:$0xf0]  ;;  %v5636_v16 = vld [vmem:[#allocation2 + $0xbb4] sm:$0xf] }
 0x171   :  { %3023 = vmatpush.bf16.msra.mxu2 %v4717_v9  ;;  %v5005_v9 = vor.u32 %v5628_v17, %v5002_v21  ;;  %v5034_v17 = vld [vmem:[#allocation2 + $0xbb8] sm:$0xf0]  ;;  %v5616_v55 = vld [vmem:[#allocation2 + $0xb14] sm:$0xf] }
 0x172   :  { %3036 = vmatpush.bf16.msra.mxu3 %v4781_v25  ;;  %v5069_v25 = vor.u32 %v5644_v28, %v5066_v29  ;;  %v5586_v29 = vld [vmem:[#allocation2 + $0xa24] sm:$0xf] }
 0x173   :  { %2998 = vmatpush.bf16.msra.mxu0 %v4581_v34  ;;  %v4858_v34 = vld [vmem:[#allocation2 + $0xa58] sm:$0xf0] }
 0x174   :  { %3011 = vmatpush.bf16.msra.mxu1 %v4645_v43  ;;  %v5061_v43 = vor.u32 %v5642_v45, %v5058_v46  ;;  %v4861_v40 = vor.u32 %v5592_v50, %v4858_v34  ;;  %v5584_v50 = vld [vmem:[#allocation2 + $0xa14] sm:$0xf]  ;;  %v4826_v34 = vld [vmem:[#allocation2 + $0xa18] sm:$0xf0] }
 0x175   :  { %3024 = vmatpush.bf16.msra.mxu2 %v4709_v54  ;;  %v4922_v54 = vld [vmem:[#allocation2 + $0xad8] sm:$0xf0] }
 0x176   :  { %3037 = vmatpush.bf16.msra.mxu3 %v4773_v56  ;;  %v5050_v56 = vld [vmem:[#allocation2 + $0xbd8] sm:$0xf0]  ;;  %v4925_v18 = vor.u32 %v5608_v51, %v4922_v54  ;;  %v5600_v51 = vld [vmem:[#allocation2 + $0xa94] sm:$0xf]  ;;  %v5029_v54 = vor.u32 %v5634_v41, %v5026_v42 }
 0x177   :  { %2999 = vmatpush.bf16.msra.mxu0 %v4573_v60  ;;  %v5706_v60 = vld [vmem:[#allocation5] sm:$0x3]  ;;  %v5053_v13 = vor.u32 %v5640_v38, %v5050_v56  ;;  %v4954_v38 = vld [vmem:[#allocation2 + $0xb18] sm:$0xf0]  ;;  %v5632_v56 = vld [vmem:[#allocation2 + $0xb94] sm:$0xf] }
 0x178   :  { %3012 = vmatpush.bf16.msra.mxu1 %v4637_v22  ;;  %v550_v62 = vperm.slane %v5706_v60, 1  ;;  %v5622_v22 = vld [vmem:[#allocation2 + $0xb44] sm:$0xf]  ;;  %v5653_v41 = vld [vmem:[#allocation7 + $0x34] sm:$0xf0] }
 0x179   :  { %3025 = vmatpush.bf16.msra.mxu2 %v4701_v63  ;;  %v5638_v63 = vld [vmem:[#allocation2 + $0xbc4] sm:$0xf] }
 0x17a   :  { %3038 = vmatpush.bf16.msra.mxu3 %v4765_v27  ;;  %v5045_v7 = vor.u32 %v5638_v63, %v5042_v23  ;;  %v5598_v60 = vld [vmem:[#allocation2 + $0xa84] sm:$0xf] }
 0x17b   :  { %3000 = vmatpush.bf16.msra.mxu0 %v4565_v14  ;;  %v2794_v0 = vpop.f32.mrf.mxu0  ;;  %v4970_v14 = vld [vmem:[#allocation2 + $0xb38] sm:$0xf0]  ;;  %v5630_v63 = vld [vmem:[#allocation2 + $0xb84] sm:$0xf] }
 0x17c   :  { %3013 = vmatpush.bf16.msra.mxu1 %v4629_v12  ;;  %v2795_v4 = vadd.f32 %v2794_v0, %v550_v62  ;;  %v2807_v6 = vpop.f32.mrf.mxu1  ;;  %v4845_v12 = vor.u32 %v5588_v20, %v4842_v3  ;;  %v4973_v28 = vor.u32 %v5620_v11, %v4970_v14  ;;  %v4882_v62 = vld [vmem:[#allocation2 + $0xa88] sm:$0xf0]  ;;  %v5128_v0 = vld [vmem:[#allocation7 + $0x70] sm:$0xf]  ;;  %v5660_v20 = vld [vmem:[#allocation7 + $0x74] sm:$0xf] }
 0x17d   :  { %3026 = vmatpush.bf16.msra.mxu2 %v4693_v8  ;;  %v4909_v8 = vor.u32 %v5604_v26, %v4906_v10  ;;  %v5130_v3 = vld [vmem:[#allocation7 + $0x78] sm:$0xf0]  ;;  %v4885_v26 = vor.u32 %v5598_v60, %v4882_v62  ;;  %v5120_v11 = vld [vmem:[#allocation7 + $0x60] sm:$0xf]  ;;  %v5659_v14 = vld [vmem:[#allocation7 + $0x64] sm:$0xf0] }
 0x17e   :  { %3039 = vmatpush.bf16.msra.mxu3 %v4757_v30  ;;  %3001 = vmatmul.bf16.vlgmr.msra.gmra.mxu0 %v6062_v24  ;;  %v4850_v24 = vld [vmem:[#allocation2 + $0xa48] sm:$0xf0]  ;;  %v2808_v21 = vadd.f32 %v2807_v6, %v2795_v4  ;;  %v5133_v10 = vor.u32 %v5660_v20, %v5130_v3 }
 0x17f   :  { %3045 = vmatpush.bf16.msrb.mxu0 %v4877_v44  ;;  %3014 = vmatmul.bf16.vlgmr.msra.gmra.mxu1 %v6066_v32  ;;  %v4978_v32 = vld [vmem:[#allocation2 + $0xb48] sm:$0xf0]  ;;  %v5602_v44 = vld [vmem:[#allocation2 + $0xaa4] sm:$0xf] }
 0x180   :  { %3058 = vmatpush.bf16.msrb.mxu1 %v4941_v52  ;;  %3027 = vmatmul.bf16.vlgmr.msra.gmra.mxu2 %v6064_v31  ;;  %v4914_v31 = vld [vmem:[#allocation2 + $0xac8] sm:$0xf0]  ;;  %v4981_v27 = vor.u32 %v5622_v22, %v4978_v32  ;;  %v5614_v22 = vld [vmem:[#allocation2 + $0xb04] sm:$0xf] }
 0x181   :  { %3071 = vmatpush.bf16.msrb.mxu2 %v5005_v9  ;;  %3040 = vmatmul.bf16.vlgmr.msra.gmra.mxu3 %v6068_v36  ;;  %v4853_v36 = vor.u32 %v5590_v57, %v4850_v24  ;;  %v4917_v19 = vor.u32 %v5606_v59, %v4914_v31  ;;  %v4834_v30 = vld [vmem:[#allocation2 + $0xa28] sm:$0xf0]  ;;  %v5037_v9 = vor.u32 %v5636_v16, %v5034_v17  ;;  %v5658_v16 = vld [vmem:[#allocation7 + $0x64] sm:$0xf] }
 0x182   :  { %3084 = vmatpush.bf16.msrb.mxu3 %v5069_v25  ;;  %v4837_v45 = vor.u32 %v5586_v29, %v4834_v30  ;;  %v4829_v57 = vor.u32 %v5584_v50, %v4826_v34  ;;  %v4957_v24 = vor.u32 %v5616_v55, %v4954_v38  ;;  %v4818_v59 = vld [vmem:[#allocation2 + $0xa08] sm:$0xf0]  ;;  %v5656_v29 = vld [vmem:[#allocation7 + $0x54] sm:$0xf]  ;;  %v5114_v30 = vld [vmem:[#allocation7 + $0x58] sm:$0xf0] }
 0x183   :  { %3046 = vmatpush.bf16.msrb.mxu0 %v4869_v47  ;;  %v2820_v52 = vpop.f32.mrf.mxu2  ;;  %v2796_v47 = vpop.f32.mrf.mxu0  ;;  %v4946_v32 = vld [vmem:[#allocation2 + $0xb08] sm:$0xf0]  ;;  %v5088_v50 = vld [vmem:[#allocation7 + $0x20] sm:$0xf] }
 0x184   :  { %3059 = vmatpush.bf16.msrb.mxu1 %v4933_v48  ;;  %v2821_v25 = vadd.f32 %v2820_v52, %v2808_v21  ;;  %v2833_v39 = vpop.f32.mrf.mxu3  ;;  %v4901_v48 = vor.u32 %v5602_v44, %v4898_v33  ;;  %v4949_v4 = vor.u32 %v5614_v22, %v4946_v32  ;;  %v5122_v17 = vld [vmem:[#allocation7 + $0x68] sm:$0xf0]  ;;  %v5121_v21 = vor.u32 %v5659_v14, %v5120_v11  ;;  %v5655_v33 = vld [vmem:[#allocation7 + $0x44] sm:$0xf0]  ;;  %v5646_v32 = vld [vmem:[#allocation7 + $0x4] sm:$0xf] }
 0x185   :  { %3072 = vmatpush.bf16.msrb.mxu2 %v4997_v49  ;;  %v4965_v49 = vor.u32 %v5618_v15, %v4962_v35  ;;  %v5117_v52 = vor.u32 %v5656_v29, %v5114_v30  ;;  %v5654_v15 = vld [vmem:[#allocation7 + $0x44] sm:$0xf]  ;;  %v5106_v35 = vld [vmem:[#allocation7 + $0x48] sm:$0xf0]  ;;  %v5651_v34 = vld [vmem:[#allocation7 + $0x24] sm:$0xf0] }
 0x186   :  { %3085 = vmatpush.bf16.msrb.mxu3 %v5061_v43  ;;  %v6135_v46 = vadd.f32 %v2833_v39, %v2821_v25  ;;  %v2809_v43 = vpop.f32.mrf.mxu1  ;;  %v5109_v39 = vor.u32 %v5654_v15, %v5106_v35  ;;  %v5089_v38 = vor.u32 %v5651_v34, %v5088_v50  ;;  %v5192_v30 = vld [vmem:[#allocation7 + $0xf0] sm:$0xf]  ;;  %v5194_v15 = vld [vmem:[#allocation7 + $0xf8] sm:$0xf0]  ;;  %v5184_v35 = vld [vmem:[#allocation7 + $0xe0] sm:$0xf] }
 0x187   :  { %3047 = vmatpush.bf16.msrb.mxu0 %v4861_v40  ;;  %v5018_v40 = vld [vmem:[#allocation2 + $0xb98] sm:$0xf0]  ;;  %v5650_v43 = vld [vmem:[#allocation7 + $0x24] sm:$0xf] }
 0x188   :  { %3060 = vmatpush.bf16.msrb.mxu1 %v4925_v18  ;;  %v5582_v18 = vld [vmem:[#allocation2 + $0xa04] sm:$0xf]  ;;  %v5021_v31 = vor.u32 %v5632_v56, %v5018_v40 }
 0x189   :  { %3073 = vmatpush.bf16.msrb.mxu2 %v4989_v58  ;;  %v4893_v58 = vor.u32 %v5600_v51, %v4890_v37 }
 0x18a   :  { %3086 = vmatpush.bf16.msrb.mxu3 %v5053_v13 }
 0x18b   :  { %3048 = vmatpush.bf16.msrb.mxu0 %v4853_v36  ;;  %v2822_v13 = vpop.f32.mrf.mxu2  ;;  %v5010_v36 = vld [vmem:[#allocation2 + $0xb88] sm:$0xf0] }
 0x18c   :  { %3061 = vmatpush.bf16.msrb.mxu1 %v4917_v19  ;;  %v2835_v23 = vpop.f32.mrf.mxu3  ;;  %v5661_v19 = vld [vmem:[#allocation7 + $0x74] sm:$0xf0]  ;;  %v5013_v6 = vor.u32 %v5630_v63, %v5010_v36  ;;  %v5072_v13 = vld [vmem:[#allocation7] sm:$0xf]  ;;  %v5074_v63 = vld [vmem:[#allocation7 + $0x8] sm:$0xf0] }
 0x18d   :  { %3074 = vmatpush.bf16.msrb.mxu2 %v4981_v27  ;;  %v4821_v27 = vor.u32 %v5582_v18, %v4818_v59  ;;  %v5649_v18 = vld [vmem:[#allocation7 + $0x14] sm:$0xf0]  ;;  %v5082_v59 = vld [vmem:[#allocation7 + $0x18] sm:$0xf0] }
 0x18e   :  { %3087 = vmatpush.bf16.msrb.mxu3 %v5045_v7  ;;  %v5129_v7 = vor.u32 %v5661_v19, %v5128_v0  ;;  %v3097_v0 = vmax.f32 %v6129_v53, 0.0  ;;  %v5077_v19 = vor.u32 %v5646_v32, %v5074_v63  ;;  %v5144_v63 = vld [vmem:[#allocation7 + $0x90] sm:$0xf] }
 0x18f   :  { %3049 = vmatpush.bf16.msrb.mxu0 %v4845_v12  ;;  %v5125_v12 = vor.u32 %v5658_v16, %v5122_v17 }
 0x190   :  { %3062 = vmatpush.bf16.msrb.mxu1 %v4909_v8  ;;  %v5112_v8 = vld [vmem:[#allocation7 + $0x50] sm:$0xf] }
 0x191   :  { %3075 = vmatpush.bf16.msrb.mxu2 %v4973_v28  ;;  %v5657_v28 = vld [vmem:[#allocation7 + $0x54] sm:$0xf0] }
 0x192   :  { %3088 = vmatpush.bf16.msrb.mxu3 %v5037_v9  ;;  %v5113_v44 = vor.u32 %v5657_v28, %v5112_v8  ;;  %v5104_v9 = vld [vmem:[#allocation7 + $0x40] sm:$0xf] }
 0x193   :  { %3050 = vmatpush.bf16.msrb.mxu0 %v4837_v45  ;;  %v5652_v45 = vld [vmem:[#allocation7 + $0x34] sm:$0xf] }
 0x194   :  { %3063 = vmatpush.bf16.msrb.mxu1 %v4901_v48 }
 0x195   :  { %3076 = vmatpush.bf16.msrb.mxu2 %v4965_v49 }
 0x196   :  { %3089 = vmatpush.bf16.msrb.mxu3 %v5029_v54  ;;  %v5090_v54 = vld [vmem:[#allocation7 + $0x28] sm:$0xf0] }
 0x197   :  { %3051 = vmatpush.bf16.msrb.mxu0 %v4829_v57  ;;  %v5080_v57 = vld [vmem:[#allocation7 + $0x10] sm:$0xf] }
 0x198   :  { %3064 = vmatpush.bf16.msrb.mxu1 %v4893_v58  ;;  %v5081_v60 = vor.u32 %v5649_v18, %v5080_v57  ;;  %v5162_v18 = vld [vmem:[#allocation7 + $0xb8] sm:$0xf0] }
 0x199   :  { %3077 = vmatpush.bf16.msrb.mxu2 %v4957_v24  ;;  %v5648_v24 = vld [vmem:[#allocation7 + $0x14] sm:$0xf] }
 0x19a   :  { %3090 = vmatpush.bf16.msrb.mxu3 %v5021_v31  ;;  %v5085_v62 = vor.u32 %v5648_v24, %v5082_v59  ;;  %v5647_v31 = vld [vmem:[#allocation7 + $0x4] sm:$0xf0]  ;;  %v5152_v59 = vld [vmem:[#allocation7 + $0xa0] sm:$0xf] }
 0x19b   :  { %3052 = vmatpush.bf16.msrb.mxu0 %v4821_v27  ;;  %v2846_v25 = vpop.f32.mrf.mxu0  ;;  %v5073_v36 = vor.u32 %v5647_v31, %v5072_v13  ;;  %v3099_v27 = vpack.c.bf16 %v3097_v0, %v3097_v0 }
 0x19c   :  { %3065 = vmatpush.bf16.msrb.mxu1 %v4885_v26  ;;  %v2859_v42 = vpop.f32.mrf.mxu1 }
 0x19d   :  { %3078 = vmatpush.bf16.msrb.mxu2 %v4949_v4 }
 0x19e   :  { %3091 = vmatpush.bf16.msrb.mxu3 %v5013_v6  ;;  %3053 = vmatmul.bf16.vlgmr.msrb.gmra.mxu0 %v6088_v61  ;;  %v5105_v61 = vor.u32 %v5655_v33, %v5104_v9 }
 0x19f   :  { %3299 = vmatpush.bf16.msra.mxu0 %v5129_v7  ;;  %3066 = vmatmul.bf16.vlgmr.msrb.gmra.mxu1 %v6092_v2  ;;  %v5096_v2 = vld [vmem:[#allocation7 + $0x30] sm:$0xf] }
 0x1a0   :  { %3079 = vmatmul.bf16.vlgmr.msrb.gmra.mxu2 %v6090_v1  ;;  %v2847_v1 = vadd.f32 %v2846_v25, %v6135_v46  ;;  %v5097_v48 = vor.u32 %v5653_v41, %v5096_v2  ;;  %v5093_v46 = vor.u32 %v5650_v43, %v5090_v54  ;;  %v5186_v2 = vld [vmem:[#allocation7 + $0xe8] sm:$0xf0]  ;;  %v5671_v43 = vld [vmem:[#allocation7 + $0xc4] sm:$0xf0]  ;;  %v5670_v54 = vld [vmem:[#allocation7 + $0xc4] sm:$0xf] }
 0x1a1   :  { %3325 = vmatpush.bf16.msra.mxu2 %v5133_v10  ;;  %3092 = vmatmul.bf16.vlgmr.msrb.gmra.mxu3 %v6094_v5  ;;  %v5098_v5 = vld [vmem:[#allocation7 + $0x38] sm:$0xf0] }
 0x1a2   :  { %v2860_v47 = vadd.f32 %v2859_v42, %v2847_v1  ;;  %v5101_v49 = vor.u32 %v5652_v45, %v5098_v5  ;;  %v5176_v42 = vld [vmem:[#allocation7 + $0xd0] sm:$0xf]  ;;  %v5673_v45 = vld [vmem:[#allocation7 + $0xd4] sm:$0xf0]  ;;  %v5672_v5 = vld [vmem:[#allocation7 + $0xd4] sm:$0xf] }
 0x1a3   :  { %3300 = vmatpush.bf16.msra.mxu0 %v5121_v21  ;;  %v2872_v51 = vpop.f32.mrf.mxu2  ;;  %v2848_v40 = vpop.f32.mrf.mxu0 }
 0x1a4   :  { %v2873_v37 = vadd.f32 %v2872_v51, %v2860_v47  ;;  %v2885_v55 = vpop.f32.mrf.mxu3  ;;  %v2861_v58 = vpop.f32.mrf.mxu1  ;;  %v5168_v51 = vld [vmem:[#allocation7 + $0xc0] sm:$0xf]  ;;  %v5669_v40 = vld [vmem:[#allocation7 + $0xb4] sm:$0xf0] }
 0x1a5   :  { %3326 = vmatpush.bf16.msra.mxu2 %v5125_v12 }
 0x1a6   :  { %v2886_v56 = vadd.f32 %v2885_v55, %v2873_v37  ;;  %v5170_v37 = vld [vmem:[#allocation7 + $0xc8] sm:$0xf0]  ;;  %v5169_v55 = vor.u32 %v5671_v43, %v5168_v51 }
 0x1a7   :  { %3301 = vmatpush.bf16.msra.mxu0 %v5113_v44  ;;  %v5677_v44 = vld [vmem:[#allocation7 + $0xf4] sm:$0xf0]  ;;  %v5683_v51 = vld [vmem:[#allocation10 + $0x28] sm:$0xff] }
 0x1a8   :  { %v5193_v33 = vor.u32 %v5677_v44, %v5192_v30  ;;  %v5691_v43 = vld [vmem:[#allocation10 + $0x68] sm:$0xff] }
 0x1a9   :  { %3327 = vmatpush.bf16.msra.mxu2 %v5117_v52  ;;  %v5676_v52 = vld [vmem:[#allocation7 + $0xf4] sm:$0xf] }
 0x1aa   :  { %v5197_v25 = vor.u32 %v5676_v52, %v5194_v15  ;;  %3312 = vmatpush.bf16.msra.mxu1 %v5193_v33 }
 0x1ab   :  { %3302 = vmatpush.bf16.msra.mxu0 %v5105_v61  ;;  %v2874_v22 = vpop.f32.mrf.mxu2  ;;  %v5675_v61 = vld [vmem:[#allocation7 + $0xe4] sm:$0xf0] }
 0x1ac   :  { %v2887_v23 = vpop.f32.mrf.mxu3  ;;  %v5185_v41 = vor.u32 %v5675_v61, %v5184_v35  ;;  %3338 = vmatpush.bf16.msra.mxu3 %v5197_v25  ;;  %v5154_v22 = vld [vmem:[#allocation7 + $0xa8] sm:$0xf0] }
 0x1ad   :  { %3328 = vmatpush.bf16.msra.mxu2 %v5109_v39  ;;  %v5674_v39 = vld [vmem:[#allocation7 + $0xe4] sm:$0xf]  ;;  %v5665_v23 = vld [vmem:[#allocation7 + $0x94] sm:$0xf0] }
 0x1ae   :  { %v5189_v1 = vor.u32 %v5674_v39, %v5186_v2  ;;  %3313 = vmatpush.bf16.msra.mxu1 %v5185_v41  ;;  %v5145_v0 = vor.u32 %v5665_v23, %v5144_v63 }
 0x1af   :  { %3303 = vmatpush.bf16.msra.mxu0 %v5097_v48  ;;  %v5177_v48 = vor.u32 %v5673_v45, %v5176_v42 }
 0x1b0   :  { %3339 = vmatpush.bf16.msra.mxu3 %v5189_v1 }
 0x1b1   :  { %3329 = vmatpush.bf16.msra.mxu2 %v5101_v49  ;;  %v5178_v49 = vld [vmem:[#allocation7 + $0xd8] sm:$0xf0] }
 0x1b2   :  { %v5181_v34 = vor.u32 %v5672_v5, %v5178_v49  ;;  %3314 = vmatpush.bf16.msra.mxu1 %v5177_v48 }
 0x1b3   :  { %3304 = vmatpush.bf16.msra.mxu0 %v5089_v38  ;;  %v5173_v38 = vor.u32 %v5670_v54, %v5170_v37  ;;  %v5682_v54 = vld [vmem:[#allocation10 + $0x20] sm:$0xff] }
 0x1b4   :  { %3340 = vmatpush.bf16.msra.mxu3 %v5181_v34  ;;  %v5690_v37 = vld [vmem:[#allocation10 + $0x60] sm:$0xff] }
 0x1b5   :  { %3330 = vmatpush.bf16.msra.mxu2 %v5093_v46  ;;  %v5668_v46 = vld [vmem:[#allocation7 + $0xb4] sm:$0xf] }
 0x1b6   :  { %3315 = vmatpush.bf16.msra.mxu1 %v5169_v55  ;;  %v5165_v58 = vor.u32 %v5668_v46, %v5162_v18  ;;  %v5681_v55 = vld [vmem:[#allocation10 + $0x18] sm:$0xff] }
 0x1b7   :  { %3305 = vmatpush.bf16.msra.mxu0 %v5081_v60  ;;  %v5667_v60 = vld [vmem:[#allocation7 + $0xa4] sm:$0xf0] }
 0x1b8   :  { %3341 = vmatpush.bf16.msra.mxu3 %v5173_v38  ;;  %v5153_v31 = vor.u32 %v5667_v60, %v5152_v59  ;;  %v5689_v38 = vld [vmem:[#allocation10 + $0x58] sm:$0xff]  ;;  %v5678_v59 = vld [vmem:[#allocation10] sm:$0xff]  ;;  %v5687_v60 = vld [vmem:[#allocation10 + $0x48] sm:$0xff] }
 0x1b9   :  { %3331 = vmatpush.bf16.msra.mxu2 %v5085_v62  ;;  %v5666_v62 = vld [vmem:[#allocation7 + $0xa4] sm:$0xf] }
 0x1ba   :  { %v5157_v32 = vor.u32 %v5666_v62, %v5154_v22  ;;  %v5686_v62 = vld [vmem:[#allocation10 + $0x40] sm:$0xff] }
 0x1bb   :  { %3306 = vmatpush.bf16.msra.mxu0 %v5073_v36  ;;  %v2898_v20 = vpop.f32.mrf.mxu0  ;;  %v5664_v36 = vld [vmem:[#allocation7 + $0x94] sm:$0xf] }
 0x1bc   :  { %v2899_v3 = vadd.f32 %v2898_v20, %v2886_v56  ;;  %v2911_v26 = vpop.f32.mrf.mxu1  ;;  %v5160_v56 = vld [vmem:[#allocation7 + $0xb0] sm:$0xf]  ;;  %3342 = vmatpush.bf16.msra.mxu3 %v5165_v58 }
 0x1bd   :  { %3332 = vmatpush.bf16.msra.mxu2 %v5077_v19  ;;  %v5161_v57 = vor.u32 %v5669_v40, %v5160_v56  ;;  %v5146_v19 = vld [vmem:[#allocation7 + $0x98] sm:$0xf0]  ;;  %v5680_v40 = vld [vmem:[#allocation10 + $0x10] sm:$0xff]  ;;  %v5679_v58 = vld [vmem:[#allocation10 + $0x8] sm:$0xff] }
 0x1be   :  { %3307 = vmatmul.bf16.vlgmr.msra.gmra.mxu0 %v3099_v27  ;;  %v2912_v4 = vadd.f32 %v2911_v26, %v2899_v3 }
 0x1bf   :  { %3316 = vmatpush.bf16.msra.mxu1 %v5161_v57 }
 0x1c0   :  { %3333 = vmatmul.bf16.vlgmr.msra.gmra.mxu2 %v3099_v27  ;;  %3343 = vmatpush.bf16.msra.mxu3 %v5157_v32  ;;  %v5149_v27 = vor.u32 %v5664_v36, %v5146_v19 }
 0x1c3   :  { %v2924_v6 = vpop.f32.mrf.mxu2  ;;  %v2900_v11 = vpop.f32.mrf.mxu0  ;;  %3317 = vmatpush.bf16.msra.mxu1 %v5153_v31 }
 0x1c4   :  { %v2925_v7 = vadd.f32 %v2924_v6, %v2912_v4  ;;  %v2937_v10 = vpop.f32.mrf.mxu3  ;;  %v2913_v14 = vpop.f32.mrf.mxu1  ;;  %3344 = vmatpush.bf16.msra.mxu3 %v5149_v27  ;;  %v5136_v6 = vld [vmem:[#allocation7 + $0x80] sm:$0xf] }
 0x1c6   :  { %v6143_v16 = vadd.f32 %v2937_v10, %v2925_v7  ;;  %v5663_v7 = vld [vmem:[#allocation7 + $0x84] sm:$0xf0]  ;;  %v5662_v10 = vld [vmem:[#allocation7 + $0x84] sm:$0xf] }
 0x1c7   :  { %3318 = vmatpush.bf16.msra.mxu1 %v5145_v0  ;;  %v5137_v14 = vor.u32 %v5663_v7, %v5136_v6 }
 0x1cb   :  { %v2926_v17 = vpop.f32.mrf.mxu2  ;;  %3319 = vmatpush.bf16.msra.mxu1 %v5137_v14 }
 0x1cc   :  { %v2939_v53 = vpop.f32.mrf.mxu3  ;;  %v5138_v17 = vld [vmem:[#allocation7 + $0x88] sm:$0xf0] }
 0x1cd   :  { %v5141_v53 = vor.u32 %v5662_v10, %v5138_v17  ;;  %v5705_v10 = vld [vmem:[#allocation11] ss:$0 sm:$0xff] }
 0x1cf   :  { %3345 = vmatpush.bf16.msra.mxu3 %v5141_v53 }
 0x1db   :  { %v6145_v21 = vpop.f32.mrf.mxu0 }
 0x1dc   :  { %v6147_v12 = vpop.f32.mrf.mxu1  ;;  %v2951_v20 = vadd.f32 %v6145_v21, %v6143_v16 }
 0x1e3   :  { %v6149_v8 = vpop.f32.mrf.mxu2  ;;  %v2952_v29 = vpop.f32.mrf.mxu0 }
 0x1e4   :  { %v6151_v28 = vpop.f32.mrf.mxu3  ;;  %v2965_v9 = vpop.f32.mrf.mxu1  ;;  %v2964_v29 = vadd.f32 %v6147_v12, %v2951_v20 }
 0x1e6   :  { %v2977_v30 = vadd.f32 %v6149_v8, %v2964_v29  ;;  %v5685_v8 = vld [vmem:[#allocation10 + $0x38] sm:$0xff] }
 0x1e7   :  { %3487 = vmatpush.bf16.msrb.mxu0 %v5685_v8 }
 0x1e8   :  { %v2990_v21 = vadd.f32 %v6151_v28, %v2977_v30  ;;  %v5684_v28 = vld [vmem:[#allocation10 + $0x30] sm:$0xff] }
 0x1eb   :  { %v2978_v47 = vpop.f32.mrf.mxu2  ;;  %3488 = vmatpush.bf16.msrb.mxu0 %v5684_v28 }
 0x1ec   :  { %v2991_v50 = vpop.f32.mrf.mxu3  ;;  %v5693_v47 = vld [vmem:[#allocation10 + $0x78] sm:$0xff] }
 0x1ed   :  { %3500 = vmatpush.bf16.msrb.mxu1 %v5693_v47  ;;  %v5692_v50 = vld [vmem:[#allocation10 + $0x70] sm:$0xff] }
 0x1ef   :  { %3489 = vmatpush.bf16.msrb.mxu0 %v5683_v51 }
 0x1f1   :  { %3501 = vmatpush.bf16.msrb.mxu1 %v5692_v50 }
 0x1f3   :  { %3490 = vmatpush.bf16.msrb.mxu0 %v5682_v54 }
 0x1f5   :  { %3502 = vmatpush.bf16.msrb.mxu1 %v5691_v43 }
 0x1f7   :  { %3491 = vmatpush.bf16.msrb.mxu0 %v5681_v55 }
 0x1f9   :  { %3503 = vmatpush.bf16.msrb.mxu1 %v5690_v37 }
 0x1fb   :  { %v3002_v24 = vpop.f32.mrf.mxu0  ;;  %3492 = vmatpush.bf16.msrb.mxu0 %v5680_v40 }
 0x1fc   :  { %v3015_v13 = vpop.f32.mrf.mxu1  ;;  %v3003_v52 = vadd.f32 %v3002_v24, %v2990_v21  ;;  %v5688_v24 = vld [vmem:[#allocation10 + $0x50] sm:$0xff] }
 0x1fd   :  { %3504 = vmatpush.bf16.msrb.mxu1 %v5689_v38 }
 0x1fe   :  { %v3016_v9 = vadd.f32 %v3015_v13, %v3003_v52  ;;  %v3133_v13 = vld [vmem:[#allocation8] sm:$0x3] }
 0x1ff   :  { %3493 = vmatpush.bf16.msrb.mxu0 %v5679_v58  ;;  %v3135_v31 = vperm.slane %v3133_v13, 0  ;;  %v3136_v63 = vperm.slane %v3133_v13, 1 }
 0x201   :  { %3505 = vmatpush.bf16.msrb.mxu1 %v5688_v24 }
 0x203   :  { %v3028_v3 = vpop.f32.mrf.mxu2  ;;  %v3004_v4 = vpop.f32.mrf.mxu0  ;;  %3494 = vmatpush.bf16.msrb.mxu0 %v5678_v59 }
 0x204   :  { %v3041_v26 = vpop.f32.mrf.mxu3  ;;  %v3017_v11 = vpop.f32.mrf.mxu1  ;;  %v3029_v33 = vadd.f32 %v3028_v3, %v3016_v9 }
 0x205   :  { %3506 = vmatpush.bf16.msrb.mxu1 %v5687_v60 }
 0x206   :  { %v3042_v15 = vadd.f32 %v3041_v26, %v3029_v33 }
 0x209   :  { %3507 = vmatpush.bf16.msrb.mxu1 %v5686_v62 }
 0x20b   :  { %v3030_v44 = vpop.f32.mrf.mxu2 }
 0x20c   :  { %v3043_v16 = vpop.f32.mrf.mxu3 }
 0x21b   :  { %v3054_v35 = vpop.f32.mrf.mxu0 }
 0x21c   :  { %v3067_v61 = vpop.f32.mrf.mxu1  ;;  %v3055_v25 = vadd.f32 %v3054_v35, %v3042_v15 }
 0x21e   :  { %v3068_v39 = vadd.f32 %v3067_v61, %v3055_v25 }
 0x223   :  { %v3080_v2 = vpop.f32.mrf.mxu2  ;;  %v3056_v12 = vpop.f32.mrf.mxu0 }
 0x224   :  { %v3081_v41 = vadd.f32 %v3080_v2, %v3068_v39  ;;  %v3093_v1 = vpop.f32.mrf.mxu3  ;;  %v3069_v42 = vpop.f32.mrf.mxu1 }
 0x226   :  { %v3094_v45 = vadd.f32 %v3093_v1, %v3081_v41 }
 0x228   :  { %v3098_v5 = vmax.f32 %v3094_v45, 0.0 }
 0x22a   :  { %v3100_v48 = vpack.c.bf16 %v3098_v5, %v3098_v5 }
 0x22b   :  { %v3082_v49 = vpop.f32.mrf.mxu2 }
 0x22c   :  { %v3095_v34 = vpop.f32.mrf.mxu3  ;;  %3320 = vmatmul.bf16.vlgmr.msra.gmra.mxu1 %v3100_v48  ;;  %3346 = vmatmul.bf16.vlgmr.msra.gmra.mxu3 %v3100_v48 }
 0x23b   :  { %v3308_v56 = vpop.f32.mrf.mxu0 }
 0x23c   :  { %v3309_v22 = vadd.f32 %v3308_v56, %v3135_v31 }
 0x243   :  { %v3334_v46 = vpop.f32.mrf.mxu2  ;;  %v3310_v57 = vpop.f32.mrf.mxu0 }
 0x244   :  { %v3335_v0 = vadd.f32 %v3334_v46, %v3136_v63 }
 0x24b   :  { %v3336_v18 = vpop.f32.mrf.mxu2 }
 0x2a9   :  { %v3321_v32 = vpop.f32.mrf.mxu1 }
 0x2aa   :  { %v3322_v23 = vadd.f32 %v3321_v32, %v3309_v22 }
 0x2ac   :  { %v3351_v36 = vmax.f32 %v3322_v23, 0.0 }
 0x2ae   :  { %v3353_v19 = vpack.c.bf16 %v3351_v36, %v3351_v36 }
 0x2af   :  { %v3347_v27 = vpop.f32.mrf.mxu3 }
 0x2b0   :  { %v3348_v20 = vadd.f32 %v3347_v27, %v3335_v0  ;;  %3495 = vmatmul.bf16.vlgmr.msrb.gmra.mxu0 %v3353_v19 }
 0x2b1   :  { %v3323_v3 = vpop.f32.mrf.mxu1 }
 0x2b2   :  { %v3352_v26 = vmax.f32 %v3348_v20, 0.0 }
 0x2b4   :  { %v3354_v4 = vpack.c.bf16 %v3352_v26, %v3352_v26 }
 0x2b6   :  { %3508 = vmatmul.bf16.vlgmr.msrb.gmra.mxu1 %v3354_v4 }
 0x2b7   :  { %v3349_v6 = vpop.f32.mrf.mxu3 }
 0x32d   :  { %v3496_v7 = vpop.f32.mrf.mxu0 }
 0x32e   :  { %v3497_v11 = vadd.f32 %v5705_v10, %v3496_v7 }
 0x333   :  { %v3509_v14 = vpop.f32.mrf.mxu1 }
 0x334   :  { %v3510_v17 = vadd.f32 %v3509_v14, %v3497_v11 }
 0x335   :  { %v3498_v53 = vpop.f32.mrf.mxu0 }
 0x336   :  { %3513 = vst [vmem:[#allocation13] sm:$0xff] %v3510_v17 }
 0x337   :  { %3524 = dma.vmem_to_hbm [thread:$0]  %s3520_s1, 128, %s3522_s25, [#allocation4]  }
 0x33b   :  { %v3511_v29 = vpop.f32.mrf.mxu1 }
 0x33c   :  { %5883 = dma.done.wait [#allocation4], 128  }
 0x33d   :  { %5884 = vsyncadd [#allocation4], 4294967168 }
 0x33e   :  { %3529 = vsyncpa [#allocation3], 1 }
 0x33f   :  { %3530 = vsyncpa [#allocation6], 1 }
 0x340   :  { %3531 = vsyncpa [#allocation9], 1 }
 0x341   :  { %3532 = vsyncpa [#allocation12], 1 }
 0x342   :  { %3533 = vsyncpa [#allocation4], 1 }

</bundles_post_ra>
